<compile_context>
chip_gen: v7x
topology: tpu7x:2x2x1
jax: 0.10.0
libtpu: 0.0.40
codegen_flags: <defaults>
</compile_context>

<pallas_src>
from functools import partial

import jax
import jax.numpy as jnp
from jax.experimental import pallas as pl
from jax.experimental.pallas import tpu as pltpu


# ----------------------------------------------------------------------------
# Fused ResidualGroup kernel
#   grid = (N, n_resblocks + 1)
#   b < n_resblocks : one RCAB applied to the resident activation
#   b == n_resblocks: tail 3x3 conv + outer skip connection, write output
# ----------------------------------------------------------------------------
def _group_kernel(x_ref, w1_ref, b1_ref, w2_ref, b2_ref,
                  cw1_ref, cb1_ref, cw2_ref, cb2_ref,
                  o_ref, res_ref, pad_ref, *, H, W, C):
    b = pl.program_id(1)
    last = pl.num_programs(1) - 1
    PADL = 8  # left halo offset kept 8-sublane aligned -> aligned interior store
    HW = H * W

    @pl.when(b == 0)
    def _init():
        # Zero the halo scratch once per sample (stale VMEM is NOT zero); only
        # the interior is ever rewritten afterwards, so the halo ring stays 0.
        pad_ref[...] = jnp.zeros_like(pad_ref)
        # Load the sample into the resident running-activation scratch (f32).
        res_ref[...] = x_ref[0].astype(jnp.float32).reshape(HW, C)

    def conv3x3(inp, w9, bias):
        """3x3 SAME conv: in-kernel halo padding + one im2col MXU dot.

        inp : (H*W, C) f32,  w9 : (9*C, C),  bias : (1, C)  ->  (H*W, C) f32
        """
        # Write the tile into the zero-halo scratch (aligned sublane offset).
        pad_ref[1:H + 1, PADL:PADL + W, :] = inp.reshape(H, W, C)
        # Gather the 9 shifted taps and form the (H*W, 9*C) im2col patch.
        taps = [pad_ref[ky:ky + H, PADL - 1 + kx:PADL - 1 + kx + W, :]
                for ky in range(3) for kx in range(3)]        # 9 x (H, W, C)
        patch = jnp.concatenate(taps, axis=-1).reshape(HW, 9 * C)
        out = jnp.dot(patch, w9, preferred_element_type=jnp.float32)
        return out + bias

    res = res_ref[...]                                         # (H*W, C) f32
    # First conv of the RCAB -- or the tail conv (same weight slot, b-indexed).
    h1 = conv3x3(res, w1_ref[0].astype(jnp.float32), b1_ref[0].astype(jnp.float32))

    @pl.when(b < last)
    def _rcab():
        h = conv3x3(jnp.maximum(h1, 0.0),
                    w2_ref[0].astype(jnp.float32), b2_ref[0].astype(jnp.float32))
        # Channel attention: global avg pool -> 1x1 -> ReLU -> 1x1 -> sigmoid.
        y = jnp.sum(h, axis=0, keepdims=True) * (1.0 / HW)             # (1, C)
        z = jnp.dot(y, cw1_ref[0].astype(jnp.float32),
                    preferred_element_type=jnp.float32) + cb1_ref[0].astype(jnp.float32)
        z = jnp.maximum(z, 0.0)                                        # (1, C//r)
        s = jnp.dot(z, cw2_ref[0].astype(jnp.float32),
                    preferred_element_type=jnp.float32) + cb2_ref[0].astype(jnp.float32)
        s = jax.nn.sigmoid(s)                                          # (1, C)
        res_ref[...] = res + h * s                                     # RCAB residual

    @pl.when(b == last)
    def _tail():
        out = h1.reshape(H, W, C) + x_ref[0].astype(jnp.float32)       # outer skip
        o_ref[0] = out.astype(o_ref.dtype)


# ----------------------------------------------------------------------------
# Host-side weight packing: stack per-block weights on a leading axis so the
# kernel can fetch block b's weights via b-indexed BlockSpecs.
# Slot n_resblocks of (w1, b1) holds the tail conv; other tail slots are zeros.
# ----------------------------------------------------------------------------
def _pack_params(params):
    blocks = params["blocks"]
    C = params["w_tail"].shape[2]
    Cr = blocks[0]["ca_w1"].shape[1]
    z = jnp.zeros

    def w9(w):  # (3,3,Cin,Cout) HWIO -> im2col (9*Cin, Cout), (ky,kx,ci) order
        return w.reshape(9 * w.shape[2], w.shape[3])

    w1s = jnp.stack([w9(blk["w1"]) for blk in blocks] + [w9(params["w_tail"])])
    b1s = jnp.stack([blk["b1"].reshape(1, C) for blk in blocks]
                    + [params["b_tail"].reshape(1, C)])
    w2s = jnp.stack([w9(blk["w2"]) for blk in blocks] + [z((9 * C, C), jnp.float32)])
    b2s = jnp.stack([blk["b2"].reshape(1, C) for blk in blocks] + [z((1, C), jnp.float32)])
    cw1s = jnp.stack([blk["ca_w1"] for blk in blocks] + [z((C, Cr), jnp.float32)])
    cb1s = jnp.stack([blk["ca_b1"].reshape(1, Cr) for blk in blocks] + [z((1, Cr), jnp.float32)])
    cw2s = jnp.stack([blk["ca_w2"] for blk in blocks] + [z((Cr, C), jnp.float32)])
    cb2s = jnp.stack([blk["ca_b2"].reshape(1, C) for blk in blocks] + [z((1, C), jnp.float32)])
    return w1s, b1s, w2s, b2s, cw1s, cb1s, cw2s, cb2s


# ----------------------------------------------------------------------------
# ResidualGroup forward (single pallas_call)
# ----------------------------------------------------------------------------
def residual_group_pallas(x_nchw, params):
    N, C, H, W = x_nchw.shape
    nb = len(params["blocks"])
    x = jnp.transpose(x_nchw, (0, 2, 3, 1))                    # NCHW -> NHWC
    w1s, b1s, w2s, b2s, cw1s, cb1s, cw2s, cb2s = _pack_params(params)
    Cr = cw1s.shape[2]
    PADL = 8

    kernel = partial(_group_kernel, H=H, W=W, C=C)

    out = pl.pallas_call(
        kernel,
        out_shape=jax.ShapeDtypeStruct((N, H, W, C), x.dtype),
        grid_spec=pltpu.PrefetchScalarGridSpec(
            num_scalar_prefetch=0,
            grid=(N, nb + 1),
            in_specs=[
                # Input sample: block index depends only on n -> stays resident
                # in VMEM across the whole block axis (no re-DMA per RCAB).
                pl.BlockSpec((1, H, W, C), lambda n, b: (n, 0, 0, 0)),
                # Per-block weights: b-indexed -> DMA pipelines under compute.
                pl.BlockSpec((1, 9 * C, C), lambda n, b: (b, 0, 0)),   # conv1 / tail W
                pl.BlockSpec((1, 1, C),     lambda n, b: (b, 0, 0)),   # conv1 / tail b
                pl.BlockSpec((1, 9 * C, C), lambda n, b: (b, 0, 0)),   # conv2 W
                pl.BlockSpec((1, 1, C),     lambda n, b: (b, 0, 0)),   # conv2 b
                pl.BlockSpec((1, C, Cr),    lambda n, b: (b, 0, 0)),   # CA squeeze W
                pl.BlockSpec((1, 1, Cr),    lambda n, b: (b, 0, 0)),   # CA squeeze b
                pl.BlockSpec((1, Cr, C),    lambda n, b: (b, 0, 0)),   # CA excite W
                pl.BlockSpec((1, 1, C),     lambda n, b: (b, 0, 0)),   # CA excite b
            ],
            out_specs=pl.BlockSpec((1, H, W, C), lambda n, b: (n, 0, 0, 0)),
            scratch_shapes=[
                pltpu.VMEM((H * W, C), jnp.float32),                   # resident activation
                pltpu.VMEM((H + 2, PADL + W + 1, C), jnp.float32),     # zero-halo conv input
            ],
        ),
        compiler_params=pltpu.CompilerParams(
            dimension_semantics=("parallel", "arbitrary")),
    )(x, w1s, b1s, w2s, b2s, cw1s, cb1s, cw2s, cb2s)
    return jnp.transpose(out, (0, 3, 1, 2))                    # NHWC -> NCHW


# ----------------------------------------------------------------------------
# Pure-JAX reference (correctness check) -- HIGHEST precision so the reference
# is a true-f32 answer to compare against.
# ----------------------------------------------------------------------------
def _conv_ref(x, w, b):
    out = jax.lax.conv_general_dilated(
        x, w, window_strides=(1, 1), padding="SAME",
        dimension_numbers=("NHWC", "HWIO", "NHWC"),
        precision=jax.lax.Precision.HIGHEST)
    return out + b[None, None, None, :]


def residual_group_ref(x_nchw, params):
    hi = jax.lax.Precision.HIGHEST
    x = jnp.transpose(x_nchw, (0, 2, 3, 1))
    res = x
    for blk in params["blocks"]:
        h = jax.nn.relu(_conv_ref(res, blk["w1"], blk["b1"]))
        h = _conv_ref(h, blk["w2"], blk["b2"])
        y = jnp.mean(h, axis=(1, 2))                                   # (N, C)
        z = jax.nn.relu(jnp.dot(y, blk["ca_w1"], precision=hi) + blk["ca_b1"])
        s = jax.nn.sigmoid(jnp.dot(z, blk["ca_w2"], precision=hi) + blk["ca_b2"])
        res = res + h * s[:, None, None, :]
    out = _conv_ref(res, params["w_tail"], params["b_tail"]) + x
    return jnp.transpose(out, (0, 3, 1, 2))


# ----------------------------------------------------------------------------
# Deterministic parameter init (shapes match nn.Conv2d in the PyTorch module)
# ----------------------------------------------------------------------------
def init_params(key, n_feat, reduction, n_resblocks):
    cr = n_feat // reduction
    blocks = []
    for _ in range(n_resblocks):
        key, *ks = jax.random.split(key, 9)
        blocks.append(dict(
            w1=0.05 * jax.random.normal(ks[0], (3, 3, n_feat, n_feat), jnp.float32),
            b1=0.01 * jax.random.normal(ks[1], (n_feat,), jnp.float32),
            w2=0.05 * jax.random.normal(ks[2], (3, 3, n_feat, n_feat), jnp.float32),
            b2=0.01 * jax.random.normal(ks[3], (n_feat,), jnp.float32),
            # CA 1x1 convs stored as dense (Cin, Cout) matrices
            ca_w1=0.1 * jax.random.normal(ks[4], (n_feat, cr), jnp.float32),
            ca_b1=0.01 * jax.random.normal(ks[5], (cr,), jnp.float32),
            ca_w2=0.1 * jax.random.normal(ks[6], (cr, n_feat), jnp.float32),
            ca_b2=0.01 * jax.random.normal(ks[7], (n_feat,), jnp.float32),
        ))
    key, k1, k2 = jax.random.split(key, 3)
    return dict(
        blocks=blocks,
        w_tail=0.05 * jax.random.normal(k1, (3, 3, n_feat, n_feat), jnp.float32),
        b_tail=0.01 * jax.random.normal(k2, (n_feat,), jnp.float32),
    )


if __name__ == "__main__":
    # Small config consistent with the module: n_feat=16, reduction=4,
    # kernel_size=3, n_resblocks=2, batch=2, spatial 16x16.
    N, C, H, W = 2, 16, 16, 16
    reduction, n_resblocks = 4, 2

    key = jax.random.PRNGKey(0)
    key, kx = jax.random.split(key)
    x = jax.random.normal(kx, (N, C, H, W), jnp.float32)   # NCHW like PyTorch
    params = init_params(key, C, reduction, n_resblocks)

    out = jax.jit(residual_group_pallas)(x, params)
    out = jax.block_until_ready(out)

    ref = residual_group_ref(x, params)
    assert out.shape == (N, C, H, W)
    err = jnp.max(jnp.abs(out - ref))
    # 1e-3 leaves headroom for the MXU's f32 pass decomposition vs. the
    # HIGHEST-precision XLA reference; semantic bugs show up at >1e-1.
    assert jnp.allclose(out, ref, atol=1e-3, rtol=1e-3), f"max abs err {err}"

    print("KERNEL_OK")
</pallas_src>

<mosaic_0001>
module attributes {stable_mosaic.version = 11 : i64} {
  func.func @_group_kernel(%arg0: i32, %arg1: i32, %arg2: memref<1x16x16x16xf32, #tpu.memory_space<vmem>>, %arg3: memref<1x144x16xf32, #tpu.memory_space<vmem>>, %arg4: memref<1x1x16xf32, #tpu.memory_space<vmem>>, %arg5: memref<1x144x16xf32, #tpu.memory_space<vmem>>, %arg6: memref<1x1x16xf32, #tpu.memory_space<vmem>>, %arg7: memref<1x16x4xf32, #tpu.memory_space<vmem>>, %arg8: memref<1x1x4xf32, #tpu.memory_space<vmem>>, %arg9: memref<1x4x16xf32, #tpu.memory_space<vmem>>, %arg10: memref<1x1x16xf32, #tpu.memory_space<vmem>>, %arg11: memref<1x16x16x16xf32, #tpu.memory_space<vmem>>, %arg12: memref<256x16xf32, #tpu.memory_space<vmem>>, %arg13: memref<18x25x16xf32, #tpu.memory_space<vmem>>) attributes {dimension_semantics = [#tpu.dimension_semantics<parallel>, #tpu.dimension_semantics<arbitrary>], iteration_bounds = array<i64: 2, 3>, scalar_prefetch = 0 : i64, scratch_operands = 2 : i64, tpu.core_type = #tpu.core_type<tc>, window_params = [{transform_indices = @transform_0, window_bounds = array<i64: 1, 16, 16, 16>}, {transform_indices = @transform_1, window_bounds = array<i64: 1, 144, 16>}, {transform_indices = @transform_2, window_bounds = array<i64: 1, 1, 16>}, {transform_indices = @transform_3, window_bounds = array<i64: 1, 144, 16>}, {transform_indices = @transform_4, window_bounds = array<i64: 1, 1, 16>}, {transform_indices = @transform_5, window_bounds = array<i64: 1, 16, 4>}, {transform_indices = @transform_6, window_bounds = array<i64: 1, 1, 4>}, {transform_indices = @transform_7, window_bounds = array<i64: 1, 4, 16>}, {transform_indices = @transform_8, window_bounds = array<i64: 1, 1, 16>}, {transform_indices = @transform_9, window_bounds = array<i64: 1, 16, 16, 16>}]} {
    %c0_i32 = arith.constant 0 : i32
    %0 = arith.cmpi eq, %arg1, %c0_i32 : i32
    %1 = arith.extui %0 : i1 to i32
    %c0_i32_0 = arith.constant 0 : i32
    %2 = arith.cmpi ne, %1, %c0_i32_0 : i32
    scf.if %2 {
      %cst_36 = arith.constant 0.000000e+00 : f32
      %30 = vector.broadcast %cst_36 : f32 to vector<18x25x16xf32>
      %c0_37 = arith.constant 0 : index
      %c0_38 = arith.constant 0 : index
      %c0_39 = arith.constant 0 : index
      %31 = vector.load %arg13[%c0_37, %c0_38, %c0_39] : memref<18x25x16xf32, #tpu.memory_space<vmem>>, vector<18x25x16xf32>
      tpu.vector_store %arg13[%c0_37, %c0_38, %c0_39], %30 {strides = array<i32>} : memref<18x25x16xf32, #tpu.memory_space<vmem>>, vector<18x25x16xf32>,
      %c0_40 = arith.constant 0 : index
      %c0_41 = arith.constant 0 : index
      %c0_42 = arith.constant 0 : index
      %c0_43 = arith.constant 0 : index
      %32 = vector.load %arg2[%c0_40, %c0_41, %c0_42, %c0_43] : memref<1x16x16x16xf32, #tpu.memory_space<vmem>>, vector<1x16x16x16xf32>
      %33 = vector.shape_cast %32 : vector<1x16x16x16xf32> to vector<16x16x16xf32>
      %34 = vector.shape_cast %33 : vector<16x16x16xf32> to vector<256x16xf32>
      %c0_44 = arith.constant 0 : index
      %c0_45 = arith.constant 0 : index
      %35 = vector.load %arg12[%c0_44, %c0_45] : memref<256x16xf32, #tpu.memory_space<vmem>>, vector<256x16xf32>
      tpu.vector_store %arg12[%c0_44, %c0_45], %34 {strides = array<i32>} : memref<256x16xf32, #tpu.memory_space<vmem>>, vector<256x16xf32>,
    } else {
    }
    %c0 = arith.constant 0 : index
    %c0_1 = arith.constant 0 : index
    %3 = vector.load %arg12[%c0, %c0_1] : memref<256x16xf32, #tpu.memory_space<vmem>>, vector<256x16xf32>
    %c0_2 = arith.constant 0 : index
    %c0_3 = arith.constant 0 : index
    %c0_4 = arith.constant 0 : index
    %4 = vector.load %arg3[%c0_2, %c0_3, %c0_4] : memref<1x144x16xf32, #tpu.memory_space<vmem>>, vector<1x144x16xf32>
    %5 = vector.shape_cast %4 : vector<1x144x16xf32> to vector<144x16xf32>
    %c0_5 = arith.constant 0 : index
    %c0_6 = arith.constant 0 : index
    %c0_7 = arith.constant 0 : index
    %6 = vector.load %arg4[%c0_5, %c0_6, %c0_7] : memref<1x1x16xf32, #tpu.memory_space<vmem>>, vector<1x1x16xf32>
    %7 = vector.shape_cast %6 : vector<1x1x16xf32> to vector<1x16xf32>
    %8 = vector.shape_cast %3 : vector<256x16xf32> to vector<16x16x16xf32>
    %c1 = arith.constant 1 : index
    %c8 = arith.constant 8 : index
    %c0_8 = arith.constant 0 : index
    %9 = vector.load %arg13[%c1, %c8, %c0_8] : memref<18x25x16xf32, #tpu.memory_space<vmem>>, vector<16x16x16xf32>
    tpu.vector_store %arg13[%c1, %c8, %c0_8], %8 {strides = array<i32>} : memref<18x25x16xf32, #tpu.memory_space<vmem>>, vector<16x16x16xf32>,
    %c0_9 = arith.constant 0 : index
    %c7 = arith.constant 7 : index
    %c0_10 = arith.constant 0 : index
    %10 = vector.load %arg13[%c0_9, %c7, %c0_10] : memref<18x25x16xf32, #tpu.memory_space<vmem>>, vector<16x16x16xf32>
    %c0_11 = arith.constant 0 : index
    %c8_12 = arith.constant 8 : index
    %c0_13 = arith.constant 0 : index
    %11 = vector.load %arg13[%c0_11, %c8_12, %c0_13] : memref<18x25x16xf32, #tpu.memory_space<vmem>>, vector<16x16x16xf32>
    %c0_14 = arith.constant 0 : index
    %c9 = arith.constant 9 : index
    %c0_15 = arith.constant 0 : index
    %12 = vector.load %arg13[%c0_14, %c9, %c0_15] : memref<18x25x16xf32, #tpu.memory_space<vmem>>, vector<16x16x16xf32>
    %c1_16 = arith.constant 1 : index
    %c7_17 = arith.constant 7 : index
    %c0_18 = arith.constant 0 : index
    %13 = vector.load %arg13[%c1_16, %c7_17, %c0_18] : memref<18x25x16xf32, #tpu.memory_space<vmem>>, vector<16x16x16xf32>
    %c1_19 = arith.constant 1 : index
    %c8_20 = arith.constant 8 : index
    %c0_21 = arith.constant 0 : index
    %14 = vector.load %arg13[%c1_19, %c8_20, %c0_21] : memref<18x25x16xf32, #tpu.memory_space<vmem>>, vector<16x16x16xf32>
    %c1_22 = arith.constant 1 : index
    %c9_23 = arith.constant 9 : index
    %c0_24 = arith.constant 0 : index
    %15 = vector.load %arg13[%c1_22, %c9_23, %c0_24] : memref<18x25x16xf32, #tpu.memory_space<vmem>>, vector<16x16x16xf32>
    %c2 = arith.constant 2 : index
    %c7_25 = arith.constant 7 : index
    %c0_26 = arith.constant 0 : index
    %16 = vector.load %arg13[%c2, %c7_25, %c0_26] : memref<18x25x16xf32, #tpu.memory_space<vmem>>, vector<16x16x16xf32>
    %c2_27 = arith.constant 2 : index
    %c8_28 = arith.constant 8 : index
    %c0_29 = arith.constant 0 : index
    %17 = vector.load %arg13[%c2_27, %c8_28, %c0_29] : memref<18x25x16xf32, #tpu.memory_space<vmem>>, vector<16x16x16xf32>
    %c2_30 = arith.constant 2 : index
    %c9_31 = arith.constant 9 : index
    %c0_32 = arith.constant 0 : index
    %18 = vector.load %arg13[%c2_30, %c9_31, %c0_32] : memref<18x25x16xf32, #tpu.memory_space<vmem>>, vector<16x16x16xf32>
    %19 = tpu.concatenate %10, %11, %12, %13, %14, %15, %16, %17, %18 in 2 : vector<16x16x16xf32>, vector<16x16x16xf32>, vector<16x16x16xf32>, vector<16x16x16xf32>, vector<16x16x16xf32>, vector<16x16x16xf32>, vector<16x16x16xf32>, vector<16x16x16xf32>, vector<16x16x16xf32> -> vector<16x16x144xf32>
    %20 = vector.shape_cast %19 : vector<16x16x144xf32> to vector<256x144xf32>
    %cst = arith.constant dense<0.000000e+00> : vector<256x16xf32>
    %21 = tpu.matmul %20, %5, %cst {dimension_numbers = #tpu.dot_dimension_numbers<[1], [0], [0], [1], [0, 0, 1, 1], [], []>} : vector<256x144xf32>, vector<144x16xf32>, vector<256x16xf32> -> vector<256x16xf32>
    %22 = vector.broadcast %7 : vector<1x16xf32> to vector<256x16xf32>
    %23 = arith.addf %21, %22 : vector<256x16xf32>
    %c2_i32 = arith.constant 2 : i32
    %24 = arith.cmpi slt, %arg1, %c2_i32 : i32
    %25 = arith.extui %24 : i1 to i32
    %c0_i32_33 = arith.constant 0 : i32
    %26 = arith.cmpi ne, %25, %c0_i32_33 : i32
    scf.if %26 {
      %cst_36 = arith.constant 0.000000e+00 : f32
      %30 = vector.broadcast %cst_36 : f32 to vector<256x16xf32>
      %31 = arith.maximumf %23, %30 : vector<256x16xf32>
      %c0_37 = arith.constant 0 : index
      %c0_38 = arith.constant 0 : index
      %c0_39 = arith.constant 0 : index
      %32 = vector.load %arg5[%c0_37, %c0_38, %c0_39] : memref<1x144x16xf32, #tpu.memory_space<vmem>>, vector<1x144x16xf32>
      %33 = vector.shape_cast %32 : vector<1x144x16xf32> to vector<144x16xf32>
      %c0_40 = arith.constant 0 : index
      %c0_41 = arith.constant 0 : index
      %c0_42 = arith.constant 0 : index
      %34 = vector.load %arg6[%c0_40, %c0_41, %c0_42] : memref<1x1x16xf32, #tpu.memory_space<vmem>>, vector<1x1x16xf32>
      %35 = vector.shape_cast %34 : vector<1x1x16xf32> to vector<1x16xf32>
      %36 = vector.shape_cast %31 : vector<256x16xf32> to vector<16x16x16xf32>
      %c1_43 = arith.constant 1 : index
      %c8_44 = arith.constant 8 : index
      %c0_45 = arith.constant 0 : index
      %37 = vector.load %arg13[%c1_43, %c8_44, %c0_45] : memref<18x25x16xf32, #tpu.memory_space<vmem>>, vector<16x16x16xf32>
      tpu.vector_store %arg13[%c1_43, %c8_44, %c0_45], %36 {strides = array<i32>} : memref<18x25x16xf32, #tpu.memory_space<vmem>>, vector<16x16x16xf32>,
      %c0_46 = arith.constant 0 : index
      %c7_47 = arith.constant 7 : index
      %c0_48 = arith.constant 0 : index
      %38 = vector.load %arg13[%c0_46, %c7_47, %c0_48] : memref<18x25x16xf32, #tpu.memory_space<vmem>>, vector<16x16x16xf32>
      %c0_49 = arith.constant 0 : index
      %c8_50 = arith.constant 8 : index
      %c0_51 = arith.constant 0 : index
      %39 = vector.load %arg13[%c0_49, %c8_50, %c0_51] : memref<18x25x16xf32, #tpu.memory_space<vmem>>, vector<16x16x16xf32>
      %c0_52 = arith.constant 0 : index
      %c9_53 = arith.constant 9 : index
      %c0_54 = arith.constant 0 : index
      %40 = vector.load %arg13[%c0_52, %c9_53, %c0_54] : memref<18x25x16xf32, #tpu.memory_space<vmem>>, vector<16x16x16xf32>
      %c1_55 = arith.constant 1 : index
      %c7_56 = arith.constant 7 : index
      %c0_57 = arith.constant 0 : index
      %41 = vector.load %arg13[%c1_55, %c7_56, %c0_57] : memref<18x25x16xf32, #tpu.memory_space<vmem>>, vector<16x16x16xf32>
      %c1_58 = arith.constant 1 : index
      %c8_59 = arith.constant 8 : index
      %c0_60 = arith.constant 0 : index
      %42 = vector.load %arg13[%c1_58, %c8_59, %c0_60] : memref<18x25x16xf32, #tpu.memory_space<vmem>>, vector<16x16x16xf32>
      %c1_61 = arith.constant 1 : index
      %c9_62 = arith.constant 9 : index
      %c0_63 = arith.constant 0 : index
      %43 = vector.load %arg13[%c1_61, %c9_62, %c0_63] : memref<18x25x16xf32, #tpu.memory_space<vmem>>, vector<16x16x16xf32>
      %c2_64 = arith.constant 2 : index
      %c7_65 = arith.constant 7 : index
      %c0_66 = arith.constant 0 : index
      %44 = vector.load %arg13[%c2_64, %c7_65, %c0_66] : memref<18x25x16xf32, #tpu.memory_space<vmem>>, vector<16x16x16xf32>
      %c2_67 = arith.constant 2 : index
      %c8_68 = arith.constant 8 : index
      %c0_69 = arith.constant 0 : index
      %45 = vector.load %arg13[%c2_67, %c8_68, %c0_69] : memref<18x25x16xf32, #tpu.memory_space<vmem>>, vector<16x16x16xf32>
      %c2_70 = arith.constant 2 : index
      %c9_71 = arith.constant 9 : index
      %c0_72 = arith.constant 0 : index
      %46 = vector.load %arg13[%c2_70, %c9_71, %c0_72] : memref<18x25x16xf32, #tpu.memory_space<vmem>>, vector<16x16x16xf32>
      %47 = tpu.concatenate %38, %39, %40, %41, %42, %43, %44, %45, %46 in 2 : vector<16x16x16xf32>, vector<16x16x16xf32>, vector<16x16x16xf32>, vector<16x16x16xf32>, vector<16x16x16xf32>, vector<16x16x16xf32>, vector<16x16x16xf32>, vector<16x16x16xf32>, vector<16x16x16xf32> -> vector<16x16x144xf32>
      %48 = vector.shape_cast %47 : vector<16x16x144xf32> to vector<256x144xf32>
      %cst_73 = arith.constant dense<0.000000e+00> : vector<256x16xf32>
      %49 = tpu.matmul %48, %33, %cst_73 {dimension_numbers = #tpu.dot_dimension_numbers<[1], [0], [0], [1], [0, 0, 1, 1], [], []>} : vector<256x144xf32>, vector<144x16xf32>, vector<256x16xf32> -> vector<256x16xf32>
      %50 = vector.broadcast %35 : vector<1x16xf32> to vector<256x16xf32>
      %51 = arith.addf %49, %50 : vector<256x16xf32>
      %cst_74 = arith.constant dense<0.000000e+00> : vector<16xf32>
      %52 = vector.multi_reduction <add>, %51, %cst_74 [0] : vector<256x16xf32> to vector<16xf32>
      %53 = vector.shape_cast %52 : vector<16xf32> to vector<1x16xf32>
      %cst_75 = arith.constant 3.906250e-03 : f32
      %54 = vector.broadcast %cst_75 : f32 to vector<1x16xf32>
      %55 = arith.mulf %53, %54 : vector<1x16xf32>
      %c0_76 = arith.constant 0 : index
      %c0_77 = arith.constant 0 : index
      %c0_78 = arith.constant 0 : index
      %56 = vector.load %arg7[%c0_76, %c0_77, %c0_78] : memref<1x16x4xf32, #tpu.memory_space<vmem>>, vector<1x16x4xf32>
      %57 = vector.shape_cast %56 : vector<1x16x4xf32> to vector<16x4xf32>
      %cst_79 = arith.constant dense<0.000000e+00> : vector<1x4xf32>
      %58 = tpu.matmul %55, %57, %cst_79 {dimension_numbers = #tpu.dot_dimension_numbers<[1], [0], [0], [1], [0, 0, 1, 1], [], []>} : vector<1x16xf32>, vector<16x4xf32>, vector<1x4xf32> -> vector<1x4xf32>
      %c0_80 = arith.constant 0 : index
      %c0_81 = arith.constant 0 : index
      %c0_82 = arith.constant 0 : index
      %59 = vector.load %arg8[%c0_80, %c0_81, %c0_82] : memref<1x1x4xf32, #tpu.memory_space<vmem>>, vector<1x1x4xf32>
      %60 = vector.shape_cast %59 : vector<1x1x4xf32> to vector<1x4xf32>
      %61 = arith.addf %58, %60 : vector<1x4xf32>
      %cst_83 = arith.constant 0.000000e+00 : f32
      %62 = vector.broadcast %cst_83 : f32 to vector<1x4xf32>
      %63 = arith.maximumf %61, %62 : vector<1x4xf32>
      %c0_84 = arith.constant 0 : index
      %c0_85 = arith.constant 0 : index
      %c0_86 = arith.constant 0 : index
      %64 = vector.load %arg9[%c0_84, %c0_85, %c0_86] : memref<1x4x16xf32, #tpu.memory_space<vmem>>, vector<1x4x16xf32>
      %65 = vector.shape_cast %64 : vector<1x4x16xf32> to vector<4x16xf32>
      %cst_87 = arith.constant dense<0.000000e+00> : vector<1x16xf32>
      %66 = tpu.matmul %63, %65, %cst_87 {dimension_numbers = #tpu.dot_dimension_numbers<[1], [0], [0], [1], [0, 0, 1, 1], [], []>} : vector<1x4xf32>, vector<4x16xf32>, vector<1x16xf32> -> vector<1x16xf32>
      %c0_88 = arith.constant 0 : index
      %c0_89 = arith.constant 0 : index
      %c0_90 = arith.constant 0 : index
      %67 = vector.load %arg10[%c0_88, %c0_89, %c0_90] : memref<1x1x16xf32, #tpu.memory_space<vmem>>, vector<1x1x16xf32>
      %68 = vector.shape_cast %67 : vector<1x1x16xf32> to vector<1x16xf32>
      %69 = arith.addf %66, %68 : vector<1x16xf32>
      %70 = arith.negf %69 : vector<1x16xf32>
      %71 = math.exp %70 : vector<1x16xf32>
      %cst_91 = arith.constant 1.000000e+00 : f32
      %72 = vector.broadcast %cst_91 : f32 to vector<1x16xf32>
      %73 = arith.addf %72, %71 : vector<1x16xf32>
      %74 = arith.divf %72, %73 : vector<1x16xf32>
      %75 = vector.broadcast %74 : vector<1x16xf32> to vector<256x16xf32>
      %76 = arith.mulf %51, %75 : vector<256x16xf32>
      %77 = arith.addf %3, %76 : vector<256x16xf32>
      %c0_92 = arith.constant 0 : index
      %c0_93 = arith.constant 0 : index
      %78 = vector.load %arg12[%c0_92, %c0_93] : memref<256x16xf32, #tpu.memory_space<vmem>>, vector<256x16xf32>
      tpu.vector_store %arg12[%c0_92, %c0_93], %77 {strides = array<i32>} : memref<256x16xf32, #tpu.memory_space<vmem>>, vector<256x16xf32>,
    } else {
    }
    %c2_i32_34 = arith.constant 2 : i32
    %27 = arith.cmpi eq, %arg1, %c2_i32_34 : i32
    %28 = arith.extui %27 : i1 to i32
    %c0_i32_35 = arith.constant 0 : i32
    %29 = arith.cmpi ne, %28, %c0_i32_35 : i32
    scf.if %29 {
      %30 = vector.shape_cast %23 : vector<256x16xf32> to vector<16x16x16xf32>
      %c0_36 = arith.constant 0 : index
      %c0_37 = arith.constant 0 : index
      %c0_38 = arith.constant 0 : index
      %c0_39 = arith.constant 0 : index
      %31 = vector.load %arg2[%c0_36, %c0_37, %c0_38, %c0_39] : memref<1x16x16x16xf32, #tpu.memory_space<vmem>>, vector<1x16x16x16xf32>
      %32 = vector.shape_cast %31 : vector<1x16x16x16xf32> to vector<16x16x16xf32>
      %33 = arith.addf %30, %32 : vector<16x16x16xf32>
      %c0_40 = arith.constant 0 : index
      %c0_41 = arith.constant 0 : index
      %c0_42 = arith.constant 0 : index
      %c0_43 = arith.constant 0 : index
      %34 = vector.load %arg11[%c0_40, %c0_41, %c0_42, %c0_43] : memref<1x16x16x16xf32, #tpu.memory_space<vmem>>, vector<1x16x16x16xf32>
      %35 = vector.shape_cast %34 : vector<1x16x16x16xf32> to vector<16x16x16xf32>
      %36 = vector.shape_cast %33 : vector<16x16x16xf32> to vector<1x16x16x16xf32>
      tpu.vector_store %arg11[%c0_40, %c0_41, %c0_42, %c0_43], %36 {strides = array<i32>} : memref<1x16x16x16xf32, #tpu.memory_space<vmem>>, vector<1x16x16x16xf32>,
    } else {
    }
    return
  }
  func.func @transform_0(%arg0: i32, %arg1: i32) -> (i32, i32, i32, i32) {
    %c0_i32 = arith.constant 0 : i32
    %c0_i32_0 = arith.constant 0 : i32
    %c0_i32_1 = arith.constant 0 : i32
    %c0_i32_2 = arith.constant 0 : i32
    return %arg0, %c0_i32, %c0_i32_0, %c0_i32_1 : i32, i32, i32, i32
  }
  func.func @transform_1(%arg0: i32, %arg1: i32) -> (i32, i32, i32) {
    %c0_i32 = arith.constant 0 : i32
    %c0_i32_0 = arith.constant 0 : i32
    %c0_i32_1 = arith.constant 0 : i32
    return %arg1, %c0_i32, %c0_i32_0 : i32, i32, i32
  }
  func.func @transform_2(%arg0: i32, %arg1: i32) -> (i32, i32, i32) {
    %c0_i32 = arith.constant 0 : i32
    %c0_i32_0 = arith.constant 0 : i32
    %c0_i32_1 = arith.constant 0 : i32
    return %arg1, %c0_i32, %c0_i32_0 : i32, i32, i32
  }
  func.func @transform_3(%arg0: i32, %arg1: i32) -> (i32, i32, i32) {
    %c0_i32 = arith.constant 0 : i32
    %c0_i32_0 = arith.constant 0 : i32
    %c0_i32_1 = arith.constant 0 : i32
    return %arg1, %c0_i32, %c0_i32_0 : i32, i32, i32
  }
  func.func @transform_4(%arg0: i32, %arg1: i32) -> (i32, i32, i32) {
    %c0_i32 = arith.constant 0 : i32
    %c0_i32_0 = arith.constant 0 : i32
    %c0_i32_1 = arith.constant 0 : i32
    return %arg1, %c0_i32, %c0_i32_0 : i32, i32, i32
  }
  func.func @transform_5(%arg0: i32, %arg1: i32) -> (i32, i32, i32) {
    %c0_i32 = arith.constant 0 : i32
    %c0_i32_0 = arith.constant 0 : i32
    %c0_i32_1 = arith.constant 0 : i32
    return %arg1, %c0_i32, %c0_i32_0 : i32, i32, i32
  }
  func.func @transform_6(%arg0: i32, %arg1: i32) -> (i32, i32, i32) {
    %c0_i32 = arith.constant 0 : i32
    %c0_i32_0 = arith.constant 0 : i32
    %c0_i32_1 = arith.constant 0 : i32
    return %arg1, %c0_i32, %c0_i32_0 : i32, i32, i32
  }
  func.func @transform_7(%arg0: i32, %arg1: i32) -> (i32, i32, i32) {
    %c0_i32 = arith.constant 0 : i32
    %c0_i32_0 = arith.constant 0 : i32
    %c0_i32_1 = arith.constant 0 : i32
    return %arg1, %c0_i32, %c0_i32_0 : i32, i32, i32
  }
  func.func @transform_8(%arg0: i32, %arg1: i32) -> (i32, i32, i32) {
    %c0_i32 = arith.constant 0 : i32
    %c0_i32_0 = arith.constant 0 : i32
    %c0_i32_1 = arith.constant 0 : i32
    return %arg1, %c0_i32, %c0_i32_0 : i32, i32, i32
  }
  func.func @transform_9(%arg0: i32, %arg1: i32) -> (i32, i32, i32, i32) {
    %c0_i32 = arith.constant 0 : i32
    %c0_i32_0 = arith.constant 0 : i32
    %c0_i32_1 = arith.constant 0 : i32
    %c0_i32_2 = arith.constant 0 : i32
    return %arg0, %c0_i32, %c0_i32_0, %c0_i32_1 : i32, i32, i32, i32
  }
}

</mosaic_0001>

<bundles_post_ra>
// kernel: residual_group_pallas.1
= control target key start
LH: loop header
LB: loop body
LE: loop exit
PB: predicated region body
PF: predicated region fallthrough
CT: control target
= control target key end

     0   :  { %s6346_s30 = smov 0   ;;  %s6348_s10 = smov 0   ;;  %s8876_s0 = inlined_call_operand.vmem [shape: f32[2,16,16,16], index: 0, kind: input, shape index: {}]   ;;  %s8877_s1 = inlined_call_operand.vmem [shape: f32[3,144,16], index: 1, kind: input, shape index: {}]   ;;  %s8878_s2 = inlined_call_operand.vmem [shape: f32[3,1,16], index: 2, kind: input, shape index: {}]   ;;  %s8879_s3 = inlined_call_operand.vmem [shape: f32[3,144,16], index: 3, kind: input, shape index: {}]   ;;  %s8880_s4 = inlined_call_operand.vmem [shape: f32[3,1,16], index: 4, kind: input, shape index: {}]   ;;  %s8881_s5 = inlined_call_operand.vmem [shape: f32[3,16,4], index: 5, kind: input, shape index: {}]   ;;  %s8882_s6 = inlined_call_operand.vmem [shape: f32[3,1,4], index: 6, kind: input, shape index: {}]   ;;  %s8883_s7 = inlined_call_operand.vmem [shape: f32[3,4,16], index: 7, kind: input, shape index: {}]   ;;  %s8884_s8 = inlined_call_operand.vmem [shape: f32[3,1,16], index: 8, kind: input, shape index: {}]   ;;  %s8885_s9 = inlined_call_operand.vmem [shape: f32[2,16,16,16], index: 9, kind: output, shape index: {}]  }
   0x1   :  { %8955 = sst [smem:[#allocation60_spill]] %s8876_s0  ;;  %s6350_s11 = smov 0  }
   0x2   :  { %8956 = sst [smem:[#allocation61_spill]] %s8877_s1  ;;  %s6352_s12 = smov 0  }
   0x3   :  { %8957 = sst [smem:[#allocation62_spill]] %s8879_s3  ;;  %s6354_s13 = smov 0  }
   0x4 LB: > { %8958 = sst [smem:[#allocation4_spill]] %s6271_s12  ;;  %s28_s14 = sadd.s32 1, %s6267_s11  ;;  %s6275_s13 = sphi %s6354_s13, %s19_s13   ;;  %s6271_s12 = sphi %s6352_s12, %s9105_s12   ;;  %s6267_s11 = sphi %s6350_s11, %s9107_s11   ;;  %s6263_s10 = sphi %s6348_s10, %s9103_s10   ;;  %s6259_s30 = sphi %s6346_s30, %s9106_s30  }
   0x5   : > { %s31_s15 = sadd.s32 1, %s6271_s12  ;;  %p29_p0 = scmp.ge.s32.totalorder %s28_s14, 3 }
   0x6   : > { %p4856_p1 = scmp.ge.s32.totalorder %s6275_s13, 1  ;;  %p370_p2 = scmp.lt.s32.totalorder %s6275_s13, 7 }
   0x7   : > { %s9109_s14 = smov (%p29_p0, %s28_s14), 0  ;;  %s9111_s15 = smov (!%p29_p0, %s31_s15), %s6271_s12 }
   0x8   : > { %8959 = sst [smem:[#allocation5_spill]] %s9109_s14  ;;  %p371_p3 = pnand %p4856_p1, %p370_p2 }
   0x9   : > { %p33_p4 = scmp.ge.s32.totalorder %s9111_s15, 2 }
   0xa   : > { %374 = sbr.rel (%p371_p3) target bundleno = 1734 (0x6c6), region = 56 }
   0xb   : > { %s9113_s15 = smov (%p33_p4, %s9111_s15), 0 }
   0xc   : > { %8960 = sst [smem:[#allocation6_spill]] %s9113_s15 }
  0x11   : > { %p437_p5 = scmp.lt.s32.totalorder %s6263_s10, 1  ;;  %p442_p6 = scmp.lt.s32.totalorder %s6259_s30, 2 }
  0x12   : > { %s8961_s0 = sld [smem:[#allocation60_spill]]  ;;  %s8962_s1 = sld [smem:[#allocation61_spill]] }
  0x13   : > { %s9115_s10 = smov (!%p437_p5, %s6263_s10), 1  ;;  %s8963_s3 = sld [smem:[#allocation62_spill]] }
  0x14   : > { %s6380_s16 = scalar_select %p442_p6, %s6259_s30, 2 }
  0x15   : > { %s4941_s17 = sshll.u32 %s9115_s10, 8  ;;  %p4866_p7 = scmp.ne.s32.totalorder %s6259_s30, 0 }
  0x16   : > { %s5054_s21 = smul.u32 144, %s6380_s16  ;;  %s4942_s19 = sshll.u32 %s6380_s16, 4  ;;  %vm482_vm0 = vcmask (!%p4866_p7), 130048   ;;  %vm486_vm1 = vcmask (!%p4866_p7), 122880   ;;  %v6277_v3 = vmov (!%p4866_p7), 0.0  }
  0x17   : > { %s465_s22 = scalar_lea.vmem %s8882_s6, %s6380_s16  ;;  %s6414_s25 = scalar_lea.vmem %s8881_s5, %s4942_s19  ;;  %483 = vst.msk [vmem:[#allocation3] sm:$0xff] (!%p4866_p7), %vm482_vm0, %v6277_v3  ;;  %484 = vst.msk [vmem:[#allocation3 + $0x8] sm:$0xff] (!%p4866_p7), %vm482_vm0, %v6277_v3 }
  0x18   : > { %s6385_s20 = scalar_lea.vmem %s8961_s0, %s4941_s17  ;;  %s6399_s15 = scalar_lea.vmem %s8962_s1, %s5054_s21  ;;  %485 = vst.msk [vmem:[#allocation3 + $0x10] sm:$0xff] (!%p4866_p7), %vm482_vm0, %v6277_v3  ;;  %488 = vst.msk [vmem:[#allocation3 + $0x20] sm:$0xff] (!%p4866_p7), %vm482_vm0, %v6277_v3 }
  0x19   : > { %s6404_s18 = scalar_lea.vmem %s8963_s3, %s5054_s21  ;;  %s4863_s26 = sshll.u32 %s6380_s16, 2  ;;  %v6433_v0 = vld [vmem:[%s6385_s20] sm:$0xff] (!%p4866_p7)  ;;  %v6436_v1 = vld [vmem:[%s6385_s20 + $0x8] sm:$0xff] (!%p4866_p7)  ;;  %v6439_v2 = vld [vmem:[%s6385_s20 + $0x10] sm:$0xff] (!%p4866_p7)  ;;  %489 = vst.msk [vmem:[#allocation3 + $0x28] sm:$0xff] (!%p4866_p7), %vm482_vm0, %v6277_v3 }
  0x1a   : > { %s6420_s29 = scalar_lea.vmem %s8883_s7, %s4863_s26  ;;  %s472_s21 = scalar_lea.vmem %s8884_s8, %s6380_s16  ;;  %490 = vst.msk [vmem:[#allocation3 + $0x30] sm:$0xff] (!%p4866_p7), %vm482_vm0, %v6277_v3  ;;  %492 = vst.msk [vmem:[#allocation3 + $0x40] sm:$0xff] (!%p4866_p7), %vm482_vm0, %v6277_v3  ;;  %v559_v4 = vld [vmem:[%s6385_s20 + $0x18] sm:$0xff] (!%p4866_p7)  ;;  %v560_v5 = vld [vmem:[%s6385_s20 + $0x20] sm:$0xff] (!%p4866_p7) }
  0x1b   : > { %s6429_s0 = scalar_lea.vmem %s8885_s9, %s4941_s17  ;;  %481 = sbr.rel (%p4866_p7) target bundleno = 76 (0x4c), region = 60  ;;  %493 = vst.msk [vmem:[#allocation3 + $0x48] sm:$0xff] (!%p4866_p7), %vm482_vm0, %v6277_v3  ;;  %494 = vst.msk [vmem:[#allocation3 + $0x50] sm:$0xff] (!%p4866_p7), %vm482_vm0, %v6277_v3  ;;  %v561_v6 = vld [vmem:[%s6385_s20 + $0x28] sm:$0xff] (!%p4866_p7)  ;;  %v562_v7 = vld [vmem:[%s6385_s20 + $0x30] sm:$0xff] (!%p4866_p7) }
  0x1c   : > { %496 = vst.msk [vmem:[#allocation3 + $0x60] sm:$0xff] (!%p4866_p7), %vm482_vm0, %v6277_v3  ;;  %497 = vst.msk [vmem:[#allocation3 + $0x68] sm:$0xff] (!%p4866_p7), %vm482_vm0, %v6277_v3  ;;  %v563_v8 = vld [vmem:[%s6385_s20 + $0x38] sm:$0xff] (!%p4866_p7)  ;;  %v564_v9 = vld [vmem:[%s6385_s20 + $0x40] sm:$0xff] (!%p4866_p7) }
  0x1d   : > { %498 = vst.msk [vmem:[#allocation3 + $0x70] sm:$0xff] (!%p4866_p7), %vm482_vm0, %v6277_v3  ;;  %500 = vst.msk [vmem:[#allocation3 + $0x80] sm:$0xff] (!%p4866_p7), %vm482_vm0, %v6277_v3  ;;  %v565_v10 = vld [vmem:[%s6385_s20 + $0x48] sm:$0xff] (!%p4866_p7)  ;;  %v566_v11 = vld [vmem:[%s6385_s20 + $0x50] sm:$0xff] (!%p4866_p7) }
  0x1e   : > { %501 = vst.msk [vmem:[#allocation3 + $0x88] sm:$0xff] (!%p4866_p7), %vm482_vm0, %v6277_v3  ;;  %502 = vst.msk [vmem:[#allocation3 + $0x90] sm:$0xff] (!%p4866_p7), %vm482_vm0, %v6277_v3  ;;  %v567_v12 = vld [vmem:[%s6385_s20 + $0x58] sm:$0xff] (!%p4866_p7)  ;;  %v568_v13 = vld [vmem:[%s6385_s20 + $0x60] sm:$0xff] (!%p4866_p7) }
  0x1f   : > { %504 = vst.msk [vmem:[#allocation3 + $0xa0] sm:$0xff] (!%p4866_p7), %vm482_vm0, %v6277_v3  ;;  %505 = vst.msk [vmem:[#allocation3 + $0xa8] sm:$0xff] (!%p4866_p7), %vm482_vm0, %v6277_v3  ;;  %v569_v14 = vld [vmem:[%s6385_s20 + $0x68] sm:$0xff] (!%p4866_p7)  ;;  %v570_v15 = vld [vmem:[%s6385_s20 + $0x70] sm:$0xff] (!%p4866_p7) }
  0x20   : > { %506 = vst.msk [vmem:[#allocation3 + $0xb0] sm:$0xff] (!%p4866_p7), %vm482_vm0, %v6277_v3  ;;  %508 = vst.msk [vmem:[#allocation3 + $0xc0] sm:$0xff] (!%p4866_p7), %vm482_vm0, %v6277_v3  ;;  %v571_v16 = vld [vmem:[%s6385_s20 + $0x78] sm:$0xff] (!%p4866_p7)  ;;  %v572_v17 = vld [vmem:[%s6385_s20 + $0x80] sm:$0xff] (!%p4866_p7) }
  0x21   : > { %509 = vst.msk [vmem:[#allocation3 + $0xc8] sm:$0xff] (!%p4866_p7), %vm482_vm0, %v6277_v3  ;;  %510 = vst.msk [vmem:[#allocation3 + $0xd0] sm:$0xff] (!%p4866_p7), %vm482_vm0, %v6277_v3  ;;  %v573_v18 = vld [vmem:[%s6385_s20 + $0x88] sm:$0xff] (!%p4866_p7)  ;;  %v574_v19 = vld [vmem:[%s6385_s20 + $0x90] sm:$0xff] (!%p4866_p7) }
  0x22   : > { %512 = vst.msk [vmem:[#allocation3 + $0xe0] sm:$0xff] %vm482_vm0, %v6277_v3  ;;  %513 = vst.msk [vmem:[#allocation3 + $0xe8] sm:$0xff] %vm482_vm0, %v6277_v3  ;;  %v575_v20 = vld [vmem:[%s6385_s20 + $0x98] sm:$0xff]  ;;  %v576_v21 = vld [vmem:[%s6385_s20 + $0xa0] sm:$0xff] }
  0x23   : > { %514 = vst.msk [vmem:[#allocation3 + $0xf0] sm:$0xff] %vm482_vm0, %v6277_v3  ;;  %516 = vst.msk [vmem:[#allocation3 + $0x100] sm:$0xff] %vm482_vm0, %v6277_v3  ;;  %v577_v22 = vld [vmem:[%s6385_s20 + $0xa8] sm:$0xff]  ;;  %v578_v23 = vld [vmem:[%s6385_s20 + $0xb0] sm:$0xff] }
  0x24   : > { %517 = vst.msk [vmem:[#allocation3 + $0x108] sm:$0xff] %vm482_vm0, %v6277_v3  ;;  %518 = vst.msk [vmem:[#allocation3 + $0x110] sm:$0xff] %vm482_vm0, %v6277_v3  ;;  %v579_v24 = vld [vmem:[%s6385_s20 + $0xb8] sm:$0xff]  ;;  %v580_v25 = vld [vmem:[%s6385_s20 + $0xc0] sm:$0xff] }
  0x25   : > { %520 = vst.msk [vmem:[#allocation3 + $0x120] sm:$0xff] %vm482_vm0, %v6277_v3  ;;  %521 = vst.msk [vmem:[#allocation3 + $0x128] sm:$0xff] %vm482_vm0, %v6277_v3  ;;  %v581_v26 = vld [vmem:[%s6385_s20 + $0xc8] sm:$0xff]  ;;  %v582_v27 = vld [vmem:[%s6385_s20 + $0xd0] sm:$0xff] }
  0x26   : > { %522 = vst.msk [vmem:[#allocation3 + $0x130] sm:$0xff] %vm482_vm0, %v6277_v3  ;;  %524 = vst.msk [vmem:[#allocation3 + $0x140] sm:$0xff] %vm482_vm0, %v6277_v3  ;;  %v583_v28 = vld [vmem:[%s6385_s20 + $0xd8] sm:$0xff]  ;;  %v584_v29 = vld [vmem:[%s6385_s20 + $0xe0] sm:$0xff] }
  0x27   : > { %525 = vst.msk [vmem:[#allocation3 + $0x148] sm:$0xff] %vm482_vm0, %v6277_v3  ;;  %526 = vst.msk [vmem:[#allocation3 + $0x150] sm:$0xff] %vm482_vm0, %v6277_v3  ;;  %v585_v30 = vld [vmem:[%s6385_s20 + $0xe8] sm:$0xff]  ;;  %v586_v31 = vld [vmem:[%s6385_s20 + $0xf0] sm:$0xff] }
  0x28   : > { %528 = vst.msk [vmem:[#allocation3 + $0x160] sm:$0xff] %vm482_vm0, %v6277_v3  ;;  %529 = vst.msk [vmem:[#allocation3 + $0x168] sm:$0xff] %vm482_vm0, %v6277_v3  ;;  %v587_v32 = vld [vmem:[%s6385_s20 + $0xf8] sm:$0xff] }
  0x29   : > { %530 = vst.msk [vmem:[#allocation3 + $0x170] sm:$0xff] %vm482_vm0, %v6277_v3  ;;  %532 = vst.msk [vmem:[#allocation3 + $0x180] sm:$0xff] %vm482_vm0, %v6277_v3 }
  0x2a   : > { %533 = vst.msk [vmem:[#allocation3 + $0x188] sm:$0xff] %vm482_vm0, %v6277_v3  ;;  %534 = vst.msk [vmem:[#allocation3 + $0x190] sm:$0xff] %vm482_vm0, %v6277_v3 }
  0x2b   : > { %536 = vst.msk [vmem:[#allocation3 + $0x1a0] sm:$0xff] %vm482_vm0, %v6277_v3  ;;  %537 = vst.msk [vmem:[#allocation3 + $0x1a8] sm:$0xff] %vm482_vm0, %v6277_v3 }
  0x2c   : > { %538 = vst.msk [vmem:[#allocation3 + $0x1b0] sm:$0xff] %vm482_vm0, %v6277_v3  ;;  %540 = vst.msk [vmem:[#allocation3 + $0x1c0] sm:$0xff] %vm482_vm0, %v6277_v3 }
  0x2d   : > { %541 = vst.msk [vmem:[#allocation3 + $0x1c8] sm:$0xff] %vm482_vm0, %v6277_v3  ;;  %542 = vst.msk [vmem:[#allocation3 + $0x1d0] sm:$0xff] %vm482_vm0, %v6277_v3 }
  0x2e   : > { %544 = vst.msk [vmem:[#allocation3 + $0x1e0] sm:$0xff] %vm482_vm0, %v6277_v3  ;;  %545 = vst.msk [vmem:[#allocation3 + $0x1e8] sm:$0xff] %vm482_vm0, %v6277_v3 }
  0x2f   : > { %546 = vst.msk [vmem:[#allocation3 + $0x1f0] sm:$0xff] %vm482_vm0, %v6277_v3  ;;  %548 = vst.msk [vmem:[#allocation3 + $0x200] sm:$0xff] %vm482_vm0, %v6277_v3 }
  0x30   : > { %549 = vst.msk [vmem:[#allocation3 + $0x208] sm:$0xff] %vm482_vm0, %v6277_v3  ;;  %550 = vst.msk [vmem:[#allocation3 + $0x210] sm:$0xff] %vm482_vm0, %v6277_v3 }
  0x31   : > { %552 = vst.msk [vmem:[#allocation3 + $0x220] sm:$0xff] %vm482_vm0, %v6277_v3  ;;  %553 = vst.msk [vmem:[#allocation3 + $0x228] sm:$0xff] %vm482_vm0, %v6277_v3 }
  0x32   : > { %554 = vst.msk [vmem:[#allocation3 + $0x230] sm:$0xff] %vm482_vm0, %v6277_v3  ;;  %588 = vst.msk [vmem:[#allocation2] sm:$0xff] %vm482_vm0, %v6433_v0 }
  0x33   : > { %487 = vst.msk [vmem:[#allocation3 + $0x18] sm:$0x1] %vm486_vm1, %v6277_v3  ;;  %491 = vst.msk [vmem:[#allocation3 + $0x38] sm:$0x1] %vm486_vm1, %v6277_v3 }
  0x34   : > { %495 = vst.msk [vmem:[#allocation3 + $0x58] sm:$0x1] %vm486_vm1, %v6277_v3  ;;  %499 = vst.msk [vmem:[#allocation3 + $0x78] sm:$0x1] %vm486_vm1, %v6277_v3 }
  0x35   : > { %503 = vst.msk [vmem:[#allocation3 + $0x98] sm:$0x1] %vm486_vm1, %v6277_v3  ;;  %507 = vst.msk [vmem:[#allocation3 + $0xb8] sm:$0x1] %vm486_vm1, %v6277_v3 }
  0x36   : > { %511 = vst.msk [vmem:[#allocation3 + $0xd8] sm:$0x1] %vm486_vm1, %v6277_v3  ;;  %515 = vst.msk [vmem:[#allocation3 + $0xf8] sm:$0x1] %vm486_vm1, %v6277_v3 }
  0x37   : > { %519 = vst.msk [vmem:[#allocation3 + $0x118] sm:$0x1] %vm486_vm1, %v6277_v3  ;;  %523 = vst.msk [vmem:[#allocation3 + $0x138] sm:$0x1] %vm486_vm1, %v6277_v3 }
  0x38   : > { %527 = vst.msk [vmem:[#allocation3 + $0x158] sm:$0x1] %vm486_vm1, %v6277_v3  ;;  %531 = vst.msk [vmem:[#allocation3 + $0x178] sm:$0x1] %vm486_vm1, %v6277_v3 }
  0x39   : > { %535 = vst.msk [vmem:[#allocation3 + $0x198] sm:$0x1] %vm486_vm1, %v6277_v3  ;;  %539 = vst.msk [vmem:[#allocation3 + $0x1b8] sm:$0x1] %vm486_vm1, %v6277_v3 }
  0x3a   : > { %543 = vst.msk [vmem:[#allocation3 + $0x1d8] sm:$0x1] %vm486_vm1, %v6277_v3  ;;  %547 = vst.msk [vmem:[#allocation3 + $0x1f8] sm:$0x1] %vm486_vm1, %v6277_v3 }
  0x3b   : > { %551 = vst.msk [vmem:[#allocation3 + $0x218] sm:$0x1] %vm486_vm1, %v6277_v3  ;;  %555 = vst.msk [vmem:[#allocation3 + $0x238] sm:$0x1] %vm486_vm1, %v6277_v3 }
  0x3c   : > { %589 = vst.msk [vmem:[#allocation2 + $0x8] sm:$0xff] %vm482_vm0, %v6436_v1  ;;  %590 = vst.msk [vmem:[#allocation2 + $0x10] sm:$0xff] %vm482_vm0, %v6439_v2 }
  0x3d   : > { %591 = vst.msk [vmem:[#allocation2 + $0x18] sm:$0xff] %vm482_vm0, %v559_v4  ;;  %592 = vst.msk [vmem:[#allocation2 + $0x20] sm:$0xff] %vm482_vm0, %v560_v5 }
  0x3e   : > { %593 = vst.msk [vmem:[#allocation2 + $0x28] sm:$0xff] %vm482_vm0, %v561_v6  ;;  %594 = vst.msk [vmem:[#allocation2 + $0x30] sm:$0xff] %vm482_vm0, %v562_v7 }
  0x3f   : > { %595 = vst.msk [vmem:[#allocation2 + $0x38] sm:$0xff] %vm482_vm0, %v563_v8  ;;  %596 = vst.msk [vmem:[#allocation2 + $0x40] sm:$0xff] %vm482_vm0, %v564_v9 }
  0x40   : > { %597 = vst.msk [vmem:[#allocation2 + $0x48] sm:$0xff] %vm482_vm0, %v565_v10  ;;  %598 = vst.msk [vmem:[#allocation2 + $0x50] sm:$0xff] %vm482_vm0, %v566_v11 }
  0x41   : > { %599 = vst.msk [vmem:[#allocation2 + $0x58] sm:$0xff] %vm482_vm0, %v567_v12  ;;  %600 = vst.msk [vmem:[#allocation2 + $0x60] sm:$0xff] %vm482_vm0, %v568_v13 }
  0x42   : > { %601 = vst.msk [vmem:[#allocation2 + $0x68] sm:$0xff] %vm482_vm0, %v569_v14  ;;  %602 = vst.msk [vmem:[#allocation2 + $0x70] sm:$0xff] %vm482_vm0, %v570_v15 }
  0x43   : > { %603 = vst.msk [vmem:[#allocation2 + $0x78] sm:$0xff] %vm482_vm0, %v571_v16  ;;  %604 = vst.msk [vmem:[#allocation2 + $0x80] sm:$0xff] %vm482_vm0, %v572_v17 }
  0x44   : > { %605 = vst.msk [vmem:[#allocation2 + $0x88] sm:$0xff] %vm482_vm0, %v573_v18  ;;  %606 = vst.msk [vmem:[#allocation2 + $0x90] sm:$0xff] %vm482_vm0, %v574_v19 }
  0x45   : > { %607 = vst.msk [vmem:[#allocation2 + $0x98] sm:$0xff] %vm482_vm0, %v575_v20  ;;  %608 = vst.msk [vmem:[#allocation2 + $0xa0] sm:$0xff] %vm482_vm0, %v576_v21 }
  0x46   : > { %609 = vst.msk [vmem:[#allocation2 + $0xa8] sm:$0xff] %vm482_vm0, %v577_v22  ;;  %610 = vst.msk [vmem:[#allocation2 + $0xb0] sm:$0xff] %vm482_vm0, %v578_v23 }
  0x47   : > { %611 = vst.msk [vmem:[#allocation2 + $0xb8] sm:$0xff] %vm482_vm0, %v579_v24  ;;  %612 = vst.msk [vmem:[#allocation2 + $0xc0] sm:$0xff] %vm482_vm0, %v580_v25 }
  0x48   : > { %613 = vst.msk [vmem:[#allocation2 + $0xc8] sm:$0xff] %vm482_vm0, %v581_v26  ;;  %614 = vst.msk [vmem:[#allocation2 + $0xd0] sm:$0xff] %vm482_vm0, %v582_v27 }
  0x49   : > { %615 = vst.msk [vmem:[#allocation2 + $0xd8] sm:$0xff] %vm482_vm0, %v583_v28  ;;  %616 = vst.msk [vmem:[#allocation2 + $0xe0] sm:$0xff] %vm482_vm0, %v584_v29 }
  0x4a   : > { %617 = vst.msk [vmem:[#allocation2 + $0xe8] sm:$0xff] %vm482_vm0, %v585_v30  ;;  %618 = vst.msk [vmem:[#allocation2 + $0xf0] sm:$0xff] %vm482_vm0, %v586_v31 }
  0x4b   : > { %619 = vst.msk [vmem:[#allocation2 + $0xf8] sm:$0xff] %vm482_vm0, %v587_v32 }
  0x4c PF: > { %v737_v33 = vld [vmem:[#allocation3 + $0x8] sm:$0xff]  ;;  %v738_v34 = vld [vmem:[#allocation3 + $0x10] sm:$0xff]  ;;  %vm672_vm2 = vcmask 130048   ;;  %v6651_v37 = vld [vmem:[#allocation2 + $0x18] sm:$0xff]  ;;  %s6278_s1 = smov 16   ;;  %s6280_s3 = smov 32  }
  0x4d   : > { %v6649_v35 = vld [vmem:[#allocation2 + $0x10] sm:$0xff]  ;;  %v5114_v36 = vpack.i.bf16 %v738_v34, %v737_v33  ;;  %8965 = vst [vmem:[#allocation8_spill] sm:$0xff] %v6651_v37  ;;  %v6655_v38 = vld [vmem:[#allocation2] sm:$0xff]  ;;  %v6657_v39 = vld [vmem:[#allocation2 + $0x8] sm:$0xff]  ;;  %s6281_s12 = smov 48   ;;  %s6282_s17 = smov 64  }
  0x4e   : > { %8964 = vst [vmem:[#allocation7_spill] sm:$0xff] %v6649_v35  ;;  %675 = vst.msk [vmem:[#allocation3 + $0x48] sm:$0xff] %vm672_vm2, %v6649_v35  ;;  %v6665_v40 = vld [vmem:[#allocation2 + $0x20] sm:$0xff]  ;;  %v6667_v41 = vld [vmem:[#allocation2 + $0x28] sm:$0xff]  ;;  %s6283_s24 = smov 80   ;;  %s6285_s27 = smov 112  }
  0x4f   : > { %8966 = vst [vmem:[#allocation9_spill] sm:$0xff] %v6655_v38  ;;  %8967 = vst [vmem:[#allocation10_spill] sm:$0xff] %v6657_v39  ;;  %v6669_v42 = vld [vmem:[#allocation2 + $0x30] sm:$0xff]  ;;  %5115 = vrot.lane.b32.xlu0 %v5114_v36, %s6278_s1  ;;  %v6676_v43 = vld [vmem:[#allocation2 + $0x38] sm:$0xff]  ;;  %vm1922_vm3 = vcmask 261120   ;;  %vm1955_vm4 = vcmask 392192   ;;  %s9027_s26 = scalar_lea.vmem %s8878_s2, %s6380_s16 }
  0x50   : > { %676 = vst.msk [vmem:[#allocation3 + $0x50] sm:$0xff] %vm672_vm2, %v6651_v37  ;;  %673 = vst.msk [vmem:[#allocation3 + $0x28] sm:$0xff] %vm672_vm2, %v6655_v38  ;;  %v6680_v44 = vld [vmem:[#allocation2 + $0x40] sm:$0xff]  ;;  %v6682_v45 = vld [vmem:[#allocation2 + $0x48] sm:$0xff]  ;;  %vm1988_vm5 = vcmask 523264   ;;  %vm2021_vm6 = vcmask 654336  }
  0x51   : > { %674 = vst.msk [vmem:[#allocation3 + $0x30] sm:$0xff] %vm672_vm2, %v6657_v39  ;;  %8968 = vst [vmem:[#allocation11_spill] sm:$0xff] %v6665_v40  ;;  %v6690_v46 = vld [vmem:[#allocation2 + $0x50] sm:$0xff]  ;;  %v6692_v47 = vld [vmem:[#allocation2 + $0x58] sm:$0xff]  ;;  %vm2054_vm7 = vcmask 785408   ;;  %vm2087_vm8 = vcmask 916480  }
  0x52   : > { %8969 = vst [vmem:[#allocation12_spill] sm:$0xff] %v6667_v41  ;;  %8970 = vst [vmem:[#allocation13_spill] sm:$0xff] %v6669_v42  ;;  %v6694_v48 = vld [vmem:[#allocation2 + $0x60] sm:$0xff]  ;;  %v6700_v49 = vld [vmem:[#allocation2 + $0x68] sm:$0xff]  ;;  %p4900_p8 = scmp.ge.s32.totalorder %s6259_s30, 2 }
  0x53   : > { %677 = vst.msk [vmem:[#allocation3 + $0x68] sm:$0xff] %vm672_vm2, %v6665_v40  ;;  %678 = vst.msk [vmem:[#allocation3 + $0x70] sm:$0xff] %vm672_vm2, %v6667_v41  ;;  %v6704_v50 = vld [vmem:[#allocation2 + $0x70] sm:$0xff]  ;;  %v6706_v51 = vld [vmem:[#allocation2 + $0x78] sm:$0xff]  ;;  %s6286_s28 = smov (!%p4900_p8), 16   ;;  %s6288_s14 = smov (!%p4900_p8), 32  }
  0x54   : > { %8971 = vst [vmem:[#allocation14_spill] sm:$0xff] %v6676_v43  ;;  %679 = vst.msk [vmem:[#allocation3 + $0x88] sm:$0xff] %vm672_vm2, %v6669_v42  ;;  %v6714_v52 = vld [vmem:[#allocation2 + $0x80] sm:$0xff]  ;;  %v6716_v53 = vld [vmem:[#allocation2 + $0x88] sm:$0xff]  ;;  %s6289_s10 = smov (!%p4900_p8), 80   ;;  %vm6294_vm9 = vmmov (!%p4900_p8), 0  }
  0x55   : > { %8972 = vst [vmem:[#allocation15_spill] sm:$0xff] %v6680_v44  ;;  %8973 = vst [vmem:[#allocation16_spill] sm:$0xff] %v6682_v45  ;;  %v6718_v54 = vld [vmem:[#allocation2 + $0x90] sm:$0xff]  ;;  %v6724_v55 = vld [vmem:[#allocation2 + $0x98] sm:$0xff]  ;;  %vm4422_vm10 = vcmask (!%p4900_p8), 1043456   ;;  %vm4418_vm11 = vcmask (!%p4900_p8), 31744  }
  0x56   : > { %680 = vst.msk [vmem:[#allocation3 + $0x90] sm:$0xff] %vm672_vm2, %v6676_v43  ;;  %681 = vst.msk [vmem:[#allocation3 + $0xa8] sm:$0xff] %vm672_vm2, %v6680_v44  ;;  %v6728_v56 = vld [vmem:[#allocation2 + $0xa0] sm:$0xff]  ;;  %v6730_v57 = vld [vmem:[#allocation2 + $0xa8] sm:$0xff] }
  0x57   : > { %682 = vst.msk [vmem:[#allocation3 + $0xb0] sm:$0xff] %vm672_vm2, %v6682_v45  ;;  %8974 = vst [vmem:[#allocation17_spill] sm:$0xff] %v6690_v46  ;;  %v6732_v58 = vld [vmem:[#allocation3 + $0x48] sm:$0xff]  ;;  %v6740_v59 = vld [vmem:[#allocation2 + $0xb0] sm:$0xff] }
  0x58   : > { %8975 = vst [vmem:[#allocation18_spill] sm:$0xff] %v6692_v47  ;;  %8976 = vst [vmem:[#allocation19_spill] sm:$0xff] %v6694_v48  ;;  %v6742_v60 = vld [vmem:[#allocation2 + $0xb8] sm:$0xff]  ;;  %v6744_v61 = vld [vmem:[#allocation3 + $0x50] sm:$0xff] }
  0x59   : > { %683 = vst.msk [vmem:[#allocation3 + $0xc8] sm:$0xff] %vm672_vm2, %v6690_v46  ;;  %684 = vst.msk [vmem:[#allocation3 + $0xd0] sm:$0xff] %vm672_vm2, %v6692_v47  ;;  %v6746_v62 = vld [vmem:[#allocation3 + $0x28] sm:$0xff]  ;;  %v6748_v63 = vld [vmem:[#allocation3 + $0x30] sm:$0xff]  ;;  %v5124_v0 = vpack.i.bf16 %v6744_v61, %v6732_v58 }
  0x5a   : > { %8977 = vst [vmem:[#allocation20_spill] sm:$0xff] %v6700_v49  ;;  %685 = vst.msk [vmem:[#allocation3 + $0xe8] sm:$0xff] %vm672_vm2, %v6694_v48  ;;  %v5119_v1 = vpack.i.bf16 %v6748_v63, %v6746_v62  ;;  %v743_v2 = vld [vmem:[#allocation3 + $0x68] sm:$0xff]  ;;  %v744_v3 = vld [vmem:[#allocation3 + $0x70] sm:$0xff] }
  0x5b   : > { %8978 = vst [vmem:[#allocation21_spill] sm:$0xff] %v6704_v50  ;;  %8979 = vst [vmem:[#allocation22_spill] sm:$0xff] %v6706_v51  ;;  %v745_v4 = vld [vmem:[#allocation3 + $0x88] sm:$0xff]  ;;  %5125 = vrot.lane.b32.xlu1 %v5124_v0, %s6278_s1  ;;  %v5129_v6 = vpack.i.bf16 %v744_v3, %v743_v2  ;;  %v6768_v22 = vld [vmem:[#allocation2 + $0xc0] sm:$0xff] }
  0x5c   : > { %686 = vst.msk [vmem:[#allocation3 + $0xf0] sm:$0xff] %vm672_vm2, %v6700_v49  ;;  %687 = vst.msk [vmem:[#allocation3 + $0x108] sm:$0xff] %vm672_vm2, %v6704_v50  ;;  %5120 = vrot.lane.b32.xlu0 %v5119_v1, %s6278_s1  ;;  %v6770_v23 = vld [vmem:[#allocation2 + $0xc8] sm:$0xff]  ;;  %v6774_v24 = vld [vmem:[#allocation2 + $0xd0] sm:$0xff] }
  0x5d   : > { %688 = vst.msk [vmem:[#allocation3 + $0x110] sm:$0xff] %vm672_vm2, %v6706_v51  ;;  %8980 = vst [vmem:[#allocation23_spill] sm:$0xff] %v6714_v52  ;;  %v746_v5 = vld [vmem:[#allocation3 + $0x90] sm:$0xff]  ;;  %v747_v8 = vld [vmem:[#allocation3 + $0xa8] sm:$0xff] }
  0x5e   : > { %8981 = vst [vmem:[#allocation24_spill] sm:$0xff] %v6716_v53  ;;  %8982 = vst [vmem:[#allocation25_spill] sm:$0xff] %v6718_v54  ;;  %v5134_v7 = vpack.i.bf16 %v746_v5, %v745_v4  ;;  %v748_v9 = vld [vmem:[#allocation3 + $0xb0] sm:$0xff]  ;;  %v6776_v25 = vld [vmem:[#allocation2 + $0xd8] sm:$0xff] }
  0x5f   : > { %689 = vst.msk [vmem:[#allocation3 + $0x128] sm:$0xff] %vm672_vm2, %v6714_v52  ;;  %690 = vst.msk [vmem:[#allocation3 + $0x130] sm:$0xff] %vm672_vm2, %v6716_v53  ;;  %5130 = vrot.lane.b32.xlu1 %v5129_v6, %s6278_s1  ;;  %v5139_v18 = vpack.i.bf16 %v748_v9, %v747_v8  ;;  %v6790_v29 = vld [vmem:[#allocation2 + $0xe0] sm:$0xff]  ;;  %v6792_v30 = vld [vmem:[#allocation2 + $0xe8] sm:$0xff] }
  0x60   : > { %8983 = vst [vmem:[#allocation26_spill] sm:$0xff] %v6724_v55  ;;  %691 = vst.msk [vmem:[#allocation3 + $0x148] sm:$0xff] %vm672_vm2, %v6718_v54  ;;  %v6760_v10 = vld [vmem:[#allocation3 + $0xc8] sm:$0xff]  ;;  %v6762_v11 = vld [vmem:[#allocation3 + $0xd0] sm:$0xff]  ;;  %5135 = vrot.lane.b32.xlu0 %v5134_v7, %s6278_s1 }
  0x61   : > { %8984 = vst [vmem:[#allocation27_spill] sm:$0xff] %v6728_v56  ;;  %8985 = vst [vmem:[#allocation28_spill] sm:$0xff] %v6730_v57  ;;  %v751_v12 = vld [vmem:[#allocation3 + $0xe8] sm:$0xff]  ;;  %v5144_v19 = vpack.i.bf16 %v6762_v11, %v6760_v10 }
  0x62   : > { %692 = vst.msk [vmem:[#allocation3 + $0x150] sm:$0xff] %vm672_vm2, %v6724_v55  ;;  %693 = vst.msk [vmem:[#allocation3 + $0x168] sm:$0xff] %vm672_vm2, %v6728_v56  ;;  %v658_v56 = vld [vmem:[%s6399_s15 + $0x30] sm:$0xff]  ;;  %v659_v55 = vld [vmem:[%s6399_s15 + $0x38] sm:$0xff] }
  0x63   : > { %694 = vst.msk [vmem:[#allocation3 + $0x170] sm:$0xff] %vm672_vm2, %v6730_v57  ;;  %8986 = vst [vmem:[#allocation29_spill] sm:$0xff] %v6740_v59  ;;  %v752_v13 = vld [vmem:[#allocation3 + $0xf0] sm:$0xff]  ;;  %v753_v14 = vld [vmem:[#allocation3 + $0x108] sm:$0xff]  ;;  %5140 = vrot.lane.b32.xlu1 %v5139_v18, %s6278_s1 }
  0x64   : > { %8987 = vst [vmem:[#allocation30_spill] sm:$0xff] %v6742_v60  ;;  %695 = vst.msk [vmem:[#allocation3 + $0x188] sm:$0xff] %vm672_vm2, %v6740_v59  ;;  %v754_v15 = vld [vmem:[#allocation3 + $0x110] sm:$0xff]  ;;  %5145 = vrot.lane.b32.xlu0 %v5144_v19, %s6278_s1  ;;  %v5149_v32 = vpack.i.bf16 %v752_v13, %v751_v12  ;;  %v661_v51 = vld [vmem:[%s6399_s15 + $0x48] sm:$0xff] }
  0x65   : > { %696 = vst.msk [vmem:[#allocation3 + $0x190] sm:$0xff] %vm672_vm2, %v6742_v60  ;;  %8988 = vst [vmem:[#allocation31_spill] sm:$0xff] %v6768_v22  ;;  %v5154_v33 = vpack.i.bf16 %v754_v15, %v753_v14  ;;  %v6828_v19 = vld [vmem:[#allocation3 + $0x89] sm:$0xff]  ;;  %v770_v13 = vld [vmem:[#allocation3 + $0x11] sm:$0xff] }
  0x66   : > { %8989 = vst [vmem:[#allocation32_spill] sm:$0xff] %v6770_v23  ;;  %697 = vst.msk [vmem:[#allocation3 + $0x1a8] sm:$0xff] %vm672_vm2, %v6768_v22  ;;  %v6802_v34 = vld [vmem:[#allocation3 + $0x128] sm:$0xff]  ;;  %v6804_v36 = vld [vmem:[#allocation3 + $0x130] sm:$0xff] }
  0x67   : > { %8990 = vst [vmem:[#allocation33_spill] sm:$0xff] %v6774_v24  ;;  %8991 = vst [vmem:[#allocation34_spill] sm:$0xff] %v6776_v25  ;;  %v6806_v0 = vld [vmem:[#allocation3 + $0x148] sm:$0xff]  ;;  %5150 = vrot.lane.b32.xlu1 %v5149_v32, %s6278_s1  ;;  %v656_v60 = vld [vmem:[%s6399_s15 + $0x20] sm:$0xff] }
  0x68   : > { %698 = vst.msk [vmem:[#allocation3 + $0x1b0] sm:$0xff] %vm672_vm2, %v6770_v23  ;;  %699 = vst.msk [vmem:[#allocation3 + $0x1c8] sm:$0xff] %vm672_vm2, %v6774_v24  ;;  %5155 = vrot.lane.b32.xlu0 %v5154_v33, %s6278_s1  ;;  %v6832_v33 = vld [vmem:[#allocation3 + $0x91] sm:$0xff]  ;;  %v6881_v22 = vld [vmem:[#allocation3 + $0xa9] sm:$0xff] }
  0x69   : > { %v759_v16 = vld [vmem:[#allocation3 + $0x168] sm:$0xff]  ;;  %700 = vst.msk [vmem:[#allocation3 + $0x1d0] sm:$0xff] %vm672_vm2, %v6776_v25  ;;  %8992 = vst [vmem:[#allocation35_spill] sm:$0xff] %v6790_v29  ;;  %v6808_v1 = vld [vmem:[#allocation3 + $0x150] sm:$0xff]  ;;  %v5214_v23 = vpack.i.bf16 %v6832_v33, %v6828_v19 }
  0x6a   : > { %v760_v17 = vld [vmem:[#allocation3 + $0x170] sm:$0xff]  ;;  %v6778_v26 = vpack.i.bf16 %v759_v16, %v743_v2  ;;  %8993 = vst [vmem:[#allocation36_spill] sm:$0xff] %v6792_v30  ;;  %701 = vst.msk [vmem:[#allocation3 + $0x1e8] sm:$0xff] %vm672_vm2, %v6790_v29  ;;  %v5159_v2 = vpack.i.bf16 %v6804_v36, %v6802_v34  ;;  %v6957_v45 = vld [vmem:[#allocation3 + $0x47] sm:$0xff] }
  0x6b   : > { %v761_v20 = vld [vmem:[#allocation3 + $0x188] sm:$0xff]  ;;  %v6780_v27 = vpack.i.bf16 %v760_v17, %v744_v3  ;;  %702 = vst.msk [vmem:[#allocation3 + $0x1f0] sm:$0xff] %vm672_vm2, %v6792_v30  ;;  %v5164_v3 = vpack.i.bf16 %v6808_v1, %v6806_v0  ;;  %v5169_v14 = vpack.i.bf16 %v760_v17, %v759_v16  ;;  %v8888_v30 = vmov 0.0|0.0   ;;  %v6871_v29 = vld [vmem:[#allocation3 + $0x71] sm:$0xff] }
  0x6c   : > { %v762_v21 = vld [vmem:[#allocation3 + $0x190] sm:$0xff]  ;;  %v6782_v28 = vpack.i.bf16 %v761_v20, %v745_v4  ;;  %5160 = vrot.lane.b32.xlu1 %v5159_v2, %s6278_s1  ;;  %4961 = vmatprep.subr.bf16.mxu0 %v8888_v30  ;;  %v7164_v44 = vld [vmem:[#allocation3 + $0xe8] sm:$0xff] }
  0x6d   : > { %v6794_v31 = vpack.i.bf16 %v762_v21, %v746_v5  ;;  %v763_v4 = vld [vmem:[#allocation3 + $0x1a8] sm:$0xff]  ;;  %5165 = vrot.lane.b32.xlu0 %v5164_v3, %s6278_s1  ;;  %v5174_v15 = vpack.i.bf16 %v762_v21, %v761_v20  ;;  %5018 = vmatprep.subr.bf16.mxu1 %v8888_v30  ;;  %v654_v25 = vld [vmem:[%s6399_s15 + $0x10] sm:$0xff] }
  0x6e   : > { %v6818_v7 = vpack.i.bf16 %v763_v4, %v747_v8  ;;  %v6830_v32 = vld [vmem:[#allocation3 + $0x189] sm:$0xff]  ;;  %v6834_v8 = vld [vmem:[#allocation3 + $0x191] sm:$0xff] }
  0x6f   : > { %v764_v5 = vld [vmem:[#allocation3 + $0x1b0] sm:$0xff]  ;;  %v6816_v6 = vld [vmem:[#allocation3 + $0x1c8] sm:$0xff] }
  0x70   : > { %v6820_v12 = vpack.i.bf16 %v764_v5, %v748_v9  ;;  %v6826_v18 = vld [vmem:[#allocation3 + $0x1d0] sm:$0xff]  ;;  %5170 = vrot.lane.b32.xlu1 %v5169_v14, %s6278_s1  ;;  %v5179_v16 = vpack.i.bf16 %v764_v5, %v763_v4  ;;  %v705_v42 = vld [vmem:[#allocation3 + $0x7] sm:$0xff] }
  0x71   : > { %5175 = vrot.lane.b32.xlu0 %v5174_v15, %s6278_s1  ;;  %v5184_v17 = vpack.i.bf16 %v6826_v18, %v6816_v6  ;;  %v769_v20 = vld [vmem:[#allocation3 + $0x9] sm:$0xff]  ;;  %v6853_v15 = vld [vmem:[#allocation3 + $0x31] sm:$0xff] }
  0x72   : > { %v6844_v21 = vld [vmem:[#allocation3 + $0x1e8] sm:$0xff]  ;;  %v768_v3 = vld [vmem:[#allocation3 + $0x1f0] sm:$0xff]  ;;  %v5194_v5 = vpack.i.bf16 %v770_v13, %v769_v20  ;;  %v652_v20 = vld [vmem:[%s6399_s15] sm:$0xff] }
  0x73   : > { %v5189_v4 = vpack.i.bf16 %v768_v3, %v6844_v21  ;;  %v6851_v14 = vld [vmem:[#allocation3 + $0x29] sm:$0xff]  ;;  %v6857_v9 = vld [vmem:[#allocation3 + $0x51] sm:$0xff] }
  0x74   : > { %5180 = vrot.lane.b32.xlu1 %v5179_v16, %s6278_s1  ;;  %v6855_v2 = vld [vmem:[#allocation3 + $0x49] sm:$0xff]  ;;  %v5199_v13 = vpack.i.bf16 %v6853_v15, %v6851_v14  ;;  %v784_v54 = vld [vmem:[#allocation3 + $0xf1] sm:$0xff] }
  0x75   : > { %5185 = vrot.lane.b32.xlu0 %v5184_v17, %s6278_s1  ;;  %v5204_v16 = vpack.i.bf16 %v6857_v9, %v6855_v2  ;;  %v6867_v17 = vld [vmem:[#allocation3 + $0x69] sm:$0xff]  ;;  %v786_v52 = vld [vmem:[#allocation3 + $0x111] sm:$0xff] }
  0x76   : > { %v653_v3 = vld [vmem:[%s6399_s15 + $0x8] sm:$0xff]  ;;  %v5209_v24 = vpack.i.bf16 %v6871_v29, %v6867_v17  ;;  %v6909_v50 = vld [vmem:[#allocation3 + $0x131] sm:$0xff] }
  0x77   : > { %v4962_v30 = vpack.c.bf16 %v653_v3, %v652_v20  ;;  %v657_v20 = vld [vmem:[%s6399_s15 + $0x28] sm:$0xff]  ;;  %v6885_v3 = vld [vmem:[#allocation3 + $0xb1] sm:$0xff] }
  0x78   : > { %5190 = vrot.lane.b32.xlu1 %v5189_v4, %s6278_s1  ;;  %v655_v4 = vld [vmem:[%s6399_s15 + $0x18] sm:$0xff]  ;;  %v783_v57 = vld [vmem:[#allocation3 + $0xe9] sm:$0xff]  ;;  %s6290_s1 = smov (!%p4900_p8), 48  }
  0x79   : > { %5195 = vrot.lane.b32.xlu0 %v5194_v5, %s6280_s3  ;;  %4963 = vmatpush1.bf16.msra.mxu0 %v4962_v30  ;;  %v4965_v5 = vpack.c.bf16 %v655_v4, %v654_v25  ;;  %v6889_v25 = vld [vmem:[#allocation3 + $0xd1] sm:$0xff]  ;;  %v5219_v4 = vpack.i.bf16 %v6885_v3, %v6881_v22  ;;  %v785_v53 = vld [vmem:[#allocation3 + $0x109] sm:$0xff] }
  0x7a   : > { %5027 = vmatpush1.bf16.msra.mxu1 %v4962_v30  ;;  %v6887_v30 = vld [vmem:[#allocation3 + $0xc9] sm:$0xff]  ;;  %v6913_v48 = vld [vmem:[#allocation3 + $0x151] sm:$0xff] }
  0x7b   : > { %v5224_v59 = vpack.i.bf16 %v6889_v25, %v6887_v30  ;;  %v6911_v49 = vld [vmem:[#allocation3 + $0x149] sm:$0xff] }
  0x7c   : > { %5200 = vrot.lane.b32.xlu1 %v5199_v13, %s6280_s3  ;;  %v8994_v13 = vmov 0.0|0.0   ;;  %v962_v47 = vld [vmem:[#allocation3 + $0x49] sm:$0xff] }
  0x7d   : > { %5205 = vrot.lane.b32.xlu0 %v5204_v16, %s6280_s3  ;;  %4964 = vmatprep.subr.bf16.mxu0 %v8994_v13  ;;  %v4968_v16 = vpack.c.bf16 %v657_v20, %v656_v60  ;;  %v4971_v60 = vpack.c.bf16 %v659_v55, %v658_v56  ;;  %v660_v20 = vld [vmem:[%s6399_s15 + $0x40] sm:$0xff]  ;;  %v662_v55 = vld [vmem:[%s6399_s15 + $0x50] sm:$0xff]  ;;  %v663_v56 = vld [vmem:[%s6399_s15 + $0x58] sm:$0xff] }
  0x7e   : > { %5019 = vmatprep.subr.bf16.mxu1 %v8994_v13  ;;  %4966 = vmatpush1.bf16.msra.mxu0 %v4965_v5  ;;  %v978_v46 = vld [vmem:[#allocation3 + $0x149] sm:$0xff] }
  0x7f   : > { %5028 = vmatpush1.bf16.msra.mxu1 %v4965_v5  ;;  %4967 = vmatprep.subr.bf16.mxu0 %v8994_v13  ;;  %v6905_v5 = vld [vmem:[#allocation3 + $0x129] sm:$0xff] }
  0x80   : > { %5210 = vrot.lane.b32.xlu1 %v5209_v24, %s6280_s3  ;;  %5020 = vmatprep.subr.bf16.mxu1 %v8994_v13  ;;  %v5234_v24 = vpack.i.bf16 %v786_v52, %v785_v53  ;;  %v5239_v52 = vpack.i.bf16 %v6909_v50, %v6905_v5  ;;  %v5244_v53 = vpack.i.bf16 %v6913_v48, %v6911_v49  ;;  %v721_v41 = vld [vmem:[#allocation3 + $0x107] sm:$0xff]  ;;  %v736_v37 = vld [vmem:[#allocation3 + $0x1ef] sm:$0xff] }
  0x81   : > { %5215 = vrot.lane.b32.xlu0 %v5214_v23, %s6280_s3  ;;  %v5229_v23 = vpack.i.bf16 %v784_v54, %v783_v57  ;;  %v4974_v54 = vpack.c.bf16 %v661_v51, %v660_v20  ;;  %v6925_v57 = vld [vmem:[#allocation3 + $0x169] sm:$0xff]  ;;  %4868 = vmatprep.mubr.msk.f32.mxu0 %vm672_vm2, %v962_v47 }
  0x82   : > { %4969 = vmatpush1.bf16.msra.mxu0 %v4968_v16  ;;  %v6931_v51 = vld [vmem:[#allocation2 + $0xf0] sm:$0xff]  ;;  %v6943_v20 = vld [vmem:[#allocation3 + $0x27] sm:$0xff]  ;;  %4884 = vmatprep.mubr.msk.f32.mxu1 %vm672_vm2, %v978_v46 }
  0x83   : > { %5029 = vmatpush1.bf16.msra.mxu1 %v4968_v16  ;;  %4970 = vmatprep.subr.bf16.mxu0 %v8994_v13  ;;  %8995 = vst [vmem:[#allocation37_spill] sm:$0xff] %v6931_v51  ;;  %703 = vst.msk [vmem:[#allocation3 + $0x208] sm:$0xff] %vm672_vm2, %v6931_v51  ;;  %v4977_v16 = vpack.c.bf16 %v663_v56, %v662_v55  ;;  %v6945_v51 = vld [vmem:[#allocation3 + $0x127] sm:$0xff]  ;;  %v5264_v55 = vpack.i.bf16 %v6802_v34, %v6746_v62  ;;  %v667_v56 = vld [vmem:[%s6399_s15 + $0x78] sm:$0xff] }
  0x84   : > { %5220 = vrot.lane.b32.xlu1 %v5219_v4, %s6280_s3  ;;  %5021 = vmatprep.subr.bf16.mxu1 %v8994_v13  ;;  %v5269_v34 = vpack.i.bf16 %v6905_v5, %v6851_v14  ;;  %v6973_v47 = vld [vmem:[#allocation3 + $0x2f] sm:$0xff] }
  0x85   : > { %5225 = vrot.lane.b32.xlu0 %v5224_v59, %s6280_s3  ;;  %v6927_v59 = vld [vmem:[#allocation3 + $0x171] sm:$0xff] }
  0x86   : > { %4972 = vmatpush1.bf16.msra.mxu0 %v4971_v60  ;;  %v5249_v4 = vpack.i.bf16 %v6927_v59, %v6925_v57  ;;  %v6975_v46 = vld [vmem:[#allocation3 + $0x12f] sm:$0xff] }
  0x87   : > { %5030 = vmatpush1.bf16.msra.mxu1 %v4971_v60  ;;  %4973 = vmatprep.subr.bf16.mxu0 %v8994_v13  ;;  %v5254_v60 = vpack.i.bf16 %v6834_v8, %v6830_v32  ;;  %v5279_v5 = vpack.i.bf16 %v6975_v46, %v6973_v47 }
  0x88   : > { %5230 = vrot.lane.b32.xlu1 %v5229_v23, %s6280_s3  ;;  %5022 = vmatprep.subr.bf16.mxu1 %v8994_v13  ;;  %v664_v23 = vld [vmem:[%s6399_s15 + $0x60] sm:$0xff] }
  0x89   : > { %5235 = vrot.lane.b32.xlu0 %v5234_v24, %s6280_s3  ;;  %v665_v24 = vld [vmem:[%s6399_s15 + $0x68] sm:$0xff] }
  0x8a   : > { %4975 = vmatpush1.bf16.msra.mxu0 %v4974_v54 }
  0x8b   : > { %5031 = vmatpush1.bf16.msra.mxu1 %v4974_v54  ;;  %4976 = vmatprep.subr.bf16.mxu0 %v8994_v13  ;;  %v4980_v54 = vpack.c.bf16 %v665_v24, %v664_v23  ;;  %v669_v23 = vld [vmem:[%s6399_s15 + $0x88] sm:$0xff]  ;;  %v6979_v24 = vld [vmem:[#allocation2 + $0xf8] sm:$0xff] }
  0x8c   : > { %5240 = vrot.lane.b32.xlu1 %v5239_v52, %s6280_s3  ;;  %5023 = vmatprep.subr.bf16.mxu1 %v8994_v13  ;;  %v666_v52 = vld [vmem:[%s6399_s15 + $0x70] sm:$0xff]  ;;  %8996 = vst [vmem:[#allocation38_spill] sm:$0xff] %v6979_v24  ;;  %704 = vst.msk [vmem:[#allocation3 + $0x210] sm:$0xff] %vm672_vm2, %v6979_v24  ;;  %v735_v24 = vld [vmem:[#allocation3 + $0x1e7] sm:$0xff] }
  0x8d   : > { %5245 = vrot.lane.b32.xlu0 %v5244_v53, %s6280_s3  ;;  %v5259_v53 = vpack.i.bf16 %v6945_v51, %v6943_v20  ;;  %v4983_v62 = vpack.c.bf16 %v667_v56, %v666_v52  ;;  %v5289_v52 = vpack.i.bf16 %v6804_v36, %v6748_v63  ;;  %v5309_v63 = vpack.i.bf16 %v6808_v1, %v6744_v61  ;;  %v7009_v36 = vld [vmem:[#allocation3 + $0x67] sm:$0xff]  ;;  %v7026_v1 = vld [vmem:[#allocation3 + $0x6f] sm:$0xff] }
  0x8e   : > { %4978 = vmatpush1.bf16.msra.mxu0 %v4977_v16  ;;  %v5344_v61 = vpack.i.bf16 %v6913_v48, %v6857_v9  ;;  %v7028_v56 = vld [vmem:[#allocation3 + $0x16f] sm:$0xff]  ;;  %v5369_v48 = vpack.i.bf16 %v6925_v57, %v6867_v17 }
  0x8f   : > { %5032 = vmatpush1.bf16.msra.mxu1 %v4977_v16  ;;  %v6959_v16 = vld [vmem:[#allocation3 + $0x147] sm:$0xff]  ;;  %4979 = vmatprep.subr.bf16.mxu0 %v8994_v13 }
  0x90   : > { %5250 = vrot.lane.b32.xlu1 %v5249_v4, %s6280_s3  ;;  %5024 = vmatprep.subr.bf16.mxu1 %v8994_v13  ;;  %v5274_v4 = vpack.i.bf16 %v6959_v16, %v6957_v45 }
  0x91   : > { %5255 = vrot.lane.b32.xlu0 %v5254_v60, %s6280_s3  ;;  %v668_v60 = vld [vmem:[%s6399_s15 + $0x80] sm:$0xff]  ;;  %s6284_s15 = smov 96  }
  0x92   : > { %4981 = vmatpush1.bf16.msra.mxu0 %v4980_v54  ;;  %v4986_v14 = vpack.c.bf16 %v669_v23, %v668_v60  ;;  %v904_v60 = vld [vmem:[#allocation3 + $0xa7] sm:$0xff] }
  0x93   : > { %5033 = vmatpush1.bf16.msra.mxu1 %v4980_v54  ;;  %4982 = vmatprep.subr.bf16.mxu0 %v8994_v13  ;;  %v5284_v54 = vpack.i.bf16 %v6806_v0, %v6732_v58  ;;  %v6999_v58 = vld [vmem:[#allocation3 + $0x14f] sm:$0xff]  ;;  %v920_v23 = vld [vmem:[#allocation3 + $0x1a7] sm:$0xff] }
  0x94   : > { %5260 = vrot.lane.b32.xlu1 %v5259_v53, %s6281_s12  ;;  %5025 = vmatprep.subr.bf16.mxu1 %v8994_v13  ;;  %v5294_v53 = vpack.i.bf16 %v6909_v50, %v6853_v15  ;;  %v7011_v50 = vld [vmem:[#allocation3 + $0x167] sm:$0xff]  ;;  %v5319_v15 = vpack.i.bf16 %v6911_v49, %v6855_v2  ;;  %v5349_v49 = vpack.i.bf16 %v7028_v56, %v7026_v1 }
  0x95   : > { %5265 = vrot.lane.b32.xlu0 %v5264_v55, %s6282_s17  ;;  %v6997_v55 = vld [vmem:[#allocation3 + $0x4f] sm:$0xff]  ;;  %v7036_v2 = vld [vmem:[#allocation3 + $0x87] sm:$0xff] }
  0x96   : > { %4984 = vmatpush1.bf16.msra.mxu0 %v4983_v62  ;;  %v5299_v0 = vpack.i.bf16 %v6999_v58, %v6997_v55 }
  0x97   : > { %5034 = vmatpush1.bf16.msra.mxu1 %v4983_v62  ;;  %4985 = vmatprep.subr.bf16.mxu0 %v8994_v13  ;;  %v7038_v62 = vld [vmem:[#allocation3 + $0x187] sm:$0xff] }
  0x98   : > { %5270 = vrot.lane.b32.xlu1 %v5269_v34, %s6283_s24  ;;  %5026 = vmatprep.subr.bf16.mxu1 %v8994_v13  ;;  %v5324_v13 = vpack.i.bf16 %v7011_v50, %v7009_v36  ;;  %v5374_v9 = vpack.i.bf16 %v7038_v62, %v7036_v2  ;;  %v5394_v34 = vpack.i.bf16 %v6927_v59, %v6871_v29 }
  0x99   : > { %5275 = vrot.lane.b32.xlu0 %v5274_v4, %s6284_s15 }
  0x9a   : > { %4987 = vmatpush1.bf16.msra.mxu0 %v4986_v14 }
  0x9b   : > { %5035 = vmatpush1.bf16.msra.mxu1 %v4986_v14 }
  0x9c   : > { %5280 = vrot.lane.b32.xlu1 %v5279_v5, %s6281_s12 }
  0x9d   : > { %5285 = vrot.lane.b32.xlu0 %v5284_v54, %s6285_s27 }
  0xa0   : > { %5290 = vrot.lane.b32.xlu1 %v5289_v52, %s6282_s17 }
  0xa1   : > { %5295 = vrot.lane.b32.xlu0 %v5294_v53, %s6283_s24 }
  0xa4   : > { %5300 = vrot.lane.b32.xlu1 %v5299_v0, %s6284_s15 }
  0xa5   : > { %5305 = vrot.lane.b32.xlu0 %v5274_v4, %s6281_s12  ;;  %v903_v4 = vld [vmem:[#allocation3 + $0x8f] sm:$0xff] }
  0xa8   : > { %5310 = vrot.lane.b32.xlu1 %v5309_v63, %s6285_s27 }
  0xa9   : > { %5315 = vrot.lane.b32.xlu0 %v5284_v54, %s6282_s17  ;;  %v8997_v54 = vpack.i.bf16 %v6830_v32, %v6828_v19  ;;  %v9001_v19 = vpack.i.bf16 %v6834_v8, %v6832_v33 }
  0xac   : > { %5320 = vrot.lane.b32.xlu1 %v5319_v15, %s6283_s24  ;;  %v716_v15 = vld [vmem:[#allocation3 + $0xaf] sm:$0xff] }
  0xad   : > { %5325 = vrot.lane.b32.xlu0 %v5324_v13, %s6284_s15 }
  0xb0   : > { %5330 = vrot.lane.b32.xlu1 %v5299_v0, %s6281_s12 }
  0xb1   : > { %5335 = vrot.lane.b32.xlu0 %v6778_v26, %s6285_s27 }
  0xb4   : > { %5340 = vrot.lane.b32.xlu1 %v5309_v63, %s6282_s17 }
  0xb5   : > { %5345 = vrot.lane.b32.xlu0 %v5344_v61, %s6283_s24 }
  0xb8   : > { %5350 = vrot.lane.b32.xlu1 %v5349_v49, %s6284_s15 }
  0xb9   : > { %5355 = vrot.lane.b32.xlu0 %v5324_v13, %s6281_s12 }
  0xbc   : > { %5360 = vrot.lane.b32.xlu1 %v6780_v27, %s6285_s27 }
  0xbd   : > { %5365 = vrot.lane.b32.xlu0 %v6778_v26, %s6282_s17  ;;  %v919_v26 = vld [vmem:[#allocation3 + $0x18f] sm:$0xff] }
  0xbe   : > { %v5399_v57 = vpack.i.bf16 %v919_v26, %v903_v4 }
  0xc0   : > { %5370 = vrot.lane.b32.xlu1 %v5369_v48, %s6283_s24  ;;  %v889_v48 = vld [vmem:[#allocation3 + $0x1a9] sm:$0xff] }
  0xc1   : > { %5375 = vrot.lane.b32.xlu0 %v5374_v9, %s6284_s15  ;;  %v7058_v17 = vpop.permute.xlu0 %5115  ;;  %v5469_v33 = vpack.i.bf16 %v889_v48, %v6881_v22  ;;  %v9005_v22 = vpack.i.bf16 %v6816_v6, %v6760_v10 }
  0xc4   : > { %5380 = vrot.lane.b32.xlu1 %v5349_v49, %s6281_s12  ;;  %v733_v49 = vld [vmem:[#allocation3 + $0x1c7] sm:$0xff] }
  0xc5   : > { %5385 = vrot.lane.b32.xlu0 %v6782_v28, %s6285_s27 }
  0xc8   : > { %5390 = vrot.lane.b32.xlu1 %v6780_v27, %s6282_s17  ;;  %v5424_v27 = vpack.i.bf16 %v920_v23, %v904_v60 }
  0xc9   : > { %5395 = vrot.lane.b32.xlu0 %v5394_v34, %s6283_s24 }
  0xcc   : > { %5400 = vrot.lane.b32.xlu1 %v5399_v57, %s6284_s15 }
  0xcd   : > { %5405 = vrot.lane.b32.xlu0 %v5374_v9, %s6281_s12  ;;  %v7062_v14 = vpop.permute.xlu1 %5125 }
  0xce   : > { %v7064_v5 = vpop.permute.xlu0 %5120 }
  0xd0   : > { %5410 = vrot.lane.b32.xlu1 %v6794_v31, %s6285_s27 }
  0xd1   : > { %5415 = vrot.lane.b32.xlu0 %v6782_v28, %s6282_s17  ;;  %v7070_v29 = vpop.permute.xlu1 %5130  ;;  %v921_v28 = vld [vmem:[#allocation3 + $0x1af] sm:$0xff] }
  0xd2   : > { %v7072_v59 = vpop.permute.xlu0 %5135  ;;  %v5449_v32 = vpack.i.bf16 %v921_v28, %v716_v15  ;;  %v718_v28 = vld [vmem:[#allocation3 + $0xcf] sm:$0xff] }
  0xd3   : > { %v734_v15 = vld [vmem:[#allocation3 + $0x1cf] sm:$0xff] }
  0xd4   : > { %5420 = vrot.lane.b32.xlu1 %v8997_v54, %s6283_s24 }
  0xd5   : > { %5425 = vrot.lane.b32.xlu0 %v5424_v27, %s6284_s15  ;;  %v7079_v52 = vpop.permute.xlu1 %5140 }
  0xd6   : > { %8998 = vst [vmem:[#allocation39_spill] sm:$0xff] %v7079_v52  ;;  %v7081_v53 = vpop.permute.xlu0 %5145 }
  0xd7   : > { %8999 = vst [vmem:[#allocation40_spill] sm:$0xff] %v7081_v53  ;;  %v941_v53 = vld [vmem:[#allocation3 + $0xf0] sm:$0xff] }
  0xd8   : > { %5430 = vrot.lane.b32.xlu1 %v5399_v57, %s6281_s12  ;;  %v7117_v57 = vld [vmem:[#allocation3 + $0x1b1] sm:$0xff] }
  0xd9   : > { %5435 = vrot.lane.b32.xlu0 %v6818_v7, %s6285_s27  ;;  %v7086_v0 = vpop.permute.xlu1 %5150 }
  0xda   : > { %9000 = vst [vmem:[#allocation41_spill] sm:$0xff] %v7086_v0  ;;  %v7088_v63 = vpop.permute.xlu0 %5155 }
  0xdb   : > { %v5157_v43 = vunpack.i.l.bf16 %v7088_v63 }
  0xdc   : > { %5440 = vrot.lane.b32.xlu1 %v6794_v31, %s6282_s17  ;;  %v717_v31 = vld [vmem:[#allocation3 + $0xc7] sm:$0xff] }
  0xdd   : > { %5445 = vrot.lane.b32.xlu0 %v9001_v19, %s6283_s24  ;;  %v5474_v8 = vpack.i.bf16 %v733_v49, %v717_v31  ;;  %v5499_v19 = vpack.i.bf16 %v7117_v57, %v889_v48  ;;  %v7144_v31 = vld [vmem:[#allocation3 + $0x1c9] sm:$0xff] }
  0xde   : > { %v7096_v13 = vpop.permute.xlu1 %5160 }
  0xdf   : > { %v7098_v61 = vpop.permute.xlu0 %5165 }
  0xe0   : > { %5450 = vrot.lane.b32.xlu1 %v5449_v32, %s6284_s15 }
  0xe1   : > { %5455 = vrot.lane.b32.xlu0 %v5424_v27, %s6281_s12 }
  0xe2   : > { %v7102_v9 = vpop.permute.xlu1 %5170 }
  0xe3   : > { %v7104_v34 = vpop.permute.xlu0 %5175 }
  0xe4   : > { %5460 = vrot.lane.b32.xlu1 %v6820_v12, %s6285_s27 }
  0xe5   : > { %5465 = vrot.lane.b32.xlu0 %v6818_v7, %s6282_s17  ;;  %v5494_v7 = vpack.i.bf16 %v7117_v57, %v6885_v3  ;;  %v843_v3 = vld [vmem:[#allocation3 + $0xc8] sm:$0xff] }
  0xe6   : > { %v7111_v4 = vpop.permute.xlu1 %5180  ;;  %v5519_v48 = vpack.i.bf16 %v6816_v6, %v843_v3 }
  0xe7   : > { %9002 = vst [vmem:[#allocation42_spill] sm:$0xff] %v7111_v4  ;;  %v7113_v26 = vpop.permute.xlu0 %5185 }
  0xe8   : > { %9003 = vst [vmem:[#allocation43_spill] sm:$0xff] %v7113_v26  ;;  %5470 = vrot.lane.b32.xlu1 %v5469_v33, %s6283_s24 }
  0xe9   : > { %5475 = vrot.lane.b32.xlu0 %v5474_v8, %s6284_s15 }
  0xea   : > { %v7119_v60 = vpop.permute.xlu1 %5190 }
  0xeb   : > { %9004 = vst [vmem:[#allocation44_spill] sm:$0xff] %v7119_v60  ;;  %v7121_v23 = vpop.permute.xlu0 %5195 }
  0xec   : > { %5480 = vrot.lane.b32.xlu1 %v5449_v32, %s6281_s12  ;;  %v5504_v32 = vpack.i.bf16 %v734_v15, %v718_v28  ;;  %v5197_v40 = vunpack.i.l.bf16 %v7121_v23 }
  0xed   : > { %5485 = vrot.lane.b32.xlu0 %v9005_v22, %s6285_s27 }
  0xee   : > { %v7130_v27 = vpop.permute.xlu1 %5200 }
  0xef   : > { %v7132_v54 = vpop.permute.xlu0 %5205 }
  0xf0   : > { %5490 = vrot.lane.b32.xlu1 %v6820_v12, %s6282_s17  ;;  %v9008_v12 = vpack.i.bf16 %v6826_v18, %v6762_v11  ;;  %v844_v11 = vld [vmem:[#allocation3 + $0xd0] sm:$0xff] }
  0xf1   : > { %5495 = vrot.lane.b32.xlu0 %v5494_v7, %s6283_s24  ;;  %v5524_v7 = vpack.i.bf16 %v7144_v31, %v6887_v30  ;;  %v860_v18 = vld [vmem:[#allocation3 + $0x1d0] sm:$0xff]  ;;  %v5539_v30 = vpack.i.bf16 %v6844_v21, %v7164_v44 }
  0xf2   : > { %v7138_v49 = vpop.permute.xlu1 %5210  ;;  %v5544_v3 = vpack.i.bf16 %v860_v18, %v844_v11  ;;  %v720_v18 = vld [vmem:[#allocation3 + $0xef] sm:$0xff] }
  0xf3   : > { %v7140_v10 = vpop.permute.xlu0 %5215  ;;  %v7190_v38 = vpack.i.bf16 %v736_v37, %v720_v18  ;;  %v861_v37 = vld [vmem:[#allocation3 + $0x1e8] sm:$0xff] }
  0xf4   : > { %5500 = vrot.lane.b32.xlu1 %v5499_v19, %s6280_s3  ;;  %v719_v19 = vld [vmem:[#allocation3 + $0xe7] sm:$0xff] }
  0xf5   : > { %5505 = vrot.lane.b32.xlu0 %v5504_v32, %s6284_s15 }
  0xf6   : > { %v7146_v33 = vpop.permute.xlu1 %5220 }
  0xf7   : > { %9006 = vst [vmem:[#allocation45_spill] sm:$0xff] %v7146_v33  ;;  %v7148_v22 = vpop.permute.xlu0 %5225  ;;  %v957_v33 = vld [vmem:[#allocation3 + $0x1f0] sm:$0xff] }
  0xf8   : > { %9007 = vst [vmem:[#allocation46_spill] sm:$0xff] %v7148_v22  ;;  %5510 = vrot.lane.b32.xlu1 %v5474_v8, %s6281_s12  ;;  %v5529_v8 = vpack.i.bf16 %v735_v24, %v719_v19  ;;  %v5117_v19 = vunpack.i.l.bf16 %v7058_v17 }
  0xf9   : > { %5515 = vrot.lane.b32.xlu0 %v9008_v12, %s6285_s27 }
  0xfa   : > { %v7158_v28 = vpop.permute.xlu1 %5230 }
  0xfb   : > { %9009 = vst [vmem:[#allocation47_spill] sm:$0xff] %v7158_v28  ;;  %v7160_v15 = vpop.permute.xlu0 %5235  ;;  %v1890_v28 = vsel %vm672_vm2, %v705_v42, %v5117_v19  ;;  %v7200_v19 = vpack.i.bf16 %v957_v33, %v941_v53 }
  0xfc   : > { %5520 = vrot.lane.b32.xlu1 %v5519_v48, %s6282_s17  ;;  %v7174_v48 = vld [vmem:[#allocation3 + $0x1d1] sm:$0xff]  ;;  %v1923_v0 = vsel %vm1922_vm3, %v1890_v28, %v5197_v40 }
  0xfd   : > { %5525 = vrot.lane.b32.xlu0 %v5524_v7, %s6283_s24  ;;  %9010 = vst [vmem:[#allocation48_spill] sm:$0xff] %v7174_v48  ;;  %v5549_v21 = vpack.i.bf16 %v7174_v48, %v6889_v25  ;;  %v5554_v11 = vpack.i.bf16 %v7174_v48, %v7144_v31 }
  0xfe   : > { %v7166_v12 = vpop.permute.xlu1 %5240 }
  0xff   : > { %v7168_v6 = vpop.permute.xlu0 %5245 }
 0x100   : > { %5530 = vrot.lane.b32.xlu1 %v5529_v8, %s6284_s15 }
 0x101   : > { %5535 = vrot.lane.b32.xlu0 %v5504_v32, %s6281_s12  ;;  %v5237_v32 = vunpack.i.l.bf16 %v7160_v15 }
 0x102   : > { %v7176_v7 = vpop.permute.xlu1 %5250 }
 0x103   : > { %v7178_v24 = vpop.permute.xlu0 %5255 }
 0x104   : > { %5540 = vrot.lane.b32.xlu1 %v5539_v30, %s6285_s27  ;;  %v1906_v30 = vsel %vm672_vm2, %v721_v41, %v5157_v43 }
 0x105   : > { %5545 = vrot.lane.b32.xlu0 %v5544_v3, %s6282_s17  ;;  %v1939_v25 = vsel %vm1922_vm3, %v1906_v30, %v5237_v32 }
 0x106   : > { %v5261_v35 = vpop.permute.xlu1 %5260 }
 0x107   : > { %v5266_v39 = vpop.permute.xlu0 %5265  ;;  %v5263_v60 = vunpack.i.h.bf16 %v5261_v35  ;;  %v5262_v3 = vunpack.i.l.bf16 %v5261_v35 }
 0x108   : > { %v5268_v22 = vunpack.i.h.bf16 %v5266_v39  ;;  %v5267_v26 = vunpack.i.l.bf16 %v5266_v39  ;;  %5550 = vrot.lane.b32.xlu1 %v5549_v21, %s6283_s24  ;;  %v5574_v39 = vpack.i.bf16 %v861_v37, %v7164_v44 }
 0x109   : > { %5555 = vrot.lane.b32.xlu0 %v5554_v11, %s6280_s3  ;;  %v1956_v18 = vsel %vm1955_vm4, %v1923_v0, %v5262_v3  ;;  %v1972_v42 = vsel %vm1955_vm4, %v1939_v25, %v5263_v60  ;;  %v7208_v0 = vld [vmem:[#allocation3 + $0xe9] sm:$0xff] }
 0x10a   : > { %v5271_v43 = vpop.permute.xlu1 %5270  ;;  %v1989_v32 = vsel %vm1988_vm5, %v1956_v18, %v5267_v26  ;;  %v2005_v21 = vsel %vm1988_vm5, %v1972_v42, %v5268_v22  ;;  %9011 = vst [vmem:[#allocation49_spill] sm:$0xff] %v7208_v0  ;;  %v7210_v60 = vld [vmem:[#allocation3 + $0x1e9] sm:$0xff] }
 0x10b   : > { %v5276_v35 = vpop.permute.xlu0 %5275  ;;  %v5273_v40 = vunpack.i.h.bf16 %v5271_v43  ;;  %v5272_v28 = vunpack.i.l.bf16 %v5271_v43  ;;  %v926_v3 = vld [vmem:[#allocation3 + $0x207] sm:$0xff]  ;;  %v5579_v37 = vpack.i.bf16 %v7210_v60, %v7208_v0  ;;  %v706_v42 = vld [vmem:[#allocation3 + $0xf] sm:$0xff]  ;;  %v5158_v43 = vunpack.i.h.bf16 %v7088_v63 }
 0x10c   : > { %v5278_v11 = vunpack.i.h.bf16 %v5276_v35  ;;  %v5277_v30 = vunpack.i.l.bf16 %v5276_v35  ;;  %5560 = vrot.lane.b32.xlu1 %v7190_v38, %s6284_s15  ;;  %v7216_v18 = vpack.i.bf16 %v926_v3, %v721_v41  ;;  %v5198_v41 = vunpack.i.h.bf16 %v7121_v23  ;;  %v958_v0 = vld [vmem:[#allocation3 + $0x208] sm:$0xff] }
 0x10d   : > { %5565 = vrot.lane.b32.xlu0 %v5529_v8, %s6281_s12  ;;  %v2022_v53 = vsel %vm2021_vm6, %v1989_v32, %v5272_v28  ;;  %v2038_v44 = vsel %vm2021_vm6, %v2005_v21, %v5273_v40  ;;  %v5118_v8 = vunpack.i.h.bf16 %v7058_v17  ;;  %v963_v28 = vld [vmem:[#allocation3 + $0x51] sm:$0xff]  ;;  %v5238_v3 = vunpack.i.h.bf16 %v7160_v15 }
 0x10e   : > { %v5281_v26 = vpop.permute.xlu1 %5280  ;;  %v2055_v35 = vsel %vm2054_vm7, %v2022_v53, %v5277_v30  ;;  %v2071_v40 = vsel %vm2054_vm7, %v2038_v44, %v5278_v11  ;;  %v979_v32 = vld [vmem:[#allocation3 + $0x151] sm:$0xff] }
 0x10f   : > { %v5286_v33 = vpop.permute.xlu0 %5285  ;;  %v722_v21 = vld [vmem:[#allocation3 + $0x10f] sm:$0xff]  ;;  %v5283_v4 = vunpack.i.h.bf16 %v5281_v26  ;;  %v5282_v52 = vunpack.i.l.bf16 %v5281_v26  ;;  %v1891_v23 = vsel %vm672_vm2, %v706_v42, %v5118_v8 }
 0x110   : > { %v5288_v22 = vunpack.i.h.bf16 %v5286_v33  ;;  %v5287_v25 = vunpack.i.l.bf16 %v5286_v33  ;;  %5570 = vrot.lane.b32.xlu1 %v7200_v19, %s6285_s27  ;;  %v942_v33 = vld [vmem:[#allocation3 + $0x108] sm:$0xff]  ;;  %v1907_v15 = vsel %vm672_vm2, %v722_v21, %v5158_v43  ;;  %v1924_v44 = vsel %vm1922_vm3, %v1891_v23, %v5198_v41 }
 0x111   : > { %5575 = vrot.lane.b32.xlu0 %v5574_v39, %s6282_s17  ;;  %v7236_v53 = vpack.i.bf16 %v958_v0, %v942_v33  ;;  %v1940_v26 = vsel %vm1922_vm3, %v1907_v15, %v5238_v3  ;;  %v5202_v33 = vunpack.i.l.bf16 %v7130_v27 }
 0x112   : > { %v2088_v17 = vsel %vm2087_vm8, %v2055_v35, %v5287_v25  ;;  %v2104_v63 = vsel %vm2087_vm8, %v2071_v40, %v5288_v22  ;;  %v5291_v39 = vpop.permute.xlu1 %5290  ;;  %v7240_v22 = vld [vmem:[#allocation3 + $0xf1] sm:$0xff]  ;;  %v1957_v35 = vsel %vm1955_vm4, %v1924_v44, %v5282_v52  ;;  %v1973_v8 = vsel %vm1955_vm4, %v1940_v26, %v5283_v4 }
 0x113   : > { %v5296_v48 = vpop.permute.xlu0 %5295  ;;  %2287 = vmatmul.mubr.f32.vlgmr.msra.gmra.mrb[0].mxu0 %v2088_v17  ;;  %2367 = vmatmul.mubr.f32.vlgmr.msra.gmra.mrb[0].mxu1 %v2104_v63  ;;  %v5293_v11 = vunpack.i.h.bf16 %v5291_v39  ;;  %v5292_v30 = vunpack.i.l.bf16 %v5291_v39  ;;  %9012 = vst [vmem:[#allocation50_spill] sm:$0xff] %v7240_v22  ;;  %v7242_v25 = vld [vmem:[#allocation3 + $0x1f1] sm:$0xff]  ;;  %v5122_v4 = vunpack.i.l.bf16 %v7064_v5  ;;  %v5242_v39 = vunpack.i.l.bf16 %v7166_v12 }
 0x114   : > { %4869 = vmatprep.mubr.msk.f32.mxu0 %vm672_vm2, %v963_v28  ;;  %4885 = vmatprep.mubr.msk.f32.mxu1 %vm672_vm2, %v979_v32  ;;  %9013 = vst [vmem:[#allocation51_spill] sm:$0xff] %v7242_v25  ;;  %v5298_v42 = vunpack.i.h.bf16 %v5296_v48  ;;  %v5297_v43 = vunpack.i.l.bf16 %v5296_v48  ;;  %v927_v28 = vld [vmem:[#allocation3 + $0x20f] sm:$0xff]  ;;  %v5604_v52 = vpack.i.bf16 %v7242_v25, %v7240_v22  ;;  %v5162_v48 = vunpack.i.l.bf16 %v7096_v13 }
 0x115   : > { %5580 = vrot.lane.b32.xlu1 %v5579_v37, %s6283_s24  ;;  %5585 = vrot.lane.b32.xlu0 %v7216_v18, %s6284_s15  ;;  %v1990_v0 = vsel %vm1988_vm5, %v1957_v35, %v5292_v30  ;;  %v2006_v32 = vsel %vm1988_vm5, %v1973_v8, %v5293_v11  ;;  %v5609_v3 = vpack.i.bf16 %v7242_v25, %v7210_v60  ;;  %v943_v8 = vld [vmem:[#allocation3 + $0x110] sm:$0xff] }
 0x116   : > { %v5301_v37 = vpop.permute.xlu1 %5300  ;;  %v7258_v63 = vpack.i.bf16 %v927_v28, %v722_v21  ;;  %v2023_v30 = vsel %vm2021_vm6, %v1990_v0, %v5297_v43  ;;  %v2039_v23 = vsel %vm2021_vm6, %v2006_v32, %v5298_v42  ;;  %v964_v43 = vld [vmem:[#allocation3 + $0x69] sm:$0xff]  ;;  %v1892_v42 = vsel %vm672_vm2, %v6943_v20, %v5122_v4 }
 0x117   : > { %v5306_v40 = vpop.permute.xlu0 %5305  ;;  %v5303_v41 = vunpack.i.h.bf16 %v5301_v37  ;;  %v5302_v17 = vunpack.i.l.bf16 %v5301_v37  ;;  %v959_v37 = vld [vmem:[#allocation3 + $0x210] sm:$0xff] }
 0x118   : > { %v5308_v15 = vunpack.i.h.bf16 %v5306_v40  ;;  %v5307_v44 = vunpack.i.l.bf16 %v5306_v40  ;;  %v980_v0 = vld [vmem:[#allocation3 + $0x169] sm:$0xff]  ;;  %v1908_v40 = vsel %vm672_vm2, %v6945_v51, %v5162_v48 }
 0x119   : > { %5590 = vrot.lane.b32.xlu1 %v7190_v38, %s6281_s12  ;;  %5595 = vrot.lane.b32.xlu0 %v7236_v53, %s6285_s27  ;;  %v2056_v21 = vsel %vm2054_vm7, %v2023_v30, %v5302_v17  ;;  %v2072_v28 = vsel %vm2054_vm7, %v2039_v23, %v5303_v41  ;;  %v7277_v41 = vpack.i.bf16 %v959_v37, %v943_v8 }
 0x11a   : > { %v5311_v38 = vpop.permute.xlu1 %5310 }
 0x11b   : > { %v5316_v11 = vpop.permute.xlu0 %5315  ;;  %v5313_v26 = vunpack.i.h.bf16 %v5311_v38  ;;  %v5312_v35 = vunpack.i.l.bf16 %v5311_v38 }
 0x11c   : > { %v5318_v22 = vunpack.i.h.bf16 %v5316_v11  ;;  %v5317_v25 = vunpack.i.l.bf16 %v5316_v11 }
 0x11d   : > { %5600 = vrot.lane.b32.xlu1 %v7200_v19, %s6282_s17  ;;  %5605 = vrot.lane.b32.xlu0 %v5604_v52, %s6283_s24  ;;  %v2089_v32 = vsel %vm2087_vm8, %v2056_v21, %v5312_v35  ;;  %v2105_v38 = vsel %vm2087_vm8, %v2072_v28, %v5313_v26  ;;  %v1925_v19 = vsel %vm1922_vm3, %v1892_v42, %v5202_v33  ;;  %v5163_v28 = vunpack.i.h.bf16 %v7096_v13  ;;  %v965_v42 = vld [vmem:[#allocation3 + $0x71] sm:$0xff] }
 0x11e   : > { %v1941_v52 = vsel %vm1922_vm3, %v1908_v40, %v5242_v39  ;;  %v5321_v11 = vpop.permute.xlu1 %5320  ;;  %2292 = vmatmul.mubr.f32.gmra.mrb[2].mxu0 %v2089_v32  ;;  %2372 = vmatmul.mubr.f32.gmra.mrb[2].mxu1 %v2105_v38  ;;  %v1958_v20 = vsel %vm1955_vm4, %v1925_v19, %v5307_v44  ;;  %v7290_v44 = vld [vmem:[#allocation3 + $0x209] sm:$0xff]  ;;  %v981_v40 = vld [vmem:[#allocation3 + $0x171] sm:$0xff]  ;;  %v5203_v32 = vunpack.i.h.bf16 %v7130_v27  ;;  %v5243_v38 = vunpack.i.h.bf16 %v7166_v12 }
 0x11f   : > { %v5326_v17 = vpop.permute.xlu0 %5325  ;;  %v1974_v30 = vsel %vm1955_vm4, %v1941_v52, %v5308_v15  ;;  %v5323_v4 = vunpack.i.h.bf16 %v5321_v11  ;;  %v5322_v51 = vunpack.i.l.bf16 %v5321_v11  ;;  %4870 = vmatprep.mubr.msk.f32.mxu0 %vm672_vm2, %v964_v43  ;;  %4886 = vmatprep.mubr.msk.f32.mxu1 %vm672_vm2, %v980_v0  ;;  %v1991_v48 = vsel %vm1988_vm5, %v1958_v20, %v5317_v25  ;;  %v7288_v15 = vld [vmem:[#allocation3 + $0x109] sm:$0xff] }
 0x120   : > { %v2007_v33 = vsel %vm1988_vm5, %v1974_v30, %v5318_v22  ;;  %v5328_v39 = vunpack.i.h.bf16 %v5326_v17  ;;  %v5327_v23 = vunpack.i.l.bf16 %v5326_v17  ;;  %v5634_v22 = vpack.i.bf16 %v7290_v44, %v7288_v15  ;;  %v912_v19 = vld [vmem:[#allocation3 + $0x127] sm:$0xff] }
 0x121   : > { %5610 = vrot.lane.b32.xlu1 %v5609_v3, %s6280_s3  ;;  %5615 = vrot.lane.b32.xlu0 %v7258_v63, %s6284_s15  ;;  %v2024_v26 = vsel %vm2021_vm6, %v1991_v48, %v5322_v51  ;;  %v2040_v35 = vsel %vm2021_vm6, %v2007_v33, %v5323_v4  ;;  %v5123_v3 = vunpack.i.h.bf16 %v7064_v5  ;;  %v928_v52 = vld [vmem:[#allocation3 + $0x227] sm:$0xff]  ;;  %v1909_v12 = vsel %vm672_vm2, %v6975_v46, %v5163_v28  ;;  %s6291_s3 = smov (!%p4900_p8), 112  }
 0x122   : > { %v5331_v8 = vpop.permute.xlu1 %5330  ;;  %v2057_v43 = vsel %vm2054_vm7, %v2024_v26, %v5327_v23  ;;  %v2073_v0 = vsel %vm2054_vm7, %v2040_v35, %v5328_v39  ;;  %v5639_v51 = vpack.i.bf16 %v928_v52, %v912_v19  ;;  %v1942_v33 = vsel %vm1922_vm3, %v1909_v12, %v5243_v38  ;;  %v944_v39 = vld [vmem:[#allocation3 + $0x128] sm:$0xff]  ;;  %v7319_v26 = vld [vmem:[#allocation3 + $0x111] sm:$0xff] }
 0x123   : > { %v5336_v37 = vpop.permute.xlu0 %5335  ;;  %v5332_v11 = vunpack.i.l.bf16 %v5331_v8  ;;  %v1893_v27 = vsel %vm672_vm2, %v6973_v47, %v5123_v3  ;;  %v960_v23 = vld [vmem:[#allocation3 + $0x228] sm:$0xff]  ;;  %v5247_v19 = vunpack.i.l.bf16 %v7168_v6  ;;  %v961_v12 = vld [vmem:[#allocation3 + $0x230] sm:$0xff] }
 0x124   : > { %v5338_v25 = vunpack.i.h.bf16 %v5336_v37  ;;  %v5337_v21 = vunpack.i.l.bf16 %v5336_v37  ;;  %v1926_v48 = vsel %vm1922_vm3, %v1893_v27, %v5203_v32  ;;  %v5167_v32 = vunpack.i.l.bf16 %v7098_v61  ;;  %v945_v27 = vld [vmem:[#allocation3 + $0x130] sm:$0xff] }
 0x125   : > { %5620 = vrot.lane.b32.xlu1 %v7216_v18, %s6281_s12  ;;  %5625 = vrot.lane.b32.xlu0 %v7277_v41, %s6285_s27  ;;  %v5333_v18 = vunpack.i.h.bf16 %v5331_v8  ;;  %v1959_v35 = vsel %vm1955_vm4, %v1926_v48, %v5332_v11 }
 0x126   : > { %v2090_v5 = vsel %vm2087_vm8, %v2057_v43, %v5337_v21  ;;  %v2106_v13 = vsel %vm2087_vm8, %v2073_v0, %v5338_v25  ;;  %v5341_v17 = vpop.permute.xlu1 %5340  ;;  %v913_v21 = vld [vmem:[#allocation3 + $0x12f] sm:$0xff] }
 0x127   : > { %v5346_v30 = vpop.permute.xlu0 %5345  ;;  %2297 = vmatmul.mubr.f32.gmra.mrb[4].mxu0 %v2090_v5  ;;  %2377 = vmatmul.mubr.f32.gmra.mrb[4].mxu1 %v2106_v13  ;;  %v5343_v20 = vunpack.i.h.bf16 %v5341_v17  ;;  %v5342_v4 = vunpack.i.l.bf16 %v5341_v17  ;;  %v1975_v47 = vsel %vm1955_vm4, %v1942_v33, %v5333_v18  ;;  %v5207_v13 = vunpack.i.l.bf16 %v7132_v54 }
 0x128   : > { %4871 = vmatprep.mubr.msk.f32.mxu0 %vm672_vm2, %v965_v42  ;;  %4887 = vmatprep.mubr.msk.f32.mxu1 %vm672_vm2, %v981_v40  ;;  %v5348_v8 = vunpack.i.h.bf16 %v5346_v30  ;;  %v5347_v46 = vunpack.i.l.bf16 %v5346_v30  ;;  %v5649_v42 = vpack.i.bf16 %v960_v23, %v944_v39  ;;  %v5127_v40 = vunpack.i.l.bf16 %v7062_v14  ;;  %v966_v23 = vld [vmem:[#allocation3 + $0x89] sm:$0xff] }
 0x129   : > { %5630 = vrot.lane.b32.xlu1 %v7236_v53, %s6282_s17  ;;  %5635 = vrot.lane.b32.xlu0 %v5634_v22, %s6283_s24  ;;  %v7323_v53 = vld [vmem:[#allocation3 + $0x211] sm:$0xff]  ;;  %v1992_v3 = vsel %vm1988_vm5, %v1959_v35, %v5342_v4  ;;  %v2008_v28 = vsel %vm1988_vm5, %v1975_v47, %v5343_v20  ;;  %v982_v35 = vld [vmem:[#allocation3 + $0x189] sm:$0xff] }
 0x12a   : > { %v5351_v37 = vpop.permute.xlu1 %5350  ;;  %v929_v22 = vld [vmem:[#allocation3 + $0x22f] sm:$0xff]  ;;  %v5659_v38 = vpack.i.bf16 %v7323_v53, %v7319_v26  ;;  %v2025_v11 = vsel %vm2021_vm6, %v1992_v3, %v5347_v46  ;;  %v2041_v17 = vsel %vm2021_vm6, %v2008_v28, %v5348_v8  ;;  %v1894_v47 = vsel %vm672_vm2, %v6957_v45, %v5127_v40 }
 0x12b   : > { %v5356_v25 = vpop.permute.xlu0 %5355  ;;  %v5353_v43 = vunpack.i.h.bf16 %v5351_v37  ;;  %v5352_v0 = vunpack.i.l.bf16 %v5351_v37  ;;  %v5664_v5 = vpack.i.bf16 %v929_v22, %v913_v21  ;;  %v1910_v8 = vsel %vm672_vm2, %v6959_v16, %v5167_v32 }
 0x12c   : > { %v5357_v30 = vunpack.i.l.bf16 %v5356_v25  ;;  %v5669_v3 = vpack.i.bf16 %v961_v12, %v945_v27  ;;  %v5208_v27 = vunpack.i.h.bf16 %v7132_v54  ;;  %v5248_v12 = vunpack.i.h.bf16 %v7168_v6 }
 0x12d   : > { %5640 = vrot.lane.b32.xlu1 %v5639_v51, %s6284_s15  ;;  %5645 = vrot.lane.b32.xlu0 %v7258_v63, %s6281_s12  ;;  %v5358_v63 = vunpack.i.h.bf16 %v5356_v25  ;;  %v2058_v33 = vsel %vm2054_vm7, %v2025_v11, %v5352_v0  ;;  %v2074_v39 = vsel %vm2054_vm7, %v2041_v17, %v5353_v43  ;;  %v1927_v25 = vsel %vm1922_vm3, %v1894_v47, %v5207_v13  ;;  %s6292_s12 = smov (!%p4900_p8), 64  }
 0x12e   : > { %v5361_v52 = vpop.permute.xlu1 %5360  ;;  %v1960_v28 = vsel %vm1955_vm4, %v1927_v25, %v5357_v30  ;;  %v5168_v30 = vunpack.i.h.bf16 %v7098_v61 }
 0x12f   : > { %v5366_v18 = vpop.permute.xlu0 %5365  ;;  %v5363_v20 = vunpack.i.h.bf16 %v5361_v52  ;;  %v5362_v4 = vunpack.i.l.bf16 %v5361_v52 }
 0x130   : > { %v5368_v51 = vunpack.i.h.bf16 %v5366_v18  ;;  %v5367_v48 = vunpack.i.l.bf16 %v5366_v18  ;;  %v1911_v6 = vsel %vm672_vm2, %v6999_v58, %v5168_v30  ;;  %v5132_v58 = vunpack.i.l.bf16 %v7070_v29 }
 0x131   : > { %5650 = vrot.lane.b32.xlu1 %v5649_v42, %s6285_s27  ;;  %5655 = vrot.lane.b32.xlu0 %v7277_v41, %s6282_s17  ;;  %v2091_v46 = vsel %vm2087_vm8, %v2058_v33, %v5362_v4  ;;  %v2107_v37 = vsel %vm2087_vm8, %v2074_v39, %v5363_v20  ;;  %v1943_v41 = vsel %vm1922_vm3, %v1910_v8, %v5247_v19  ;;  %v967_v4 = vld [vmem:[#allocation3 + $0x91] sm:$0xff]  ;;  %s6293_s17 = smov (!%p4900_p8), 96  }
 0x132   : > { %v5371_v21 = vpop.permute.xlu1 %5370  ;;  %2302 = vmatmul.mubr.f32.gmra.mrb[6].mxu0 %v2091_v46  ;;  %2382 = vmatmul.mubr.f32.gmra.mrb[6].mxu1 %v2107_v37  ;;  %v1976_v45 = vsel %vm1955_vm4, %v1943_v41, %v5358_v63  ;;  %v1993_v16 = vsel %vm1988_vm5, %v1960_v28, %v5367_v48  ;;  %v5128_v63 = vunpack.i.h.bf16 %v7062_v14  ;;  %v1944_v8 = vsel %vm1922_vm3, %v1911_v6, %v5248_v12 }
 0x133   : > { %v5376_v22 = vpop.permute.xlu0 %5375  ;;  %v5373_v43 = vunpack.i.h.bf16 %v5371_v21  ;;  %v5372_v0 = vunpack.i.l.bf16 %v5371_v21  ;;  %4872 = vmatprep.mubr.msk.f32.mxu0 %vm672_vm2, %v966_v23  ;;  %4888 = vmatprep.mubr.msk.f32.mxu1 %vm672_vm2, %v982_v35  ;;  %v2009_v42 = vsel %vm1988_vm5, %v1976_v45, %v5368_v51 }
 0x134   : > { %v5378_v40 = vunpack.i.h.bf16 %v5376_v22  ;;  %v5377_v32 = vunpack.i.l.bf16 %v5376_v22  ;;  %v1895_v54 = vsel %vm672_vm2, %v6997_v55, %v5128_v63 }
 0x135   : > { %5660 = vrot.lane.b32.xlu1 %v5659_v38, %s6283_s24  ;;  %5665 = vrot.lane.b32.xlu0 %v5664_v5, %s6284_s15  ;;  %v2026_v13 = vsel %vm2021_vm6, %v1993_v16, %v5372_v0  ;;  %v2042_v19 = vsel %vm2021_vm6, %v2009_v42, %v5373_v43  ;;  %v983_v5 = vld [vmem:[#allocation3 + $0x191] sm:$0xff]  ;;  %v1928_v47 = vsel %vm1922_vm3, %v1895_v54, %v5208_v27  ;;  %v5172_v43 = vunpack.i.l.bf16 %v7102_v9  ;;  %s9049_s24 = scalar_lea.vmem (!%p4900_p8), %s8880_s4, %s6380_s16 }
 0x136   : > { %v5381_v52 = vpop.permute.xlu1 %5380  ;;  %v2059_v20 = vsel %vm2054_vm7, %v2026_v13, %v5377_v32  ;;  %v2075_v38 = vsel %vm2054_vm7, %v2042_v19, %v5378_v40  ;;  %v5212_v0 = vunpack.i.l.bf16 %v7138_v49  ;;  %v5252_v16 = vunpack.i.l.bf16 %v7176_v7 }
 0x137   : > { %v5386_v18 = vpop.permute.xlu0 %5385  ;;  %v5383_v33 = vunpack.i.h.bf16 %v5381_v52  ;;  %v5382_v14 = vunpack.i.l.bf16 %v5381_v52  ;;  %v1912_v27 = vsel %vm672_vm2, %v7011_v50, %v5172_v43  ;;  %v5253_v43 = vunpack.i.h.bf16 %v7176_v7 }
 0x138   : > { %v5388_v11 = vunpack.i.h.bf16 %v5386_v18  ;;  %v5387_v17 = vunpack.i.l.bf16 %v5386_v18 }
 0x139   : > { %5670 = vrot.lane.b32.xlu1 %v5669_v3, %s6285_s27  ;;  %v1961_v46 = vsel %vm1955_vm4, %v1928_v47, %v5382_v14  ;;  %v1977_v37 = vsel %vm1955_vm4, %v1944_v8, %v5383_v33  ;;  %v1945_v33 = vsel %vm1922_vm3, %v1912_v27, %v5252_v16  ;;  %v5217_v27 = vunpack.i.l.bf16 %v7140_v10 }
 0x13a   : > { %v2092_v51 = vsel %vm2087_vm8, %v2059_v20, %v5387_v17  ;;  %v2108_v48 = vsel %vm2087_vm8, %v2075_v38, %v5388_v11  ;;  %v5391_v39 = vpop.permute.xlu1 %5390  ;;  %v968_v38 = vld [vmem:[#allocation3 + $0xa9] sm:$0xff] }
 0x13b   : > { %v5396_v61 = vpop.permute.xlu0 %5395  ;;  %2307 = vmatmul.mubr.f32.gmra.mrb[8].mxu0 %v2092_v51  ;;  %2387 = vmatmul.mubr.f32.gmra.mrb[8].mxu1 %v2108_v48  ;;  %v5393_v23 = vunpack.i.h.bf16 %v5391_v39  ;;  %v5392_v35 = vunpack.i.l.bf16 %v5391_v39 }
 0x13c   : > { %4873 = vmatprep.mubr.msk.f32.mxu0 %vm672_vm2, %v967_v4  ;;  %4889 = vmatprep.mubr.msk.f32.mxu1 %vm672_vm2, %v983_v5  ;;  %v5398_v25 = vunpack.i.h.bf16 %v5396_v61  ;;  %v5397_v41 = vunpack.i.l.bf16 %v5396_v61  ;;  %v984_v4 = vld [vmem:[#allocation3 + $0x1a9] sm:$0xff]  ;;  %v1896_v5 = vsel %vm672_vm2, %v7009_v36, %v5132_v58  ;;  %v5213_v58 = vunpack.i.h.bf16 %v7138_v49 }
 0x13d   : > { %v1994_v3 = vsel %vm1988_vm5, %v1961_v46, %v5392_v35  ;;  %v2010_v28 = vsel %vm1988_vm5, %v1977_v37, %v5393_v23  ;;  %v1929_v48 = vsel %vm1922_vm3, %v1896_v5, %v5212_v0  ;;  %v5177_v5 = vunpack.i.l.bf16 %v7104_v34 }
 0x13e   : > { %v5401_v21 = vpop.permute.xlu1 %5400  ;;  %v2027_v32 = vsel %vm2021_vm6, %v1994_v3, %v5397_v41  ;;  %v2043_v13 = vsel %vm2021_vm6, %v2010_v28, %v5398_v25  ;;  %v5173_v3 = vunpack.i.h.bf16 %v7102_v9 }
 0x13f   : > { %v5406_v22 = vpop.permute.xlu0 %5405  ;;  %v5403_v55 = vunpack.i.h.bf16 %v5401_v21  ;;  %v5402_v45 = vunpack.i.l.bf16 %v5401_v21 }
 0x140   : > { %v5408_v19 = vunpack.i.h.bf16 %v5406_v22  ;;  %v5407_v52 = vunpack.i.l.bf16 %v5406_v22  ;;  %v5133_v22 = vunpack.i.h.bf16 %v7070_v29  ;;  %v1913_v7 = vsel %vm672_vm2, %v7028_v56, %v5173_v3 }
 0x141   : > { %v2060_v30 = vsel %vm2054_vm7, %v2027_v32, %v5402_v45  ;;  %v2076_v20 = vsel %vm2054_vm7, %v2043_v13, %v5403_v55  ;;  %v969_v45 = vld [vmem:[#allocation3 + $0xb1] sm:$0xff]  ;;  %v5137_v56 = vunpack.i.l.bf16 %v7072_v59 }
 0x142   : > { %v5411_v42 = vpop.permute.xlu1 %5410  ;;  %v1978_v61 = vsel %vm1955_vm4, %v1945_v33, %v5408_v19  ;;  %v1962_v23 = vsel %vm1955_vm4, %v1929_v48, %v5407_v52  ;;  %v1897_v49 = vsel %vm672_vm2, %v7026_v1, %v5133_v22  ;;  %v1946_v52 = vsel %vm1922_vm3, %v1913_v7, %v5253_v43  ;;  %v971_v7 = vld [vmem:[#allocation3 + $0xd1] sm:$0xff] }
 0x143   : > { %v5416_v40 = vpop.permute.xlu0 %5415  ;;  %v5413_v18 = vunpack.i.h.bf16 %v5411_v42  ;;  %v5412_v11 = vunpack.i.l.bf16 %v5411_v42  ;;  %v1930_v19 = vsel %vm1922_vm3, %v1897_v49, %v5213_v58 }
 0x144   : > { %v5418_v17 = vunpack.i.h.bf16 %v5416_v40  ;;  %v5417_v63 = vunpack.i.l.bf16 %v5416_v40 }
 0x145   : > { %v2093_v12 = vsel %vm2087_vm8, %v2060_v30, %v5412_v11  ;;  %v2109_v51 = vsel %vm2087_vm8, %v2076_v20, %v5413_v18 }
 0x146   : > { %v5421_v14 = vpop.permute.xlu1 %5420  ;;  %2312 = vmatmul.mubr.f32.gmra.mrb[10].mxu0 %v2093_v12  ;;  %2392 = vmatmul.mubr.f32.gmra.mrb[10].mxu1 %v2109_v51  ;;  %v1995_v50 = vsel %vm1988_vm5, %v1962_v23, %v5417_v63  ;;  %v2011_v54 = vsel %vm1988_vm5, %v1978_v61, %v5418_v17  ;;  %v5257_v12 = vunpack.i.l.bf16 %v7178_v24 }
 0x147   : > { %v5426_v39 = vpop.permute.xlu0 %5425  ;;  %v5423_v36 = vunpack.i.h.bf16 %v5421_v14  ;;  %v5422_v35 = vunpack.i.l.bf16 %v5421_v14  ;;  %4874 = vmatprep.mubr.msk.f32.mxu0 %vm672_vm2, %v968_v38  ;;  %4890 = vmatprep.mubr.msk.f32.mxu1 %vm672_vm2, %v984_v4 }
 0x148   : > { %v5428_v6 = vunpack.i.h.bf16 %v5426_v39  ;;  %v5427_v47 = vunpack.i.l.bf16 %v5426_v39 }
 0x149   : > { %v2028_v8 = vsel %vm2021_vm6, %v1995_v50, %v5422_v35  ;;  %v2044_v46 = vsel %vm2021_vm6, %v2011_v54, %v5423_v36 }
 0x14a   : > { %v5431_v37 = vpop.permute.xlu1 %5430  ;;  %v2061_v28 = vsel %vm2054_vm7, %v2028_v8, %v5427_v47  ;;  %v2077_v55 = vsel %vm2054_vm7, %v2044_v46, %v5428_v6  ;;  %v970_v47 = vld [vmem:[#allocation3 + $0xc9] sm:$0xff]  ;;  %v1898_v8 = vsel %vm672_vm2, %v7036_v2, %v5137_v56  ;;  %v1914_v46 = vsel %vm672_vm2, %v7038_v62, %v5177_v5 }
 0x14b   : > { %v5436_v25 = vpop.permute.xlu0 %5435  ;;  %v5433_v42 = vunpack.i.h.bf16 %v5431_v37  ;;  %v5432_v40 = vunpack.i.l.bf16 %v5431_v37  ;;  %v5675_v56 = vld [vmem:[#allocation3 + $0x18f] sm:$0xff] }
 0x14c   : > { %v5438_v41 = vunpack.i.h.bf16 %v5436_v25  ;;  %v5437_v21 = vunpack.i.l.bf16 %v5436_v25 }
 0x14d   : > { %v1963_v18 = vsel %vm1955_vm4, %v1930_v19, %v5432_v40  ;;  %v1979_v11 = vsel %vm1955_vm4, %v1946_v52, %v5433_v42  ;;  %v5178_v19 = vunpack.i.h.bf16 %v7104_v34 }
 0x14e   : > { %v2094_v0 = vsel %vm2087_vm8, %v2061_v28, %v5437_v21  ;;  %v2110_v16 = vsel %vm2087_vm8, %v2077_v55, %v5438_v41  ;;  %v5441_v32 = vpop.permute.xlu1 %5440  ;;  %v1931_v41 = vsel %vm1922_vm3, %v1898_v8, %v5217_v27  ;;  %v1947_v21 = vsel %vm1922_vm3, %v1914_v46, %v5257_v12 }
 0x14f   : > { %v5446_v13 = vpop.permute.xlu0 %5445  ;;  %2317 = vmatmul.mubr.f32.gmra.mrb[12].mxu0 %v2094_v0  ;;  %2397 = vmatmul.mubr.f32.gmra.mrb[12].mxu1 %v2110_v16  ;;  %v5443_v29 = vunpack.i.h.bf16 %v5441_v32  ;;  %v5442_v9 = vunpack.i.l.bf16 %v5441_v32 }
 0x150   : > { %4875 = vmatprep.mubr.msk.f32.mxu0 %vm672_vm2, %v969_v45  ;;  %4891 = vmatprep.mubr.msk.f32.mxu1 %vm672_vm2, %v7117_v57  ;;  %v5448_v17 = vunpack.i.h.bf16 %v5446_v13  ;;  %v5447_v63 = vunpack.i.l.bf16 %v5446_v13 }
 0x151   : > { %v1996_v57 = vsel %vm1988_vm5, %v1963_v18, %v5442_v9  ;;  %v2012_v38 = vsel %vm1988_vm5, %v1979_v11, %v5443_v29  ;;  %v5218_v11 = vunpack.i.h.bf16 %v7140_v10  ;;  %v1915_v10 = vsel %vm672_vm2, %v5675_v56, %v5178_v19 }
 0x152   : > { %v5451_v30 = vpop.permute.xlu1 %5450  ;;  %v2029_v33 = vsel %vm2021_vm6, %v1996_v57, %v5447_v63  ;;  %v2045_v14 = vsel %vm2021_vm6, %v2012_v38, %v5448_v17  ;;  %v5258_v17 = vunpack.i.h.bf16 %v7178_v24  ;;  %v9014_v38 = vld [vmem:[#allocation48_spill] sm:$0xff] }
 0x153   : > { %v5456_v20 = vpop.permute.xlu0 %5455  ;;  %v5453_v1 = vunpack.i.h.bf16 %v5451_v30  ;;  %v5452_v4 = vunpack.i.l.bf16 %v5451_v30 }
 0x154   : > { %v5458_v39 = vunpack.i.h.bf16 %v5456_v20  ;;  %v5457_v61 = vunpack.i.l.bf16 %v5456_v20  ;;  %v1948_v5 = vsel %vm1922_vm3, %v1915_v10, %v5258_v17 }
 0x155   : > { %v2062_v54 = vsel %vm2054_vm7, %v2029_v33, %v5452_v4  ;;  %v2078_v6 = vsel %vm2054_vm7, %v2045_v14, %v5453_v1  ;;  %v5674_v1 = vld [vmem:[#allocation3 + $0x8f] sm:$0xff] }
 0x156   : > { %v5461_v51 = vpop.permute.xlu1 %5460  ;;  %v1964_v28 = vsel %vm1955_vm4, %v1931_v41, %v5457_v61  ;;  %v1980_v55 = vsel %vm1955_vm4, %v1947_v21, %v5458_v39  ;;  %v9016_v21 = vld [vmem:[#allocation42_spill] sm:$0xff] }
 0x157   : > { %v5466_v48 = vpop.permute.xlu0 %5465  ;;  %v5463_v23 = vunpack.i.h.bf16 %v5461_v51  ;;  %v5462_v36 = vunpack.i.l.bf16 %v5461_v51 }
 0x158   : > { %v5468_v35 = vunpack.i.h.bf16 %v5466_v48  ;;  %v5467_v50 = vunpack.i.l.bf16 %v5466_v48 }
 0x159   : > { %v2095_v37 = vsel %vm2087_vm8, %v2062_v54, %v5462_v36  ;;  %v2111_v25 = vsel %vm2087_vm8, %v2078_v6, %v5463_v23 }
 0x15a   : > { %v5471_v22 = vpop.permute.xlu1 %5470  ;;  %2322 = vmatmul.mubr.f32.gmra.mrb[14].mxu0 %v2095_v37  ;;  %2402 = vmatmul.mubr.f32.gmra.mrb[14].mxu1 %v2111_v25  ;;  %v1997_v62 = vsel %vm1988_vm5, %v1964_v28, %v5467_v50  ;;  %v2013_v58 = vsel %vm1988_vm5, %v1980_v55, %v5468_v35  ;;  %v9015_v25 = vld [vmem:[#allocation39_spill] sm:$0xff]  ;;  %v9017_v55 = vld [vmem:[#allocation45_spill] sm:$0xff] }
 0x15b   : > { %v5476_v3 = vpop.permute.xlu0 %5475  ;;  %v5473_v2 = vunpack.i.h.bf16 %v5471_v22  ;;  %v5472_v45 = vunpack.i.l.bf16 %v5471_v22  ;;  %4876 = vmatprep.mubr.msk.f32.mxu0 %vm672_vm2, %v970_v47  ;;  %4892 = vmatprep.mubr.msk.f32.mxu1 %vm672_vm2, %v7144_v31  ;;  %v5138_v31 = vunpack.i.h.bf16 %v7072_v59  ;;  %v5142_v41 = vunpack.i.l.bf16 %v9015_v25 }
 0x15c   : > { %v5478_v43 = vunpack.i.h.bf16 %v5476_v3  ;;  %v5477_v0 = vunpack.i.l.bf16 %v5476_v3  ;;  %v5182_v22 = vunpack.i.l.bf16 %v9016_v21 }
 0x15d   : > { %v2030_v16 = vsel %vm2021_vm6, %v1997_v62, %v5472_v45  ;;  %v2046_v42 = vsel %vm2021_vm6, %v2013_v58, %v5473_v2  ;;  %v1899_v4 = vsel %vm672_vm2, %v5674_v1, %v5138_v31  ;;  %v5222_v2 = vunpack.i.l.bf16 %v9017_v55 }
 0x15e   : > { %v5481_v40 = vpop.permute.xlu1 %5480  ;;  %v2063_v9 = vsel %vm2054_vm7, %v2030_v16, %v5477_v0  ;;  %v2079_v49 = vsel %vm2054_vm7, %v2046_v42, %v5478_v43  ;;  %v1932_v24 = vsel %vm1922_vm3, %v1899_v4, %v5218_v11  ;;  %v9018_v16 = vld [vmem:[#allocation49_spill] sm:$0xff] }
 0x15f   : > { %v5486_v32 = vpop.permute.xlu0 %5485  ;;  %v5483_v20 = vunpack.i.h.bf16 %v5481_v40  ;;  %v5482_v57 = vunpack.i.l.bf16 %v5481_v40 }
 0x160   : > { %v5488_v13 = vunpack.i.h.bf16 %v5486_v32  ;;  %v5487_v29 = vunpack.i.l.bf16 %v5486_v32  ;;  %v5676_v32 = vld [vmem:[#allocation3 + $0xa7] sm:$0xff] }
 0x161   : > { %v1965_v51 = vsel %vm1955_vm4, %v1932_v24, %v5482_v57  ;;  %v1981_v48 = vsel %vm1955_vm4, %v1948_v5, %v5483_v20 }
 0x162   : > { %v2096_v52 = vsel %vm2087_vm8, %v2063_v9, %v5487_v29  ;;  %v2112_v18 = vsel %vm2087_vm8, %v2079_v49, %v5488_v13  ;;  %v5491_v63 = vpop.permute.xlu1 %5490  ;;  %v1900_v13 = vsel %vm672_vm2, %v5676_v32, %v5142_v41  ;;  %v5677_v29 = vld [vmem:[#allocation3 + $0x1a7] sm:$0xff] }
 0x163   : > { %v5496_v30 = vpop.permute.xlu0 %5495  ;;  %2327 = vmatmul.mubr.f32.gmra.mrb[16].mxu0 %v2096_v52  ;;  %2407 = vmatmul.mubr.f32.gmra.mrb[16].mxu1 %v2112_v18  ;;  %v5493_v59 = vunpack.i.h.bf16 %v5491_v63  ;;  %v5492_v34 = vunpack.i.l.bf16 %v5491_v63  ;;  %v1916_v9 = vsel %vm672_vm2, %v5677_v29, %v5182_v22  ;;  %v1933_v49 = vsel %vm1922_vm3, %v1900_v13, %v5222_v2 }
 0x164   : > { %4877 = vmatprep.mubr.msk.f32.mxu0 %vm672_vm2, %v971_v7  ;;  %4893 = vmatprep.mubr.msk.f32.mxu1 %vm672_vm2, %v9014_v38  ;;  %v5498_v33 = vunpack.i.h.bf16 %v5496_v30  ;;  %v5497_v14 = vunpack.i.l.bf16 %v5496_v30 }
 0x165   : > { %v1998_v39 = vsel %vm1988_vm5, %v1965_v51, %v5492_v34  ;;  %v2014_v61 = vsel %vm1988_vm5, %v1981_v48, %v5493_v59  ;;  %v5183_v51 = vunpack.i.h.bf16 %v9016_v21 }
 0x166   : > { %v7467_v27 = vpop.permute.xlu1 %5500  ;;  %v2031_v47 = vsel %vm2021_vm6, %v1998_v39, %v5497_v14  ;;  %v2047_v8 = vsel %vm2021_vm6, %v2014_v61, %v5498_v33  ;;  %v5223_v14 = vunpack.i.h.bf16 %v9017_v55  ;;  %v9019_v61 = vld [vmem:[#allocation50_spill] sm:$0xff] }
 0x167   : > { %v5506_v12 = vpop.permute.xlu0 %5505  ;;  %v5502_v45 = vunpack.i.l.bf16 %v7467_v27  ;;  %v5503_v39 = vunpack.i.h.bf16 %v7467_v27 }
 0x168   : > { %v5508_v23 = vunpack.i.h.bf16 %v5506_v12  ;;  %v5507_v36 = vunpack.i.l.bf16 %v5506_v12  ;;  %v5143_v12 = vunpack.i.h.bf16 %v9015_v25 }
 0x169   : > { %v1949_v7 = vsel %vm1922_vm3, %v1916_v9, %v5502_v45  ;;  %v9021_v45 = vld [vmem:[#allocation40_spill] sm:$0xff] }
 0x16a   : > { %v5511_v35 = vpop.permute.xlu1 %5510  ;;  %v2064_v46 = vsel %vm2054_vm7, %v2031_v47, %v5507_v36  ;;  %v2080_v37 = vsel %vm2054_vm7, %v2047_v8, %v5508_v23  ;;  %v9020_v23 = vld [vmem:[#allocation51_spill] sm:$0xff]  ;;  %v5679_v8 = vld [vmem:[#allocation3 + $0x1af] sm:$0xff] }
 0x16b   : > { %v5516_v50 = vpop.permute.xlu0 %5515  ;;  %v5513_v43 = vunpack.i.h.bf16 %v5511_v35  ;;  %v5512_v0 = vunpack.i.l.bf16 %v5511_v35 }
 0x16c   : > { %v5518_v54 = vunpack.i.h.bf16 %v5516_v50  ;;  %v5517_v6 = vunpack.i.l.bf16 %v5516_v50 }
 0x16d   : > { %v1966_v52 = vsel %vm1955_vm4, %v1933_v49, %v5512_v0  ;;  %v1982_v18 = vsel %vm1955_vm4, %v1949_v7, %v5513_v43 }
 0x16e   : > { %v2097_v3 = vsel %vm2087_vm8, %v2064_v46, %v5517_v6  ;;  %v2113_v28 = vsel %vm2087_vm8, %v2080_v37, %v5518_v54  ;;  %v5521_v62 = vpop.permute.xlu1 %5520  ;;  %v5678_v6 = vld [vmem:[#allocation3 + $0xaf] sm:$0xff]  ;;  %v1917_v46 = vsel %vm672_vm2, %v5679_v8, %v5183_v51 }
 0x16f   : > { %v5526_v58 = vpop.permute.xlu0 %5525  ;;  %2332 = vmatmul.mubr.f32.gmra.mrb[18].mxu0 %v2097_v3  ;;  %2412 = vmatmul.mubr.f32.gmra.mrb[18].mxu1 %v2113_v28  ;;  %v5523_v42 = vunpack.i.h.bf16 %v5521_v62  ;;  %v5522_v40 = vunpack.i.l.bf16 %v5521_v62  ;;  %v1901_v47 = vsel %vm672_vm2, %v5678_v6, %v5143_v12  ;;  %v1950_v22 = vsel %vm1922_vm3, %v1917_v46, %v5503_v39 }
 0x170   : > { %4878 = vmatprep.mubr.msk.f32.mxu0 %vm672_vm2, %v9018_v16  ;;  %4894 = vmatprep.mubr.msk.f32.mxu1 %vm672_vm2, %v7210_v60  ;;  %v5528_v11 = vunpack.i.h.bf16 %v5526_v58  ;;  %v5527_v60 = vunpack.i.l.bf16 %v5526_v58  ;;  %v1934_v21 = vsel %vm1922_vm3, %v1901_v47, %v5223_v14  ;;  %v5147_v62 = vunpack.i.l.bf16 %v9021_v45  ;;  %v9022_v58 = vld [vmem:[#allocation43_spill] sm:$0xff] }
 0x171   : > { %v1999_v17 = vsel %vm1988_vm5, %v1966_v52, %v5522_v40  ;;  %v2015_v63 = vsel %vm1988_vm5, %v1982_v18, %v5523_v42  ;;  %v5187_v43 = vunpack.i.l.bf16 %v9022_v58  ;;  %v9023_v42 = vld [vmem:[#allocation46_spill] sm:$0xff]  ;;  %v5188_v47 = vunpack.i.h.bf16 %v9022_v58 }
 0x172   : > { %v5531_v31 = vpop.permute.xlu1 %5530  ;;  %v2032_v1 = vsel %vm2021_vm6, %v1999_v17, %v5527_v60  ;;  %v2048_v4 = vsel %vm2021_vm6, %v2015_v63, %v5528_v11  ;;  %v5227_v40 = vunpack.i.l.bf16 %v9023_v42  ;;  %v5680_v63 = vld [vmem:[#allocation3 + $0xc7] sm:$0xff] }
 0x173   : > { %v5536_v19 = vpop.permute.xlu0 %5535  ;;  %v5533_v30 = vunpack.i.h.bf16 %v5531_v31  ;;  %v5532_v20 = vunpack.i.l.bf16 %v5531_v31 }
 0x174   : > { %v5538_v36 = vunpack.i.h.bf16 %v5536_v19  ;;  %v5537_v35 = vunpack.i.l.bf16 %v5536_v19 }
 0x175   : > { %v2065_v56 = vsel %vm2054_vm7, %v2032_v1, %v5532_v20  ;;  %v2081_v10 = vsel %vm2054_vm7, %v2048_v4, %v5533_v30  ;;  %v1902_v30 = vsel %vm672_vm2, %v5680_v63, %v5147_v62  ;;  %v5681_v20 = vld [vmem:[#allocation3 + $0x1c7] sm:$0xff] }
 0x176   : > { %v5541_v57 = vpop.permute.xlu1 %5540  ;;  %v1983_v3 = vsel %vm1955_vm4, %v1950_v22, %v5538_v36  ;;  %v1967_v28 = vsel %vm1955_vm4, %v1934_v21, %v5537_v35 }
 0x177   : > { %v5546_v38 = vpop.permute.xlu0 %5545  ;;  %v5543_v59 = vunpack.i.h.bf16 %v5541_v57  ;;  %v5542_v34 = vunpack.i.l.bf16 %v5541_v57  ;;  %v1918_v57 = vsel %vm672_vm2, %v5681_v20, %v5187_v43  ;;  %v976_v20 = vld [vmem:[#allocation3 + $0x129] sm:$0xff] }
 0x178   : > { %v5548_v50 = vunpack.i.h.bf16 %v5546_v38  ;;  %v5547_v54 = vunpack.i.l.bf16 %v5546_v38 }
 0x179   : > { %v2098_v24 = vsel %vm2087_vm8, %v2065_v56, %v5542_v34  ;;  %v2114_v5 = vsel %vm2087_vm8, %v2081_v10, %v5543_v59  ;;  %v1935_v34 = vsel %vm1922_vm3, %v1902_v30, %v5227_v40 }
 0x17a   : > { %v5551_v48 = vpop.permute.xlu1 %5550  ;;  %2337 = vmatmul.mubr.f32.gmra.mrb[20].mxu0 %v2098_v24  ;;  %2417 = vmatmul.mubr.f32.gmra.mrb[20].mxu1 %v2114_v5  ;;  %v2000_v0 = vsel %vm1988_vm5, %v1967_v28, %v5547_v54  ;;  %v2016_v16 = vsel %vm1988_vm5, %v1983_v3, %v5548_v50 }
 0x17b   : > { %v7503_v33 = vpop.permute.xlu0 %5555  ;;  %4879 = vmatprep.mubr.msk.f32.mxu0 %vm672_vm2, %v9019_v61  ;;  %4895 = vmatprep.mubr.msk.f32.mxu1 %vm672_vm2, %v9020_v23  ;;  %v5553_v37 = vunpack.i.h.bf16 %v5551_v48  ;;  %v5552_v25 = vunpack.i.l.bf16 %v5551_v48 }
 0x17c   : > { %v5557_v32 = vunpack.i.l.bf16 %v7503_v33 }
 0x17d   : > { %v2033_v9 = vsel %vm2021_vm6, %v2000_v0, %v5552_v25  ;;  %v2049_v49 = vsel %vm2021_vm6, %v2016_v16, %v5553_v37  ;;  %v5228_v37 = vunpack.i.h.bf16 %v9023_v42  ;;  %v5558_v25 = vunpack.i.h.bf16 %v7503_v33 }
 0x17e   : > { %v5561_v41 = vpop.permute.xlu1 %5560  ;;  %v1951_v1 = vsel %vm1922_vm3, %v1918_v57, %v5557_v32  ;;  %v992_v57 = vld [vmem:[#allocation3 + $0x229] sm:$0xff] }
 0x17f   : > { %v5566_v27 = vpop.permute.xlu0 %5565  ;;  %v5563_v55 = vunpack.i.h.bf16 %v5561_v41  ;;  %v5562_v2 = vunpack.i.l.bf16 %v5561_v41 }
 0x180   : > { %v5568_v7 = vunpack.i.h.bf16 %v5566_v27  ;;  %v5567_v31 = vunpack.i.l.bf16 %v5566_v27 }
 0x181   : > { %v2066_v60 = vsel %vm2054_vm7, %v2033_v9, %v5562_v2  ;;  %v2082_v17 = vsel %vm2054_vm7, %v2049_v49, %v5563_v55  ;;  %v5682_v55 = vld [vmem:[#allocation3 + $0xcf] sm:$0xff] }
 0x182   : > { %v5571_v13 = vpop.permute.xlu1 %5570  ;;  %v1968_v10 = vsel %vm1955_vm4, %v1935_v34, %v5567_v31  ;;  %v1984_v24 = vsel %vm1955_vm4, %v1951_v1, %v5568_v7 }
 0x183   : > { %v5576_v29 = vpop.permute.xlu0 %5575  ;;  %v5573_v19 = vunpack.i.h.bf16 %v5571_v13  ;;  %v5572_v52 = vunpack.i.l.bf16 %v5571_v13 }
 0x184   : > { %v5578_v18 = vunpack.i.h.bf16 %v5576_v29  ;;  %v5577_v11 = vunpack.i.l.bf16 %v5576_v29 }
 0x185   : > { %v2099_v38 = vsel %vm2087_vm8, %v2066_v60, %v5572_v52  ;;  %v2115_v59 = vsel %vm2087_vm8, %v2082_v17, %v5573_v19  ;;  %v9025_v60 = vld [vmem:[#allocation44_spill] sm:$0xff] }
 0x186   : > { %2342 = vmatmul.mubr.f32.gmra.mrb[22].mxu0 %v2099_v38  ;;  %2422 = vmatmul.mubr.f32.gmra.mrb[22].mxu1 %v2115_v59  ;;  %v2001_v51 = vsel %vm1988_vm5, %v1968_v10, %v5577_v11  ;;  %v2017_v48 = vsel %vm1988_vm5, %v1984_v24, %v5578_v18  ;;  %v9024_v18 = vld [vmem:[#allocation41_spill] sm:$0xff]  ;;  %v5192_v17 = vunpack.i.l.bf16 %v9025_v60  ;;  %v9026_v38 = vld [vmem:[#allocation47_spill] sm:$0xff] }
 0x187   : > { %v5581_v4 = vpop.permute.xlu1 %5580  ;;  %v5586_v56 = vpop.permute.xlu0 %5585  ;;  %4880 = vmatprep.mubr.msk.f32.mxu0 %vm672_vm2, %v7288_v15  ;;  %4896 = vmatprep.mubr.msk.f32.mxu1 %vm672_vm2, %v7290_v44  ;;  %v5148_v44 = vunpack.i.h.bf16 %v9021_v45  ;;  %v5683_v45 = vld [vmem:[#allocation3 + $0x1cf] sm:$0xff]  ;;  %v5152_v11 = vunpack.i.l.bf16 %v9024_v18  ;;  %v5232_v59 = vunpack.i.l.bf16 %v9026_v38 }
 0x188   : > { %v5583_v5 = vunpack.i.h.bf16 %v5581_v4  ;;  %v5582_v12 = vunpack.i.l.bf16 %v5581_v4  ;;  %v5588_v14 = vunpack.i.h.bf16 %v5586_v56  ;;  %v5587_v39 = vunpack.i.l.bf16 %v5586_v56 }
 0x189   : > { %v1903_v2 = vsel %vm672_vm2, %v5682_v55, %v5148_v44  ;;  %v1919_v33 = vsel %vm672_vm2, %v5683_v45, %v5188_v47 }
 0x18a   : > { %v2034_v61 = vsel %vm2021_vm6, %v2001_v51, %v5582_v12  ;;  %v2050_v23 = vsel %vm2021_vm6, %v2017_v48, %v5583_v5  ;;  %v1936_v62 = vsel %vm1922_vm3, %v1903_v2, %v5228_v37  ;;  %v1952_v58 = vsel %vm1922_vm3, %v1919_v33, %v5558_v25  ;;  %v5684_v48 = vld [vmem:[#allocation3 + $0xe7] sm:$0xff] }
 0x18b   : > { %v5591_v36 = vpop.permute.xlu1 %5590  ;;  %v5596_v35 = vpop.permute.xlu0 %5595  ;;  %v2067_v6 = vsel %vm2054_vm7, %v2034_v61, %v5587_v39  ;;  %v2083_v15 = vsel %vm2054_vm7, %v2050_v23, %v5588_v14  ;;  %v1904_v14 = vsel %vm672_vm2, %v5684_v48, %v5152_v11  ;;  %v5685_v39 = vld [vmem:[#allocation3 + $0x1e7] sm:$0xff]  ;;  %v5153_v25 = vunpack.i.h.bf16 %v9024_v18 }
 0x18c   : > { %v5598_v50 = vunpack.i.h.bf16 %v5596_v35  ;;  %v5597_v54 = vunpack.i.l.bf16 %v5596_v35  ;;  %v5593_v21 = vunpack.i.h.bf16 %v5591_v36  ;;  %v5592_v22 = vunpack.i.l.bf16 %v5591_v36 }
 0x18d   : > { %v1920_v61 = vsel %vm672_vm2, %v5685_v39, %v5192_v17  ;;  %v1937_v23 = vsel %vm1922_vm3, %v1904_v14, %v5232_v59 }
 0x18e   : > { %v2100_v8 = vsel %vm2087_vm8, %v2067_v6, %v5597_v54  ;;  %v2116_v46 = vsel %vm2087_vm8, %v2083_v15, %v5598_v50  ;;  %v1985_v16 = vsel %vm1955_vm4, %v1952_v58, %v5593_v21 }
 0x18f   : > { %v5601_v41 = vpop.permute.xlu1 %5600  ;;  %v5606_v27 = vpop.permute.xlu0 %5605  ;;  %2347 = vmatmul.mubr.f32.gmra.mrb[24].mxu0 %v2100_v8  ;;  %2427 = vmatmul.mubr.f32.gmra.mrb[24].mxu1 %v2116_v46 }
 0x190   : > { %4881 = vmatprep.mubr.msk.f32.mxu0 %vm672_vm2, %v7319_v26  ;;  %4897 = vmatprep.mubr.msk.f32.mxu1 %vm672_vm2, %v7323_v53  ;;  %v5603_v3 = vunpack.i.h.bf16 %v5601_v41  ;;  %v5602_v28 = vunpack.i.l.bf16 %v5601_v41  ;;  %v1969_v26 = vsel %vm1955_vm4, %v1936_v62, %v5592_v22  ;;  %v5608_v53 = vunpack.i.h.bf16 %v5606_v27 }
 0x191   : > { %v5607_v42 = vunpack.i.l.bf16 %v5606_v27  ;;  %v5193_v41 = vunpack.i.h.bf16 %v9025_v60  ;;  %v5233_v27 = vunpack.i.h.bf16 %v9026_v38 }
 0x192   : > { %v2002_v40 = vsel %vm1988_vm5, %v1969_v26, %v5602_v28  ;;  %v2018_v32 = vsel %vm1988_vm5, %v1985_v16, %v5603_v3 }
 0x193   : > { %v7559_v43 = vpop.permute.xlu1 %5610  ;;  %v5616_v0 = vpop.permute.xlu0 %5615  ;;  %v2035_v19 = vsel %vm2021_vm6, %v2002_v40, %v5607_v42  ;;  %v2051_v52 = vsel %vm2021_vm6, %v2018_v32, %v5608_v53  ;;  %v977_v53 = vld [vmem:[#allocation3 + $0x131] sm:$0xff] }
 0x194   : > { %v5618_v13 = vunpack.i.h.bf16 %v5616_v0  ;;  %v5617_v29 = vunpack.i.l.bf16 %v5616_v0  ;;  %v5612_v34 = vunpack.i.l.bf16 %v7559_v43  ;;  %v5613_v21 = vunpack.i.h.bf16 %v7559_v43  ;;  %v993_v42 = vld [vmem:[#allocation3 + $0x231] sm:$0xff] }
 0x195   : > { %v5686_v40 = vld [vmem:[#allocation3 + $0xef] sm:$0xff] }
 0x196   : > { %v2068_v63 = vsel %vm2054_vm7, %v2035_v19, %v5617_v29  ;;  %v2084_v30 = vsel %vm2054_vm7, %v2051_v52, %v5618_v13  ;;  %v1953_v36 = vsel %vm1922_vm3, %v1920_v61, %v5612_v34  ;;  %v1905_v43 = vsel %vm672_vm2, %v5686_v40, %v5153_v25  ;;  %v5687_v32 = vld [vmem:[#allocation3 + $0x1ef] sm:$0xff] }
 0x197   : > { %v5621_v9 = vpop.permute.xlu1 %5620  ;;  %v5626_v49 = vpop.permute.xlu0 %5625  ;;  %v1921_v13 = vsel %vm672_vm2, %v5687_v32, %v5193_v41 }
 0x198   : > { %v5628_v7 = vunpack.i.h.bf16 %v5626_v49  ;;  %v5627_v31 = vunpack.i.l.bf16 %v5626_v49  ;;  %v5623_v56 = vunpack.i.h.bf16 %v5621_v9  ;;  %v5622_v10 = vunpack.i.l.bf16 %v5621_v9 }
 0x199   : > { %v1938_v49 = vsel %vm1922_vm3, %v1905_v43, %v5233_v27 }
 0x19a   : > { %v2101_v1 = vsel %vm2087_vm8, %v2068_v63, %v5627_v31  ;;  %v2117_v4 = vsel %vm2087_vm8, %v2084_v30, %v5628_v7  ;;  %v1970_v35 = vsel %vm1955_vm4, %v1937_v23, %v5622_v10  ;;  %v1986_v50 = vsel %vm1955_vm4, %v1953_v36, %v5623_v56 }
 0x19b   : > { %v5631_v24 = vpop.permute.xlu1 %5630  ;;  %v5636_v5 = vpop.permute.xlu0 %5635  ;;  %2352 = vmatmul.mubr.f32.gmra.mrb[26].mxu0 %v2101_v1  ;;  %2432 = vmatmul.mubr.f32.gmra.mrb[26].mxu1 %v2117_v4  ;;  %v1954_v7 = vsel %vm1922_vm3, %v1921_v13, %v5613_v21 }
 0x19c   : > { %v5633_v12 = vunpack.i.h.bf16 %v5631_v24  ;;  %v5632_v51 = vunpack.i.l.bf16 %v5631_v24  ;;  %4882 = vmatprep.mubr.msk.f32.mxu0 %vm672_vm2, %v976_v20  ;;  %4898 = vmatprep.mubr.msk.f32.mxu1 %vm672_vm2, %v992_v57  ;;  %v5638_v54 = vunpack.i.h.bf16 %v5636_v5  ;;  %v5637_v6 = vunpack.i.l.bf16 %v5636_v5  ;;  %v7616_v5 = vld [vmem:[%s9027_s26] ss:$0 sm:$0xff] }
 0x19e   : > { %v2003_v47 = vsel %vm1988_vm5, %v1970_v35, %v5632_v51  ;;  %v2019_v8 = vsel %vm1988_vm5, %v1986_v50, %v5633_v12 }
 0x19f   : > { %v5641_v15 = vpop.permute.xlu1 %5640  ;;  %v5646_v44 = vpop.permute.xlu0 %5645  ;;  %v2036_v28 = vsel %vm2021_vm6, %v2003_v47, %v5637_v6  ;;  %v2052_v55 = vsel %vm2021_vm6, %v2019_v8, %v5638_v54 }
 0x1a0   : > { %v5643_v46 = vunpack.i.h.bf16 %v5641_v15  ;;  %v5642_v37 = vunpack.i.l.bf16 %v5641_v15  ;;  %v5648_v2 = vunpack.i.h.bf16 %v5646_v44  ;;  %v5647_v45 = vunpack.i.l.bf16 %v5646_v44 }
 0x1a2   : > { %v2069_v26 = vsel %vm2054_vm7, %v2036_v28, %v5642_v37  ;;  %v2085_v16 = vsel %vm2054_vm7, %v2052_v55, %v5643_v46  ;;  %v1987_v52 = vsel %vm1955_vm4, %v1954_v7, %v5648_v2  ;;  %v1971_v18 = vsel %vm1955_vm4, %v1938_v49, %v5647_v45 }
 0x1a3   : > { %v5651_v22 = vpop.permute.xlu1 %5650  ;;  %v5656_v3 = vpop.permute.xlu0 %5655 }
 0x1a4   : > { %v5653_v33 = vunpack.i.h.bf16 %v5651_v22  ;;  %v5652_v62 = vunpack.i.l.bf16 %v5651_v22  ;;  %v5658_v58 = vunpack.i.h.bf16 %v5656_v3  ;;  %v5657_v0 = vunpack.i.l.bf16 %v5656_v3 }
 0x1a6   : > { %v2102_v29 = vsel %vm2087_vm8, %v2069_v26, %v5652_v62  ;;  %v2118_v9 = vsel %vm2087_vm8, %v2085_v16, %v5653_v33  ;;  %v2004_v17 = vsel %vm1988_vm5, %v1971_v18, %v5657_v0  ;;  %v2020_v63 = vsel %vm1988_vm5, %v1987_v52, %v5658_v58 }
 0x1a7   : > { %v5661_v31 = vpop.permute.xlu1 %5660  ;;  %2357 = vmatmul.mubr.f32.gmra.mrb[28].mxu0 %v2102_v29  ;;  %2437 = vmatmul.mubr.f32.gmra.mrb[28].mxu1 %v2118_v9  ;;  %v5666_v19 = vpop.permute.xlu0 %5665 }
 0x1a8   : > { %v5663_v11 = vunpack.i.h.bf16 %v5661_v31  ;;  %v5662_v60 = vunpack.i.l.bf16 %v5661_v31  ;;  %4883 = vmatprep.mubr.msk.f32.mxu0 %vm672_vm2, %v977_v53  ;;  %4899 = vmatprep.mubr.msk.f32.mxu1 %vm672_vm2, %v993_v42  ;;  %v5668_v30 = vunpack.i.h.bf16 %v5666_v19  ;;  %v5667_v20 = vunpack.i.l.bf16 %v5666_v19 }
 0x1aa   : > { %v2037_v57 = vsel %vm2021_vm6, %v2004_v17, %v5662_v60  ;;  %v2053_v38 = vsel %vm2021_vm6, %v2020_v63, %v5663_v11 }
 0x1ab   : > { %v5671_v59 = vpop.permute.xlu1 %5670  ;;  %v2070_v4 = vsel %vm2054_vm7, %v2037_v57, %v5667_v20  ;;  %v2086_v56 = vsel %vm2054_vm7, %v2053_v38, %v5668_v30 }
 0x1ac   : > { %v5673_v34 = vunpack.i.h.bf16 %v5671_v59  ;;  %v5672_v1 = vunpack.i.l.bf16 %v5671_v59 }
 0x1ae   : > { %v2103_v10 = vsel %vm2087_vm8, %v2070_v4, %v5672_v1  ;;  %v2119_v24 = vsel %vm2087_vm8, %v2086_v56, %v5673_v34 }
 0x1af   : > { %2362 = vmatmul.mubr.f32.gmra.mrb[30].mxu0 %v2103_v10  ;;  %2442 = vmatmul.mubr.f32.gmra.mrb[30].mxu1 %v2119_v24 }
 0x1e6   : > { %v2288_v12 = vpop.f32.mrb[0].mxu0  ;;  %v2368_v51 = vpop.f32.mrb[0].mxu1 }
 0x1e7   : > { %v7619_v48 = vadd.f32 %v7616_v5, %v2288_v12  ;;  %v7622_v14 = vadd.f32 %v7616_v5, %v2368_v51  ;;  %v2290_v39 = vpop.f32.mrb[1].mxu0  ;;  %v2370_v61 = vpop.f32.mrb[1].mxu1 }
 0x1e9   : > { %9028 = vst [vmem:[#allocation48_spill] sm:$0xff] %v7622_v14 }
 0x1f1   : > { %v2293_v23 = vpop.f32.mrb[2].mxu0  ;;  %v2373_v36 = vpop.f32.mrb[2].mxu1 }
 0x1f2   : > { %v7625_v35 = vadd.f32 %v7616_v5, %v2293_v23  ;;  %v7628_v50 = vadd.f32 %v7616_v5, %v2373_v36  ;;  %v2295_v54 = vpop.f32.mrb[3].mxu0  ;;  %v2375_v6 = vpop.f32.mrb[3].mxu1 }
 0x1f4   : > { %9029 = vst [vmem:[#allocation39_spill] sm:$0xff] %v7628_v50 }
 0x1fa   : > { %v2298_v15 = vpop.f32.mrb[4].mxu0  ;;  %v2378_v44 = vpop.f32.mrb[4].mxu1 }
 0x1fb   : > { %v7631_v47 = vadd.f32 %v7616_v5, %v2298_v15  ;;  %v7634_v8 = vadd.f32 %v7616_v5, %v2378_v44  ;;  %v2300_v46 = vpop.f32.mrb[5].mxu0  ;;  %v2380_v37 = vpop.f32.mrb[5].mxu1 }
 0x1fd   : > { %9030 = vst [vmem:[#allocation42_spill] sm:$0xff] %v7634_v8 }
 0x205   : > { %v2303_v25 = vpop.f32.mrb[6].mxu0  ;;  %v2383_v41 = vpop.f32.mrb[6].mxu1 }
 0x206   : > { %v7637_v27 = vadd.f32 %v7616_v5, %v2303_v25  ;;  %v7640_v21 = vadd.f32 %v7616_v5, %v2383_v41  ;;  %v2305_v22 = vpop.f32.mrb[7].mxu0  ;;  %v2385_v3 = vpop.f32.mrb[7].mxu1 }
 0x208   : > { %9031 = vst [vmem:[#allocation45_spill] sm:$0xff] %v7640_v21 }
 0x20e   : > { %v2308_v28 = vpop.f32.mrb[8].mxu0  ;;  %v2388_v55 = vpop.f32.mrb[8].mxu1 }
 0x20f   : > { %v7643_v2 = vadd.f32 %v7616_v5, %v2308_v28  ;;  %v7646_v45 = vadd.f32 %v7616_v5, %v2388_v55  ;;  %v2310_v33 = vpop.f32.mrb[9].mxu0  ;;  %v2390_v62 = vpop.f32.mrb[9].mxu1 }
 0x211   : > { %9032 = vst [vmem:[#allocation49_spill] sm:$0xff] %v7646_v45 }
 0x219   : > { %v2313_v58 = vpop.f32.mrb[10].mxu0  ;;  %v2393_v0 = vpop.f32.mrb[10].mxu1 }
 0x21a   : > { %v7649_v26 = vadd.f32 %v7616_v5, %v2313_v58  ;;  %v7652_v16 = vadd.f32 %v7616_v5, %v2393_v0  ;;  %v2315_v53 = vpop.f32.mrb[11].mxu0  ;;  %v2395_v42 = vpop.f32.mrb[11].mxu1 }
 0x21c   : > { %9033 = vst [vmem:[#allocation50_spill] sm:$0xff] %v7652_v16 }
 0x222   : > { %v2318_v40 = vpop.f32.mrb[12].mxu0  ;;  %v2398_v43 = vpop.f32.mrb[12].mxu1 }
 0x223   : > { %v7655_v32 = vadd.f32 %v7616_v5, %v2318_v40  ;;  %v7658_v13 = vadd.f32 %v7616_v5, %v2398_v43  ;;  %v2320_v29 = vpop.f32.mrb[13].mxu0  ;;  %v2400_v9 = vpop.f32.mrb[13].mxu1 }
 0x225   : > { %9034 = vst [vmem:[#allocation51_spill] sm:$0xff] %v7658_v13 }
 0x22d   : > { %v2323_v49 = vpop.f32.mrb[14].mxu0  ;;  %v2403_v7 = vpop.f32.mrb[14].mxu1 }
 0x22e   : > { %v7661_v31 = vadd.f32 %v7616_v5, %v2323_v49  ;;  %v7664_v19 = vadd.f32 %v7616_v5, %v2403_v7  ;;  %v2325_v52 = vpop.f32.mrb[15].mxu0  ;;  %v2405_v18 = vpop.f32.mrb[15].mxu1 }
 0x230   : > { %9035 = vst [vmem:[#allocation40_spill] sm:$0xff] %v7664_v19 }
 0x236   : > { %v2328_v11 = vpop.f32.mrb[16].mxu0  ;;  %v2408_v60 = vpop.f32.mrb[16].mxu1 }
 0x237   : > { %v7667_v17 = vadd.f32 %v7616_v5, %v2328_v11  ;;  %v7670_v63 = vadd.f32 %v7616_v5, %v2408_v60  ;;  %v2330_v30 = vpop.f32.mrb[17].mxu0  ;;  %v2410_v20 = vpop.f32.mrb[17].mxu1  ;;  %v2566_v60 = vld [vmem:[#allocation3 + $0x8] sm:$0xff] (!%p4900_p8) }
 0x238   : > { %v2567_v30 = vld [vmem:[#allocation3 + $0x10] sm:$0xff] (!%p4900_p8) }
 0x239   : > { %9036 = vst [vmem:[#allocation43_spill] sm:$0xff] %v7670_v63  ;;  %v2598_v20 = vld [vmem:[#allocation3 + $0x9] sm:$0xff] (!%p4900_p8) }
 0x242   : > { %v2333_v57 = vpop.f32.mrb[18].mxu0  ;;  %v2413_v38 = vpop.f32.mrb[18].mxu1 }
 0x243   : > { %v7673_v59 = vadd.f32 %v7616_v5, %v2333_v57  ;;  %v7676_v34 = vadd.f32 %v7616_v5, %v2413_v38  ;;  %v2335_v1 = vpop.f32.mrb[19].mxu0  ;;  %v2415_v4 = vpop.f32.mrb[19].mxu1  ;;  %v2451_v57 = vmax.f32 (!%p4900_p8), %v7619_v48, 0.0  ;;  %v5688_v38 = vpack.i.bf16 (!%p4900_p8), %v2567_v30, %v2566_v60 }
 0x244   : > { %v2599_v1 = vld [vmem:[#allocation3 + $0x11] sm:$0xff] (!%p4900_p8)  ;;  %v2452_v4 = vmax.f32 (!%p4900_p8), %v7625_v35, 0.0  ;;  %v2472_v30 = vmax.f32 (!%p4900_p8), %v7652_v16, 0.0 }
 0x245   : > { %9037 = vst [vmem:[#allocation46_spill] sm:$0xff] %v7676_v34  ;;  %2502 = vst.msk [vmem:[#allocation3 + $0x28] sm:$0xff] (!%p4900_p8), %vm672_vm2, %v2451_v57  ;;  %5689 = vrot.lane.b32.xlu0 (!%p4900_p8), %v5688_v38, %s6286_s28  ;;  %v2487_v57 = vld [vmem:[%s6404_s18 + $0x20] sm:$0xff] (!%p4900_p8)  ;;  %v2473_v38 = vmax.f32 (!%p4900_p8), %v7658_v13, 0.0 }
 0x246   : > { %2503 = vst.msk [vmem:[#allocation3 + $0x30] sm:$0xff] (!%p4900_p8), %vm672_vm2, %v2452_v4  ;;  %2523 = vst.msk [vmem:[#allocation3 + $0x170] sm:$0xff] (!%p4900_p8), %vm672_vm2, %v2472_v30 }
 0x247   : > { %2524 = vst.msk [vmem:[#allocation3 + $0x188] sm:$0xff] (!%p4900_p8), %vm672_vm2, %v2473_v38 }
 0x24c   : > { %v7768_v4 = vld [vmem:[#allocation3 + $0x27] sm:$0xff] (!%p4900_p8) }
 0x24d   : > { %v2338_v56 = vpop.f32.mrb[20].mxu0  ;;  %v2418_v10 = vpop.f32.mrb[20].mxu1 }
 0x24e   : > { %v7679_v24 = vadd.f32 %v7616_v5, %v2338_v56  ;;  %v7682_v12 = vadd.f32 %v7616_v5, %v2418_v10  ;;  %v2340_v51 = vpop.f32.mrb[21].mxu0  ;;  %v2420_v39 = vpop.f32.mrb[21].mxu1  ;;  %v2453_v56 = vmax.f32 (!%p4900_p8), %v7631_v47, 0.0  ;;  %v5693_v10 = vpack.i.bf16 (!%p4900_p8), %v2599_v1, %v2598_v20 }
 0x24f   : > { %v2455_v51 = vmax.f32 (!%p4900_p8), %v7643_v2, 0.0  ;;  %v2456_v39 = vmax.f32 (!%p4900_p8), %v7649_v26, 0.0  ;;  %v2474_v1 = vmax.f32 (!%p4900_p8), %v7664_v19, 0.0 }
 0x250   : > { %9038 = vst [vmem:[#allocation41_spill] sm:$0xff] %v7682_v12  ;;  %2504 = vst.msk [vmem:[#allocation3 + $0x48] sm:$0xff] (!%p4900_p8), %vm672_vm2, %v2453_v56  ;;  %5694 = vrot.lane.b32.xlu0 (!%p4900_p8), %v5693_v10, %s6288_s14  ;;  %v2662_v56 = vld [vmem:[#allocation3 + $0x28] sm:$0xff] (!%p4900_p8) }
 0x251   : > { %2506 = vst.msk [vmem:[#allocation3 + $0x68] sm:$0xff] (!%p4900_p8), %vm672_vm2, %v2455_v51  ;;  %2507 = vst.msk [vmem:[#allocation3 + $0x70] sm:$0xff] (!%p4900_p8), %vm672_vm2, %v2456_v39  ;;  %v2694_v10 = vld [vmem:[#allocation3 + $0x29] sm:$0xff] (!%p4900_p8)  ;;  %v2695_v51 = vld [vmem:[#allocation3 + $0x31] sm:$0xff] (!%p4900_p8) }
 0x252   : > { %v7775_v39 = vld [vmem:[#allocation3 + $0x2f] sm:$0xff] (!%p4900_p8)  ;;  %2525 = vst.msk [vmem:[#allocation3 + $0x190] sm:$0xff] (!%p4900_p8), %vm672_vm2, %v2474_v1  ;;  %v2495_v1 = vld [vmem:[%s6404_s18 + $0x60] sm:$0xff] (!%p4900_p8) }
 0x258   : > { %v7804_v30 = vld [vmem:[#allocation3 + $0x67] sm:$0xff] (!%p4900_p8) }
 0x259   : > { %v2343_v61 = vpop.f32.mrb[22].mxu0  ;;  %v2423_v23 = vpop.f32.mrb[22].mxu1 }
 0x25a   : > { %v7685_v36 = vadd.f32 %v7616_v5, %v2343_v61  ;;  %v7688_v54 = vadd.f32 %v7616_v5, %v2423_v23  ;;  %v2345_v6 = vpop.f32.mrb[23].mxu0  ;;  %v2425_v15 = vpop.f32.mrb[23].mxu1  ;;  %v2457_v61 = vmax.f32 (!%p4900_p8), %v7655_v32, 0.0  ;;  %v2458_v23 = vmax.f32 (!%p4900_p8), %v7661_v31, 0.0 }
 0x25b   : > { %v2459_v6 = vmax.f32 (!%p4900_p8), %v7667_v17, 0.0  ;;  %v2460_v15 = vmax.f32 (!%p4900_p8), %v7673_v59, 0.0 }
 0x25c   : > { %9039 = vst [vmem:[#allocation44_spill] sm:$0xff] %v7685_v36  ;;  %9040 = vst [vmem:[#allocation47_spill] sm:$0xff] %v7688_v54 }
 0x25d   : > { %2508 = vst.msk [vmem:[#allocation3 + $0x88] sm:$0xff] (!%p4900_p8), %vm672_vm2, %v2457_v61  ;;  %2509 = vst.msk [vmem:[#allocation3 + $0x90] sm:$0xff] (!%p4900_p8), %vm672_vm2, %v2458_v23  ;;  %v5708_v61 = vpack.i.bf16 (!%p4900_p8), %v2695_v51, %v2694_v10  ;;  %v5698_v23 = vpack.i.bf16 (!%p4900_p8), %v7775_v39, %v7768_v4 }
 0x25e   : > { %2510 = vst.msk [vmem:[#allocation3 + $0xa8] sm:$0xff] (!%p4900_p8), %vm672_vm2, %v2459_v6  ;;  %2511 = vst.msk [vmem:[#allocation3 + $0xb0] sm:$0xff] (!%p4900_p8), %vm672_vm2, %v2460_v15  ;;  %v2758_v6 = vld [vmem:[#allocation3 + $0x48] sm:$0xff] (!%p4900_p8) }
 0x25f   : > { %5709 = vrot.lane.b32.xlu0 (!%p4900_p8), %v5708_v61, %s6289_s10  ;;  %5699 = vrot.lane.b32.xlu1 (!%p4900_p8), %v5698_v23, %s6290_s1  ;;  %v2497_v23 = vld [vmem:[%s6404_s18 + $0x70] sm:$0xff] (!%p4900_p8) }
 0x262   : > { %v2348_v44 = vpop.f32.mrb[24].mxu0  ;;  %v2428_v46 = vpop.f32.mrb[24].mxu1 }
 0x263   : > { %v7691_v37 = vadd.f32 %v7616_v5, %v2348_v44  ;;  %v7694_v25 = vadd.f32 %v7616_v5, %v2428_v46  ;;  %v2350_v41 = vpop.f32.mrb[25].mxu0  ;;  %v2430_v22 = vpop.f32.mrb[25].mxu1  ;;  %v2483_v46 = vld [vmem:[%s6404_s18] sm:$0xff] (!%p4900_p8) }
 0x264   : > { %v2484_v41 = vld [vmem:[%s6404_s18 + $0x8] sm:$0xff] (!%p4900_p8)  ;;  %v2461_v22 = vmax.f32 (!%p4900_p8), %v7679_v24, 0.0 }
 0x265   : > { %9041 = vst [vmem:[#allocation52_spill] sm:$0xff] %v7691_v37  ;;  %9042 = vst [vmem:[#allocation53_spill] sm:$0xff] %v7694_v25 }
 0x266   : > { %2512 = vst.msk [vmem:[#allocation3 + $0xc8] sm:$0xff] (!%p4900_p8), %vm672_vm2, %v2461_v22 }
 0x26e   : > { %v2353_v3 = vpop.f32.mrb[26].mxu0  ;;  %v2433_v28 = vpop.f32.mrb[26].mxu1 }
 0x26f   : > { %v7697_v55 = vadd.f32 %v7616_v5, %v2353_v3  ;;  %v7700_v33 = vadd.f32 %v7616_v5, %v2433_v28  ;;  %v2355_v62 = vpop.f32.mrb[27].mxu0  ;;  %v2435_v58 = vpop.f32.mrb[27].mxu1  ;;  %v2462_v3 = vmax.f32 (!%p4900_p8), %v7685_v36, 0.0  ;;  %v2468_v28 = vmax.f32 (!%p4900_p8), %v7628_v50, 0.0 }
 0x270   : > { %v2467_v62 = vmax.f32 (!%p4900_p8), %v7622_v14, 0.0  ;;  %v2463_v58 = vmax.f32 (!%p4900_p8), %v7691_v37, 0.0 }
 0x271   : > { %9043 = vst [vmem:[#allocation54_spill] sm:$0xff] %v7697_v55  ;;  %9044 = vst [vmem:[#allocation55_spill] sm:$0xff] %v7700_v33 }
 0x272   : > { %2513 = vst.msk [vmem:[#allocation3 + $0xd0] sm:$0xff] (!%p4900_p8), %vm672_vm2, %v2462_v3  ;;  %2519 = vst.msk [vmem:[#allocation3 + $0x130] sm:$0xff] (!%p4900_p8), %vm672_vm2, %v2468_v28  ;;  %v2489_v28 = vld [vmem:[%s6404_s18 + $0x30] sm:$0xff] (!%p4900_p8) }
 0x273   : > { %2518 = vst.msk [vmem:[#allocation3 + $0x128] sm:$0xff] (!%p4900_p8), %vm672_vm2, %v2467_v62  ;;  %2514 = vst.msk [vmem:[#allocation3 + $0xe8] sm:$0xff] (!%p4900_p8), %vm672_vm2, %v2463_v58  ;;  %v2490_v62 = vld [vmem:[%s6404_s18 + $0x38] sm:$0xff] (!%p4900_p8)  ;;  %v7785_v58 = vld [vmem:[#allocation3 + $0x47] sm:$0xff] (!%p4900_p8) }
 0x27a   : > { %v2358_v0 = vpop.f32.mrb[28].mxu0  ;;  %v2438_v53 = vpop.f32.mrb[28].mxu1 }
 0x27b   : > { %v7703_v42 = vadd.f32 %v7616_v5, %v2358_v0  ;;  %v7706_v40 = vadd.f32 %v7616_v5, %v2438_v53  ;;  %v2360_v43 = vpop.f32.mrb[29].mxu0  ;;  %v2440_v29 = vpop.f32.mrb[29].mxu1  ;;  %v2469_v0 = vmax.f32 (!%p4900_p8), %v7634_v8, 0.0  ;;  %v2470_v53 = vmax.f32 (!%p4900_p8), %v7640_v21, 0.0  ;;  %v2746_v8 = vld [vmem:[#allocation3 + $0x187] sm:$0xff] (!%p4900_p8) }
 0x27c   : > { %v2485_v43 = vld [vmem:[%s6404_s18 + $0x10] sm:$0xff] (!%p4900_p8)  ;;  %v2486_v29 = vld [vmem:[%s6404_s18 + $0x18] sm:$0xff] (!%p4900_p8) }
 0x27d   : > { %9045 = vst [vmem:[#allocation56_spill] sm:$0xff] %v7703_v42  ;;  %9046 = vst [vmem:[#allocation57_spill] sm:$0xff] %v7706_v40  ;;  %v2465_v60 = vmax.f32 (!%p4900_p8), %v7703_v42, 0.0  ;;  %v4992_v20 = vpack.c.bf16 (!%p4900_p8), %v2486_v29, %v2485_v43  ;;  %v2491_v29 = vld [vmem:[%s6404_s18 + $0x40] sm:$0xff] (!%p4900_p8) }
 0x27e   : > { %2520 = vst.msk [vmem:[#allocation3 + $0x148] sm:$0xff] (!%p4900_p8), %vm672_vm2, %v2469_v0  ;;  %2521 = vst.msk [vmem:[#allocation3 + $0x150] sm:$0xff] (!%p4900_p8), %vm672_vm2, %v2470_v53  ;;  %v4998_v53 = vpack.c.bf16 (!%p4900_p8), %v2490_v62, %v2489_v28  ;;  %v2499_v28 = vld [vmem:[%s6404_s18 + $0x80] sm:$0xff] (!%p4900_p8)  ;;  %v2500_v62 = vld [vmem:[%s6404_s18 + $0x88] sm:$0xff] (!%p4900_p8) }
 0x27f   : > { %2450 = sbr.rel (%p4900_p8) target bundleno = 1709 (0x6ad), region = 64  ;;  %2516 = vst.msk [vmem:[#allocation3 + $0x108] sm:$0xff] (!%p4900_p8), %vm672_vm2, %v2465_v60  ;;  %v2494_v60 = vld [vmem:[%s6404_s18 + $0x58] sm:$0xff] (!%p4900_p8) }
 0x282   : > { %v2363_v9 = vpop.f32.mrb[30].mxu0  ;;  %v2443_v49 = vpop.f32.mrb[30].mxu1 }
 0x283   : > { %v7709_v7 = vadd.f32 %v7616_v5, %v2363_v9  ;;  %v7712_v52 = vadd.f32 %v7616_v5, %v2443_v49  ;;  %v2365_v18 = vpop.f32.mrb[31].mxu0  ;;  %v2445_v11 = vpop.f32.mrb[31].mxu1  ;;  %v2454_v5 = vmax.f32 (!%p4900_p8), %v7637_v27, 0.0  ;;  %v6287_v9 = vmov (!%p4900_p8), 0.0|0.0  }
 0x284   : > { %4988 = vmatprep.subr.bf16.mxu0 (!%p4900_p8), %v6287_v9  ;;  %v4989_v49 = vpack.c.bf16 (!%p4900_p8), %v2484_v41, %v2483_v46  ;;  %v2464_v18 = vmax.f32 (!%p4900_p8), %v7697_v55, 0.0  ;;  %v2471_v11 = vmax.f32 (!%p4900_p8), %v7646_v45, 0.0  ;;  %5036 = vmatprep.subr.bf16.mxu1 (!%p4900_p8), %v6287_v9 }
 0x285   : > { %9047 = vst [vmem:[#allocation58_spill] sm:$0xff] %v7709_v7  ;;  %9048 = vst [vmem:[#allocation59_spill] sm:$0xff] %v7712_v52  ;;  %v2466_v44 = vmax.f32 (!%p4900_p8), %v7709_v7, 0.0 }
 0x286   : > { %2505 = vst.msk [vmem:[#allocation3 + $0x50] sm:$0xff] %vm672_vm2, %v2454_v5  ;;  %4990 = vmatpush1.bf16.msra.mxu0 %v4989_v49  ;;  %2515 = vst.msk [vmem:[#allocation3 + $0xf0] sm:$0xff] %vm672_vm2, %v2464_v18  ;;  %5045 = vmatpush1.bf16.msra.mxu1 %v4989_v49  ;;  %v2488_v5 = vld [vmem:[%s6404_s18 + $0x28] sm:$0xff] }
 0x287   : > { %2517 = vst.msk [vmem:[#allocation3 + $0x110] sm:$0xff] %vm672_vm2, %v2466_v44  ;;  %2522 = vst.msk [vmem:[#allocation3 + $0x168] sm:$0xff] %vm672_vm2, %v2471_v11  ;;  %4991 = vmatprep.subr.bf16.mxu0 %v6287_v9  ;;  %5037 = vmatprep.subr.bf16.mxu1 %v6287_v9  ;;  %v2663_v44 = vld [vmem:[#allocation3 + $0x30] sm:$0xff]  ;;  %v4995_v46 = vpack.c.bf16 %v2488_v5, %v2487_v57  ;;  %v2492_v49 = vld [vmem:[%s6404_s18 + $0x48] sm:$0xff]  ;;  %v2475_v5 = vmax.f32 %v7670_v63, 0.0 }
 0x288   : > { %v5703_v22 = vpack.i.bf16 %v2663_v44, %v2662_v56  ;;  %v5001_v18 = vpack.c.bf16 %v2492_v49, %v2491_v29  ;;  %v2493_v11 = vld [vmem:[%s6404_s18 + $0x50] sm:$0xff]  ;;  %v2496_v56 = vld [vmem:[%s6404_s18 + $0x68] sm:$0xff]  ;;  %v5013_v29 = vpack.c.bf16 %v2500_v62, %v2499_v28 }
 0x289   : > { %v5004_v57 = vpack.c.bf16 %v2494_v60, %v2493_v11  ;;  %2526 = vst.msk [vmem:[#allocation3 + $0x1a8] sm:$0xff] %vm672_vm2, %v2475_v5  ;;  %v5007_v51 = vpack.c.bf16 %v2496_v56, %v2495_v1  ;;  %v2761_v44 = vld [vmem:[#allocation3 + $0x70] sm:$0xff]  ;;  %v2762_v49 = vld [vmem:[#allocation3 + $0x88] sm:$0xff]  ;;  %v2477_v1 = vmax.f32 %v7682_v12, 0.0  ;;  %v2478_v56 = vmax.f32 %v7688_v54, 0.0 }
 0x28a   : > { %4993 = vmatpush1.bf16.msra.mxu0 %v4992_v20  ;;  %5046 = vmatpush1.bf16.msra.mxu1 %v4992_v20  ;;  %v7806_v20 = vld [vmem:[#allocation3 + $0x6f] sm:$0xff]  ;;  %v7849_v60 = vld [vmem:[#allocation3 + $0x87] sm:$0xff] }
 0x28b   : > { %4994 = vmatprep.subr.bf16.mxu0 %v6287_v9  ;;  %5038 = vmatprep.subr.bf16.mxu1 %v6287_v9  ;;  %v5748_v38 = vpack.i.bf16 %v7806_v20, %v7804_v30  ;;  %2528 = vst.msk [vmem:[#allocation3 + $0x1c8] sm:$0xff] %vm672_vm2, %v2477_v1  ;;  %2529 = vst.msk [vmem:[#allocation3 + $0x1d0] sm:$0xff] %vm672_vm2, %v2478_v56  ;;  %v2733_v5 = vld [vmem:[#allocation3 + $0xaf] sm:$0xff] }
 0x28c   : > { %5704 = vrot.lane.b32.xlu1 %v5703_v22, %s6292_s12  ;;  %v2765_v28 = vld [vmem:[#allocation3 + $0xb0] sm:$0xff] }
 0x28d   : > { %v2759_v15 = vld [vmem:[#allocation3 + $0x50] sm:$0xff] }
 0x28e   : > { %v5718_v41 = vpack.i.bf16 %v2759_v15, %v2758_v6  ;;  %v2696_v3 = vld [vmem:[#allocation3 + $0x49] sm:$0xff]  ;;  %4996 = vmatpush1.bf16.msra.mxu0 %v4995_v46  ;;  %5047 = vmatpush1.bf16.msra.mxu1 %v4995_v46  ;;  %v7817_v10 = vld [vmem:[#allocation3 + $0x51] sm:$0xff] }
 0x28f   : > { %v7787_v0 = vld [vmem:[#allocation3 + $0x4f] sm:$0xff]  ;;  %4902 = vmatprep.mubr.msk.f32.mxu0 %vm672_vm2, %v2696_v3  ;;  %4997 = vmatprep.subr.bf16.mxu0 %v6287_v9  ;;  %v2498_v6 = vld [vmem:[%s6404_s18 + $0x78] sm:$0xff] }
 0x290   : > { %5719 = vrot.lane.b32.xlu0 %v5718_v41, %s6291_s3  ;;  %v5713_v43 = vpack.i.bf16 %v7787_v0, %v7785_v58  ;;  %5039 = vmatprep.subr.bf16.mxu1 %v6287_v9  ;;  %v2760_v15 = vld [vmem:[#allocation3 + $0x68] sm:$0xff]  ;;  %v5010_v46 = vpack.c.bf16 %v2498_v6, %v2497_v23  ;;  %v7868_v23 = vld [vmem:[#allocation3 + $0x91] sm:$0xff] }
 0x291   : > { %v7880_v62 = vld [vmem:[#allocation3 + $0xa9] sm:$0xff]  ;;  %v2707_v13 = vld [vmem:[#allocation3 + $0xf1] sm:$0xff] }
 0x292   : > { %4999 = vmatpush1.bf16.msra.mxu0 %v4998_v53  ;;  %5048 = vmatpush1.bf16.msra.mxu1 %v4998_v53  ;;  %v7834_v53 = vld [vmem:[#allocation3 + $0x69] sm:$0xff] }
 0x293   : > { %5714 = vrot.lane.b32.xlu1 %v5713_v43, %s6293_s17  ;;  %5000 = vmatprep.subr.bf16.mxu0 %v6287_v9  ;;  %v2775_v54 = vld [vmem:[#allocation3 + $0x150] sm:$0xff] }
 0x294   : > { %5729 = vrot.lane.b32.xlu0 %v5708_v61, %s6288_s14  ;;  %5040 = vmatprep.subr.bf16.mxu1 %v6287_v9  ;;  %v5743_v61 = vpack.i.bf16 %v7817_v10, %v2696_v3  ;;  %v2476_v3 = vmax.f32 %v7676_v34, 0.0  ;;  %v2738_v34 = vld [vmem:[#allocation3 + $0x107] sm:$0xff] }
 0x296   : > { %5002 = vmatpush1.bf16.msra.mxu0 %v5001_v18  ;;  %5049 = vmatpush1.bf16.msra.mxu1 %v5001_v18  ;;  %2527 = vst.msk [vmem:[#allocation3 + $0x1b0] sm:$0xff] %vm672_vm2, %v2476_v3  ;;  %v2763_v18 = vld [vmem:[#allocation3 + $0x90] sm:$0xff] }
 0x297   : > { %5724 = vrot.lane.b32.xlu1 %v5703_v22, %s6286_s28  ;;  %5003 = vmatprep.subr.bf16.mxu0 %v6287_v9  ;;  %v5753_v22 = vpack.i.bf16 %v2761_v44, %v2760_v15  ;;  %v5788_v11 = vpack.i.bf16 %v2763_v18, %v2762_v49  ;;  %v2479_v15 = vmax.f32 %v7694_v25, 0.0  ;;  %v2480_v44 = vmax.f32 %v7700_v33, 0.0  ;;  %v7882_v3 = vld [vmem:[#allocation3 + $0xb1] sm:$0xff]  ;;  %v2768_v25 = vld [vmem:[#allocation3 + $0xe8] sm:$0xff] }
 0x298   : > { %5739 = vrot.lane.b32.xlu0 %v5718_v41, %s6292_s12  ;;  %5041 = vmatprep.subr.bf16.mxu1 %v6287_v9  ;;  %v7893_v18 = vld [vmem:[#allocation3 + $0x111] sm:$0xff] }
 0x299   : > { %2530 = vst.msk [vmem:[#allocation3 + $0x1e8] sm:$0xff] %vm672_vm2, %v2479_v15  ;;  %2531 = vst.msk [vmem:[#allocation3 + $0x1f0] sm:$0xff] %vm672_vm2, %v2480_v44  ;;  %v5868_v1 = vpack.i.bf16 %v7880_v62, %v7893_v18  ;;  %v2482_v15 = vmax.f32 %v7712_v52, 0.0  ;;  %v2743_v33 = vld [vmem:[#allocation3 + $0x14f] sm:$0xff] }
 0x29a   : > { %5005 = vmatpush1.bf16.msra.mxu0 %v5004_v57  ;;  %5050 = vmatpush1.bf16.msra.mxu1 %v5004_v57  ;;  %v7851_v57 = vld [vmem:[#allocation3 + $0x8f] sm:$0xff] }
 0x29b   : > { %5734 = vrot.lane.b32.xlu1 %v5713_v43, %s6290_s1  ;;  %5006 = vmatprep.subr.bf16.mxu0 %v6287_v9  ;;  %v7836_v43 = vld [vmem:[#allocation3 + $0x71] sm:$0xff]  ;;  %2533 = vst.msk [vmem:[#allocation3 + $0x210] sm:$0xff] %vm672_vm2, %v2482_v15  ;;  %v2736_v15 = vld [vmem:[#allocation3 + $0xe7] sm:$0xff] }
 0x29c   : > { %5749 = vrot.lane.b32.xlu0 %v5748_v38, %s6293_s17  ;;  %5042 = vmatprep.subr.bf16.mxu1 %v6287_v9 }
 0x29e   : > { %5008 = vmatpush1.bf16.msra.mxu0 %v5007_v51  ;;  %5051 = vmatpush1.bf16.msra.mxu1 %v5007_v51 }
 0x29f   : > { %5744 = vrot.lane.b32.xlu1 %v5743_v61, %s6289_s10  ;;  %5009 = vmatprep.subr.bf16.mxu0 %v6287_v9 }
 0x2a0   : > { %5759 = vrot.lane.b32.xlu0 %v5718_v41, %s6286_s28  ;;  %5043 = vmatprep.subr.bf16.mxu1 %v6287_v9  ;;  %v5778_v41 = vpack.i.bf16 %v7836_v43, %v7834_v53 }
 0x2a2   : > { %5011 = vmatpush1.bf16.msra.mxu0 %v5010_v46  ;;  %5052 = vmatpush1.bf16.msra.mxu1 %v5010_v46  ;;  %v2764_v46 = vld [vmem:[#allocation3 + $0xa8] sm:$0xff] }
 0x2a3   : > { %5754 = vrot.lane.b32.xlu1 %v5753_v22, %s6291_s3  ;;  %5012 = vmatprep.subr.bf16.mxu0 %v6287_v9 }
 0x2a4   : > { %5769 = vrot.lane.b32.xlu0 %v5748_v38, %s6290_s1  ;;  %5044 = vmatprep.subr.bf16.mxu1 %v6287_v9  ;;  %v5783_v38 = vpack.i.bf16 %v7851_v57, %v7849_v60 }
 0x2a6   : > { %5014 = vmatpush1.bf16.msra.mxu0 %v5013_v29  ;;  %5053 = vmatpush1.bf16.msra.mxu1 %v5013_v29  ;;  %v5848_v29 = vpack.i.bf16 %v7882_v3, %v7880_v62 }
 0x2a7   : > { %5764 = vrot.lane.b32.xlu1 %v5743_v61, %s6288_s14  ;;  %5015 = vmatprep.subr.bf16.mxu1 %v6287_v9  ;;  %v2732_v9 = vld [vmem:[#allocation3 + $0xa7] sm:$0xff] }
 0x2a8   : > { %5779 = vrot.lane.b32.xlu0 %v5778_v41, %s6289_s10  ;;  %v5818_v51 = vpack.i.bf16 %v2733_v5, %v2732_v9  ;;  %v7866_v61 = vld [vmem:[#allocation3 + $0x89] sm:$0xff] }
 0x2a9   : > { %v5813_v6 = vpack.i.bf16 %v7868_v23, %v7866_v61  ;;  %v2672_v9 = vld [vmem:[#allocation3 + $0xc8] sm:$0xff]  ;;  %v7899_v5 = vld [vmem:[#allocation3 + $0x130] sm:$0xff] }
 0x2aa   : > { %v5878_v44 = vpack.i.bf16 %v2672_v9, %v7899_v5 }
 0x2ab   : > { %5774 = vrot.lane.b32.xlu1 %v5753_v22, %s6292_s12 }
 0x2ac   : > { %5789 = vrot.lane.b32.xlu0 %v5788_v11, %s6291_s3 }
 0x2af   : > { %5784 = vrot.lane.b32.xlu1 %v5783_v38, %s6293_s17 }
 0x2b0   : > { %5799 = vrot.lane.b32.xlu0 %v5778_v41, %s6288_s14  ;;  %v7888_v41 = vld [vmem:[#allocation3 + $0x110] sm:$0xff] }
 0x2b1   : > { %v5858_v49 = vpack.i.bf16 %v2764_v46, %v7888_v41 }
 0x2b3   : > { %5794 = vrot.lane.b32.xlu1 %v5753_v22, %s6286_s28  ;;  %v5823_v22 = vpack.i.bf16 %v2765_v28, %v2764_v46 }
 0x2b4   : > { %5809 = vrot.lane.b32.xlu0 %v5788_v11, %s6292_s12 }
 0x2b7   : > { %5804 = vrot.lane.b32.xlu1 %v5783_v38, %s6290_s1  ;;  %v2735_v38 = vld [vmem:[#allocation3 + $0xcf] sm:$0xff]  ;;  %v5690_v63 = vpop.permute.xlu0 %5689 }
 0x2b8   : > { %5819 = vrot.lane.b32.xlu0 %v5818_v51, %s6293_s17 }
 0x2bb   : > { %5814 = vrot.lane.b32.xlu1 %v5813_v6, %s6289_s10 }
 0x2bc   : > { %5829 = vrot.lane.b32.xlu0 %v5788_v11, %s6286_s28  ;;  %v2734_v11 = vld [vmem:[#allocation3 + $0xc7] sm:$0xff] }
 0x2bd   : > { %v5853_v56 = vpack.i.bf16 %v2735_v38, %v2734_v11 }
 0x2bf   : > { %5824 = vrot.lane.b32.xlu1 %v5823_v22, %s6291_s3 }
 0x2c0   : > { %5839 = vrot.lane.b32.xlu0 %v5818_v51, %s6290_s1  ;;  %v2767_v51 = vld [vmem:[#allocation3 + $0xd0] sm:$0xff] }
 0x2c1   : > { %v5863_v46 = vpack.i.bf16 %v2767_v51, %v2672_v9 }
 0x2c3   : > { %5834 = vrot.lane.b32.xlu1 %v5813_v6, %s6288_s14  ;;  %v2481_v6 = vmax.f32 %v7706_v40, 0.0  ;;  %v2807_v40 = vld [vmem:[#allocation3 + $0x151] sm:$0xff] }
 0x2c4   : > { %5849 = vrot.lane.b32.xlu0 %v5848_v29, %s6289_s10  ;;  %v2711_v29 = vld [vmem:[#allocation3 + $0x131] sm:$0xff]  ;;  %4919 = vmatprep.mubr.msk.f32.mxu1 %vm672_vm2, %v2807_v40  ;;  %v7925_v40 = vld [vmem:[#allocation3 + $0x147] sm:$0xff] }
 0x2c5   : > { %2532 = vst.msk [vmem:[#allocation3 + $0x208] sm:$0xff] %vm672_vm2, %v2481_v6 }
 0x2c7   : > { %5844 = vrot.lane.b32.xlu1 %v5823_v22, %s6292_s12  ;;  %v2704_v22 = vld [vmem:[#allocation3 + $0xc9] sm:$0xff] }
 0x2c8   : > { %5859 = vrot.lane.b32.xlu0 %v5858_v49, %s6286_s28  ;;  %v7908_v49 = vld [vmem:[#allocation3 + $0x12f] sm:$0xff]  ;;  %v5888_v52 = vpack.i.bf16 %v2704_v22, %v2711_v29 }
 0x2c9   : > { %v5873_v6 = vpack.i.bf16 %v2734_v11, %v7908_v49  ;;  %v5908_v11 = vpack.i.bf16 %v2768_v25, %v2775_v54  ;;  %v7935_v54 = vld [vmem:[#allocation3 + $0xd1] sm:$0xff]  ;;  %v2712_v25 = vld [vmem:[#allocation3 + $0x149] sm:$0xff] }
 0x2cb   : > { %5854 = vrot.lane.b32.xlu1 %v5853_v56, %s6293_s17  ;;  %v5898_v56 = vpack.i.bf16 %v2736_v15, %v2743_v33  ;;  %v5903_v33 = vpack.i.bf16 %v2735_v38, %v7925_v40  ;;  %v2737_v15 = vld [vmem:[#allocation3 + $0xef] sm:$0xff] }
 0x2cc   : > { %5869 = vrot.lane.b32.xlu0 %v5868_v1, %s6288_s14  ;;  %v7913_v1 = vld [vmem:[#allocation3 + $0x128] sm:$0xff] }
 0x2cd   : > { %v5883_v9 = vpack.i.bf16 %v2765_v28, %v7913_v1  ;;  %v7930_v28 = vld [vmem:[#allocation3 + $0x148] sm:$0xff] }
 0x2ce   : > { %v5913_v29 = vpack.i.bf16 %v2767_v51, %v7930_v28  ;;  %v2776_v51 = vld [vmem:[#allocation3 + $0x168] sm:$0xff] }
 0x2cf   : > { %5864 = vrot.lane.b32.xlu1 %v5863_v46, %s6291_s3  ;;  %v7919_v46 = vld [vmem:[#allocation3 + $0x129] sm:$0xff] }
 0x2d0   : > { %5879 = vrot.lane.b32.xlu0 %v5878_v44, %s6292_s12  ;;  %v5893_v22 = vpack.i.bf16 %v7882_v3, %v7919_v46 }
 0x2d1   : > { %v5700_v16 = vpop.permute.xlu1 %5699 }
 0x2d2   : > { %v5702_v50 = vunpack.i.h.bf16 %v5700_v16 }
 0x2d3   : > { %5874 = vrot.lane.b32.xlu1 %v5873_v6, %s6290_s1  ;;  %v5923_v6 = vpack.i.bf16 %v7935_v54, %v2712_v25  ;;  %v2745_v25 = vld [vmem:[#allocation3 + $0x16f] sm:$0xff] }
 0x2d4   : > { %5889 = vrot.lane.b32.xlu0 %v5888_v52, %s6289_s10 }
 0x2d7   : > { %5884 = vrot.lane.b32.xlu1 %v5883_v9, %s6286_s28  ;;  %v2744_v9 = vld [vmem:[#allocation3 + $0x167] sm:$0xff] }
 0x2d8   : > { %5899 = vrot.lane.b32.xlu0 %v5898_v56, %s6293_s17  ;;  %v5933_v38 = vpack.i.bf16 %v2737_v15, %v2744_v9  ;;  %v2770_v15 = vld [vmem:[#allocation3 + $0x108] sm:$0xff]  ;;  %v2777_v9 = vld [vmem:[#allocation3 + $0x170] sm:$0xff] }
 0x2d9   : > { %v7951_v19 = vpack.i.bf16 %v2770_v15, %v2777_v9 }
 0x2db   : > { %5894 = vrot.lane.b32.xlu1 %v5893_v22, %s6288_s14  ;;  %v2713_v22 = vld [vmem:[#allocation3 + $0x151] sm:$0xff] }
 0x2dc   : > { %5909 = vrot.lane.b32.xlu0 %v5908_v11, %s6291_s3 }
 0x2df   : > { %5904 = vrot.lane.b32.xlu1 %v5903_v33, %s6290_s1  ;;  %v2769_v33 = vld [vmem:[#allocation3 + $0xf0] sm:$0xff] }
 0x2e0   : > { %5919 = vrot.lane.b32.xlu0 %v5878_v44, %s6286_s28  ;;  %v2706_v44 = vld [vmem:[#allocation3 + $0xe9] sm:$0xff]  ;;  %v7944_v12 = vpack.i.bf16 %v2769_v33, %v2776_v51  ;;  %v5692_v51 = vunpack.i.h.bf16 %v5690_v63 }
 0x2e1   : > { %v2534_v33 = vld [vmem:[#allocation3 + $0x7] sm:$0xff] }
 0x2e3   : > { %5914 = vrot.lane.b32.xlu1 %v5913_v29, %s6292_s12 }
 0x2e4   : > { %5929 = vrot.lane.b32.xlu0 %v5888_v52, %s6288_s14  ;;  %v5958_v52 = vpack.i.bf16 %v2706_v44, %v2713_v22  ;;  %v5695_v44 = vpop.permute.xlu0 %5694  ;;  %v5691_v22 = vunpack.i.l.bf16 %v5690_v63 }
 0x2e5   : > { %v5697_v45 = vunpack.i.h.bf16 %v5695_v44 }
 0x2e6   : > { %v3718_v15 = vsel %vm672_vm2, %v2534_v33, %v5691_v22 }
 0x2e7   : > { %5924 = vrot.lane.b32.xlu1 %v5923_v6, %s6289_s10 }
 0x2e8   : > { %5939 = vrot.lane.b32.xlu0 %v5898_v56, %s6290_s1  ;;  %v5968_v56 = vpack.i.bf16 %v2738_v34, %v2745_v25  ;;  %v2535_v34 = vld [vmem:[#allocation3 + $0xf] sm:$0xff]  ;;  %v5696_v25 = vunpack.i.l.bf16 %v5695_v44  ;;  %v5710_v9 = vpop.permute.xlu0 %5709 }
 0x2e9   : > { %v3719_v21 = vsel %vm672_vm2, %v2535_v34, %v5692_v51  ;;  %v5711_v34 = vunpack.i.l.bf16 %v5710_v9 }
 0x2ea   : > { %v3751_v44 = vsel %vm1922_vm3, %v3719_v21, %v5697_v45  ;;  %v5712_v21 = vunpack.i.h.bf16 %v5710_v9 }
 0x2eb   : > { %5934 = vrot.lane.b32.xlu1 %v5933_v38, %s6293_s17  ;;  %v3783_v45 = vsel %vm1955_vm4, %v3751_v44, %v5702_v50  ;;  %v7993_v44 = vld [vmem:[#allocation3 + $0x127] sm:$0xff] }
 0x2ec   : > { %5949 = vrot.lane.b32.xlu0 %v5908_v11, %s6292_s12 }
 0x2ef   : > { %5944 = vrot.lane.b32.xlu1 %v7944_v12, %s6291_s3 }
 0x2f0   : > { %5959 = vrot.lane.b32.xlu0 %v5958_v52, %s6289_s10 }
 0x2f3   : > { %5954 = vrot.lane.b32.xlu1 %v5913_v29, %s6286_s28  ;;  %v2714_v29 = vld [vmem:[#allocation3 + $0x169] sm:$0xff] }
 0x2f4   : > { %5969 = vrot.lane.b32.xlu0 %v5968_v56, %s6293_s17  ;;  %v7963_v63 = vpack.i.bf16 %v2707_v13, %v2714_v29  ;;  %v2715_v29 = vld [vmem:[#allocation3 + $0x171] sm:$0xff] }
 0x2f7   : > { %5964 = vrot.lane.b32.xlu1 %v5923_v6, %s6288_s14  ;;  %v5701_v6 = vunpack.i.l.bf16 %v5700_v16  ;;  %v2708_v16 = vld [vmem:[#allocation3 + $0x109] sm:$0xff] }
 0x2f8   : > { %5979 = vrot.lane.b32.xlu0 %v7951_v19, %s6291_s3 }
 0x2fb   : > { %5974 = vrot.lane.b32.xlu1 %v5933_v38, %s6290_s1  ;;  %v7966_v38 = vld [vmem:[#allocation3 + $0x10f] sm:$0xff] }
 0x2fc   : > { %5989 = vrot.lane.b32.xlu0 %v5908_v11, %s6286_s28  ;;  %v3750_v11 = vsel %vm1922_vm3, %v3718_v15, %v5696_v25  ;;  %v7974_v13 = vpack.i.bf16 %v7966_v38, %v2746_v8  ;;  %v7977_v15 = vld [vmem:[#allocation3 + $0x188] sm:$0xff] }
 0x2fd   : > { %v7990_v50 = vpack.i.bf16 %v7888_v41, %v7977_v15 }
 0x2fe   : > { %v5705_v33 = vpop.permute.xlu1 %5704 }
 0x2ff   : > { %5984 = vrot.lane.b32.xlu1 %v7944_v12, %s6292_s12  ;;  %v5707_v14 = vunpack.i.h.bf16 %v5705_v33  ;;  %v5706_v51 = vunpack.i.l.bf16 %v5705_v33 }
 0x300   : > { %5999 = vrot.lane.b32.xlu0 %v5958_v52, %s6288_s14  ;;  %v3782_v52 = vsel %vm1955_vm4, %v3750_v11, %v5701_v6 }
 0x301   : > { %v3814_v25 = vsel %vm1988_vm5, %v3782_v52, %v5706_v51  ;;  %v3815_v42 = vsel %vm1988_vm5, %v3783_v45, %v5707_v14  ;;  %v7986_v51 = vpack.i.bf16 %v2708_v16, %v2715_v29 }
 0x302   : > { %v5720_v22 = vpop.permute.xlu0 %5719  ;;  %v3846_v8 = vsel %vm2021_vm6, %v3814_v25, %v5711_v34  ;;  %v3847_v37 = vsel %vm2021_vm6, %v3815_v42, %v5712_v21 }
 0x303   : > { %5994 = vrot.lane.b32.xlu1 %v7963_v63, %s6289_s10  ;;  %v5721_v33 = vunpack.i.l.bf16 %v5720_v22  ;;  %v5722_v14 = vunpack.i.h.bf16 %v5720_v22 }
 0x304   : > { %6009 = vrot.lane.b32.xlu0 %v5968_v56, %s6290_s1 }
 0x305   : > { %v5715_v7 = vpop.permute.xlu1 %5714 }
 0x306   : > { %v5730_v6 = vpop.permute.xlu0 %5729  ;;  %v5717_v11 = vunpack.i.h.bf16 %v5715_v7  ;;  %v5716_v56 = vunpack.i.l.bf16 %v5715_v7  ;;  %v2747_v7 = vld [vmem:[#allocation3 + $0x18f] sm:$0xff] }
 0x307   : > { %6004 = vrot.lane.b32.xlu1 %v7974_v13, %s6293_s17  ;;  %v5731_v25 = vunpack.i.l.bf16 %v5730_v6  ;;  %v8003_v41 = vpack.i.bf16 %v7993_v44, %v2747_v7 }
 0x308   : > { %6019 = vrot.lane.b32.xlu0 %v7951_v19, %s6292_s12  ;;  %v3878_v9 = vsel %vm2054_vm7, %v3846_v8, %v5716_v56  ;;  %v3879_v34 = vsel %vm2054_vm7, %v3847_v37, %v5717_v11 }
 0x309   : > { %v5725_v45 = vpop.permute.xlu1 %5724  ;;  %v3910_v55 = vsel %vm2087_vm8, %v3878_v9, %v5721_v33  ;;  %v3911_v29 = vsel %vm2087_vm8, %v3879_v34, %v5722_v14  ;;  %v5732_v33 = vunpack.i.h.bf16 %v5730_v6 }
 0x30a   : > { %v5740_v52 = vpop.permute.xlu0 %5739  ;;  %v5726_v36 = vunpack.i.l.bf16 %v5725_v45  ;;  %4109 = vmatmul.mubr.f32.vlgmr.msra.gmra.mrb[0].mxu0 %v3910_v55  ;;  %v5727_v22 = vunpack.i.h.bf16 %v5725_v45  ;;  %v8009_v55 = vld [vmem:[#allocation3 + $0x190] sm:$0xff] }
 0x30b   : > { %6014 = vrot.lane.b32.xlu1 %v7990_v50, %s6291_s3  ;;  %4903 = vmatprep.mubr.msk.f32.mxu0 %vm672_vm2, %v7817_v10  ;;  %v5741_v11 = vunpack.i.l.bf16 %v5740_v52  ;;  %v5742_v14 = vunpack.i.h.bf16 %v5740_v52 }
 0x30c   : > { %6029 = vrot.lane.b32.xlu0 %v7986_v51, %s6289_s10  ;;  %v3720_v16 = vsel %vm672_vm2, %v7768_v4, %v5726_v36  ;;  %v8019_v36 = vpack.i.bf16 %v7913_v1, %v8009_v55  ;;  %v3721_v4 = vsel %vm672_vm2, %v7775_v39, %v5727_v22 }
 0x30d   : > { %v5735_v42 = vpop.permute.xlu1 %5734  ;;  %v3752_v56 = vsel %vm1922_vm3, %v3720_v16, %v5731_v25 }
 0x30e   : > { %v5750_v37 = vpop.permute.xlu0 %5749  ;;  %v5736_v21 = vunpack.i.l.bf16 %v5735_v42  ;;  %4114 = vmatmul.mubr.f32.gmra.mrb[2].mxu0 %v3911_v29  ;;  %v5737_v10 = vunpack.i.h.bf16 %v5735_v42 }
 0x30f   : > { %6024 = vrot.lane.b32.xlu1 %v7944_v12, %s6286_s28  ;;  %4904 = vmatprep.mubr.msk.f32.mxu0 %vm672_vm2, %v7834_v53  ;;  %v5751_v45 = vunpack.i.l.bf16 %v5750_v37  ;;  %v3753_v12 = vsel %vm1922_vm3, %v3721_v4, %v5732_v33  ;;  %v5752_v52 = vunpack.i.h.bf16 %v5750_v37 }
 0x310   : > { %6039 = vrot.lane.b32.xlu0 %v8003_v41, %s6293_s17  ;;  %v3784_v8 = vsel %vm1955_vm4, %v3752_v56, %v5736_v21  ;;  %v3785_v1 = vsel %vm1955_vm4, %v3753_v12, %v5737_v10  ;;  %v8042_v56 = vld [vmem:[#allocation3 + $0x189] sm:$0xff] }
 0x311   : > { %v5745_v9 = vpop.permute.xlu1 %5744  ;;  %v3816_v39 = vsel %vm1988_vm5, %v3784_v8, %v5741_v11  ;;  %v3817_v29 = vsel %vm1988_vm5, %v3785_v1, %v5742_v14 }
 0x312   : > { %v5760_v6 = vpop.permute.xlu0 %5759  ;;  %v5746_v7 = vunpack.i.l.bf16 %v5745_v9  ;;  %v5747_v34 = vunpack.i.h.bf16 %v5745_v9 }
 0x313   : > { %6034 = vrot.lane.b32.xlu1 %v7963_v63, %s6288_s14  ;;  %v5761_v42 = vunpack.i.l.bf16 %v5760_v6  ;;  %v5762_v4 = vunpack.i.h.bf16 %v5760_v6 }
 0x314   : > { %6049 = vrot.lane.b32.xlu0 %v8019_v36, %s6291_s3  ;;  %v3848_v53 = vsel %vm2021_vm6, %v3816_v39, %v5746_v7  ;;  %v3849_v11 = vsel %vm2021_vm6, %v3817_v29, %v5747_v34  ;;  %v6063_v7 = vpack.i.bf16 %v7893_v18, %v8042_v56 }
 0x315   : > { %v5755_v22 = vpop.permute.xlu1 %5754  ;;  %v3880_v63 = vsel %vm2054_vm7, %v3848_v53, %v5751_v45  ;;  %v3881_v6 = vsel %vm2054_vm7, %v3849_v11, %v5752_v52 }
 0x316   : > { %v5770_v25 = vpop.permute.xlu0 %5769  ;;  %v5756_v16 = vunpack.i.l.bf16 %v5755_v22  ;;  %v5757_v21 = vunpack.i.h.bf16 %v5755_v22  ;;  %v8071_v22 = vld [vmem:[#allocation3 + $0x191] sm:$0xff] }
 0x317   : > { %6044 = vrot.lane.b32.xlu1 %v7974_v13, %s6290_s1  ;;  %v3722_v13 = vsel %vm672_vm2, %v7785_v58, %v5761_v42  ;;  %v5771_v9 = vunpack.i.l.bf16 %v5770_v25  ;;  %v3723_v58 = vsel %vm672_vm2, %v7787_v0, %v5762_v4  ;;  %v5772_v12 = vunpack.i.h.bf16 %v5770_v25 }
 0x318   : > { %6059 = vrot.lane.b32.xlu0 %v7951_v19, %s6286_s28  ;;  %v3912_v33 = vsel %vm2087_vm8, %v3880_v63, %v5756_v16  ;;  %v3913_v45 = vsel %vm2087_vm8, %v3881_v6, %v5757_v21  ;;  %v8073_v16 = vld [vmem:[#allocation3 + $0x1a8] sm:$0xff]  ;;  %v6098_v11 = vpack.i.bf16 %v7919_v46, %v8071_v22  ;;  %v6093_v46 = vpack.i.bf16 %v8009_v55, %v7977_v15  ;;  %v8107_v55 = vld [vmem:[#allocation3 + $0x1b1] sm:$0xff] }
 0x319   : > { %v5765_v10 = vpop.permute.xlu1 %5764  ;;  %4119 = vmatmul.mubr.f32.gmra.mrb[4].mxu0 %v3912_v33  ;;  %v6083_v4 = vpack.i.bf16 %v7899_v5, %v8073_v16 }
 0x31a   : > { %v5780_v37 = vpop.permute.xlu0 %5779  ;;  %v5767_v8 = vunpack.i.h.bf16 %v5765_v10  ;;  %v5766_v19 = vunpack.i.l.bf16 %v5765_v10  ;;  %4905 = vmatprep.mubr.msk.f32.mxu0 %vm672_vm2, %v7836_v43  ;;  %v8057_v43 = vld [vmem:[#allocation3 + $0x1a7] sm:$0xff]  ;;  %v2749_v10 = vld [vmem:[#allocation3 + $0x1af] sm:$0xff] }
 0x31b   : > { %6054 = vrot.lane.b32.xlu1 %v7990_v50, %s6292_s12  ;;  %v5781_v18 = vunpack.i.l.bf16 %v5780_v37  ;;  %v6073_v0 = vpack.i.bf16 %v7908_v49, %v8057_v43  ;;  %v5782_v52 = vunpack.i.h.bf16 %v5780_v37  ;;  %v6108_v5 = vpack.i.bf16 %v7925_v40, %v2749_v10 }
 0x31c   : > { %6069 = vrot.lane.b32.xlu0 %v7986_v51, %s6288_s14  ;;  %v3754_v14 = vsel %vm1922_vm3, %v3722_v13, %v5766_v19  ;;  %v3755_v50 = vsel %vm1922_vm3, %v3723_v58, %v5767_v8 }
 0x31d   : > { %v5775_v51 = vpop.permute.xlu1 %5774  ;;  %4124 = vmatmul.mubr.f32.gmra.mrb[6].mxu0 %v3913_v45  ;;  %v3786_v53 = vsel %vm1955_vm4, %v3754_v14, %v5771_v9  ;;  %v2781_v45 = vld [vmem:[#allocation3 + $0x1b0] sm:$0xff] }
 0x31e   : > { %v5790_v39 = vpop.permute.xlu0 %5789  ;;  %v5777_v1 = vunpack.i.h.bf16 %v5775_v51  ;;  %v5776_v34 = vunpack.i.l.bf16 %v5775_v51  ;;  %4906 = vmatprep.mubr.msk.f32.mxu0 %vm672_vm2, %v7866_v61  ;;  %v3787_v61 = vsel %vm1955_vm4, %v3755_v50, %v5772_v12 }
 0x31f   : > { %6064 = vrot.lane.b32.xlu1 %v6063_v7, %s6289_s10  ;;  %v5791_v42 = vunpack.i.l.bf16 %v5790_v39  ;;  %v5792_v8 = vunpack.i.h.bf16 %v5790_v39 }
 0x320   : > { %6079 = vrot.lane.b32.xlu0 %v8003_v41, %s6290_s1  ;;  %v3818_v25 = vsel %vm1988_vm5, %v3786_v53, %v5776_v34  ;;  %v3819_v21 = vsel %vm1988_vm5, %v3787_v61, %v5777_v1  ;;  %v6118_v34 = vpack.i.bf16 %v7930_v28, %v2781_v45 }
 0x321   : > { %v5785_v29 = vpop.permute.xlu1 %5784  ;;  %v3850_v49 = vsel %vm2021_vm6, %v3818_v25, %v5781_v18 }
 0x322   : > { %v5800_v63 = vpop.permute.xlu0 %5799  ;;  %v5787_v41 = vunpack.i.h.bf16 %v5785_v29  ;;  %v5786_v33 = vunpack.i.l.bf16 %v5785_v29 }
 0x323   : > { %6074 = vrot.lane.b32.xlu1 %v6073_v0, %s6293_s17  ;;  %v5801_v14 = vunpack.i.l.bf16 %v5800_v63  ;;  %v5802_v40 = vunpack.i.h.bf16 %v5800_v63  ;;  %v6113_v63 = vpack.i.bf16 %v2749_v10, %v8057_v43 }
 0x324   : > { %6089 = vrot.lane.b32.xlu0 %v8019_v36, %s6292_s12  ;;  %v3882_v37 = vsel %vm2054_vm7, %v3850_v49, %v5786_v33  ;;  %v3851_v36 = vsel %vm2021_vm6, %v3819_v21, %v5782_v52  ;;  %v2782_v33 = vld [vmem:[#allocation3 + $0x1c8] sm:$0xff] }
 0x325   : > { %v5795_v13 = vpop.permute.xlu1 %5794  ;;  %v3914_v9 = vsel %vm2087_vm8, %v3882_v37, %v5791_v42  ;;  %v3883_v7 = vsel %vm2054_vm7, %v3851_v36, %v5787_v41 }
 0x326   : > { %v5810_v19 = vpop.permute.xlu0 %5809  ;;  %v5796_v6 = vunpack.i.l.bf16 %v5795_v13  ;;  %4129 = vmatmul.mubr.f32.gmra.mrb[8].mxu0 %v3914_v9  ;;  %v5797_v58 = vunpack.i.h.bf16 %v5795_v13  ;;  %v3915_v50 = vsel %vm2087_vm8, %v3883_v7, %v5792_v8  ;;  %v6123_v9 = vpack.i.bf16 %v2781_v45, %v8073_v16 }
 0x327   : > { %6084 = vrot.lane.b32.xlu1 %v6083_v4, %s6291_s3  ;;  %4907 = vmatprep.mubr.msk.f32.mxu0 %vm672_vm2, %v7868_v23  ;;  %v5811_v18 = vunpack.i.l.bf16 %v5810_v19  ;;  %v8105_v23 = vld [vmem:[#allocation3 + $0x1a9] sm:$0xff]  ;;  %v5812_v29 = vunpack.i.h.bf16 %v5810_v19 }
 0x328   : > { %6099 = vrot.lane.b32.xlu0 %v6098_v11, %s6289_s10  ;;  %v3724_v12 = vsel %vm672_vm2, %v7804_v30, %v5796_v6  ;;  %v6103_v30 = vpack.i.bf16 %v8071_v22, %v8042_v56  ;;  %v3725_v53 = vsel %vm672_vm2, %v7806_v20, %v5797_v58  ;;  %v6128_v61 = vpack.i.bf16 %v8107_v55, %v8105_v23 }
 0x329   : > { %v5805_v51 = vpop.permute.xlu1 %5804  ;;  %v3756_v15 = vsel %vm1922_vm3, %v3724_v12, %v5801_v14  ;;  %v3757_v41 = vsel %vm1922_vm3, %v3725_v53, %v5802_v40 }
 0x32a   : > { %v5820_v39 = vpop.permute.xlu0 %5819  ;;  %v5806_v1 = vunpack.i.l.bf16 %v5805_v51  ;;  %4134 = vmatmul.mubr.f32.gmra.mrb[10].mxu0 %v3915_v50  ;;  %v5807_v0 = vunpack.i.h.bf16 %v5805_v51  ;;  %v2798_v50 = vld [vmem:[#allocation3 + $0xc9] sm:$0xff] }
 0x32b   : > { %6094 = vrot.lane.b32.xlu1 %v6093_v46, %s6286_s28  ;;  %4908 = vmatprep.mubr.msk.f32.mxu0 %vm672_vm2, %v7880_v62  ;;  %v5821_v21 = vunpack.i.l.bf16 %v5820_v39  ;;  %v2783_v62 = vld [vmem:[#allocation3 + $0x1d0] sm:$0xff]  ;;  %v5822_v19 = vunpack.i.h.bf16 %v5820_v39 }
 0x32c   : > { %6109 = vrot.lane.b32.xlu0 %v6108_v5, %s6293_s17  ;;  %v3788_v28 = vsel %vm1955_vm4, %v3756_v15, %v5806_v1  ;;  %v3789_v49 = vsel %vm1955_vm4, %v3757_v41, %v5807_v0  ;;  %v8123_v10 = vpack.i.bf16 %v2783_v62, %v2782_v33  ;;  %v8132_v5 = vld [vmem:[#allocation3 + $0x1c7] sm:$0xff]  ;;  %v8134_v46 = vld [vmem:[#allocation3 + $0x1cf] sm:$0xff] }
 0x32d   : > { %v5815_v52 = vpop.permute.xlu1 %5814  ;;  %v3820_v20 = vsel %vm1988_vm5, %v3788_v28, %v5811_v18  ;;  %v3821_v36 = vsel %vm1988_vm5, %v3789_v49, %v5812_v29  ;;  %v6133_v51 = vpack.i.bf16 %v8134_v46, %v8132_v5  ;;  %v8153_v28 = vld [vmem:[#allocation3 + $0x1e7] sm:$0xff]  ;;  %v8164_v33 = vld [vmem:[#allocation3 + $0x1d1] sm:$0xff] }
 0x32e   : > { %v5830_v25 = vpop.permute.xlu0 %5829  ;;  %v5816_v42 = vunpack.i.l.bf16 %v5815_v52  ;;  %v5817_v11 = vunpack.i.h.bf16 %v5815_v52 }
 0x32f   : > { %6104 = vrot.lane.b32.xlu1 %v6103_v30, %s6288_s14  ;;  %v5831_v39 = vunpack.i.l.bf16 %v5830_v25 }
 0x330   : > { %6119 = vrot.lane.b32.xlu0 %v6118_v34, %s6291_s3  ;;  %v3852_v4 = vsel %vm2021_vm6, %v3820_v20, %v5816_v42  ;;  %v3853_v14 = vsel %vm2021_vm6, %v3821_v36, %v5817_v11  ;;  %v5832_v34 = vunpack.i.h.bf16 %v5830_v25  ;;  %v8155_v25 = vld [vmem:[#allocation3 + $0x1ef] sm:$0xff] }
 0x331   : > { %v5825_v8 = vpop.permute.xlu1 %5824  ;;  %v3884_v13 = vsel %vm2054_vm7, %v3852_v4, %v5821_v21  ;;  %v3885_v45 = vsel %vm2054_vm7, %v3853_v14, %v5822_v19 }
 0x332   : > { %v5840_v37 = vpop.permute.xlu0 %5839  ;;  %v5826_v43 = vunpack.i.l.bf16 %v5825_v8  ;;  %v5827_v6 = vunpack.i.h.bf16 %v5825_v8  ;;  %v3727_v52 = vsel %vm672_vm2, %v7851_v57, %v5832_v34  ;;  %v6168_v57 = vpack.i.bf16 %v8155_v25, %v8153_v28  ;;  %v2544_v8 = vld [vmem:[#allocation3 + $0xa7] sm:$0xff] }
 0x333   : > { %6114 = vrot.lane.b32.xlu1 %v6113_v63, %s6290_s1  ;;  %v5841_v15 = vunpack.i.l.bf16 %v5840_v37  ;;  %v5842_v42 = vunpack.i.h.bf16 %v5840_v37 }
 0x334   : > { %6129 = vrot.lane.b32.xlu0 %v6128_v61, %s6289_s10  ;;  %v3916_v7 = vsel %vm2087_vm8, %v3884_v13, %v5826_v43  ;;  %v3917_v1 = vsel %vm2087_vm8, %v3885_v45, %v5827_v6  ;;  %v2784_v45 = vld [vmem:[#allocation3 + $0x1e8] sm:$0xff] }
 0x335   : > { %v5835_v12 = vpop.permute.xlu1 %5834  ;;  %4139 = vmatmul.mubr.f32.gmra.mrb[12].mxu0 %v3916_v7 }
 0x336   : > { %v8136_v58 = vpop.permute.xlu0 %5849  ;;  %4909 = vmatprep.mubr.msk.f32.mxu0 %vm672_vm2, %v7882_v3  ;;  %v5836_v16 = vunpack.i.l.bf16 %v5835_v12  ;;  %v3726_v3 = vsel %vm672_vm2, %v7849_v60, %v5831_v39  ;;  %v5837_v30 = vunpack.i.h.bf16 %v5835_v12 }
 0x337   : > { %6124 = vrot.lane.b32.xlu1 %v6123_v9, %s6292_s12  ;;  %v5851_v29 = vunpack.i.l.bf16 %v8136_v58  ;;  %v5852_v37 = vunpack.i.h.bf16 %v8136_v58 }
 0x338   : > { %6139 = vrot.lane.b32.xlu0 %v8123_v10, %s6291_s3  ;;  %v3758_v53 = vsel %vm1922_vm3, %v3726_v3, %v5836_v16  ;;  %v3759_v21 = vsel %vm1922_vm3, %v3727_v52, %v5837_v30 }
 0x339   : > { %v5845_v18 = vpop.permute.xlu1 %5844  ;;  %4144 = vmatmul.mubr.f32.gmra.mrb[14].mxu0 %v3917_v1  ;;  %v3790_v20 = vsel %vm1955_vm4, %v3758_v53, %v5841_v15  ;;  %v3791_v43 = vsel %vm1955_vm4, %v3759_v21, %v5842_v42 }
 0x33a   : > { %v5860_v40 = vpop.permute.xlu0 %5859  ;;  %4910 = vmatprep.mubr.msk.f32.mxu0 %vm672_vm2, %v2798_v50  ;;  %v5846_v0 = vunpack.i.l.bf16 %v5845_v18  ;;  %v5847_v41 = vunpack.i.h.bf16 %v5845_v18  ;;  %v2785_v50 = vld [vmem:[#allocation3 + $0x1f0] sm:$0xff] }
 0x33b   : > { %6134 = vrot.lane.b32.xlu1 %v6133_v51, %s6293_s17  ;;  %v5862_v11 = vunpack.i.h.bf16 %v5860_v40  ;;  %v5861_v4 = vunpack.i.l.bf16 %v5860_v40  ;;  %v8189_v42 = vpack.i.bf16 %v2785_v50, %v2784_v45  ;;  %v2801_v50 = vld [vmem:[#allocation3 + $0xf1] sm:$0xff] }
 0x33c   : > { %6149 = vrot.lane.b32.xlu0 %v6128_v61, %s6288_s14  ;;  %v8162_v61 = vld [vmem:[#allocation3 + $0x1c9] sm:$0xff]  ;;  %v3822_v62 = vsel %vm1988_vm5, %v3790_v20, %v5846_v0  ;;  %v3823_v6 = vsel %vm1988_vm5, %v3791_v43, %v5847_v41 }
 0x33d   : > { %v5855_v63 = vpop.permute.xlu1 %5854  ;;  %v6163_v36 = vpack.i.bf16 %v8164_v33, %v8162_v61  ;;  %v3728_v1 = vsel %vm672_vm2, %v2544_v8, %v5862_v11  ;;  %v3735_v34 = vsel %vm672_vm2, %v7966_v38, %v5861_v4  ;;  %v3855_v53 = vsel %vm2021_vm6, %v3823_v6, %v5852_v37 }
 0x33e   : > { %v5870_v60 = vpop.permute.xlu0 %5869  ;;  %v5856_v49 = vunpack.i.l.bf16 %v5855_v63  ;;  %v5857_v7 = vunpack.i.h.bf16 %v5855_v63 }
 0x33f   : > { %6144 = vrot.lane.b32.xlu1 %v6123_v9, %s6286_s28  ;;  %v3854_v9 = vsel %vm2021_vm6, %v3822_v62, %v5851_v29  ;;  %v5872_v12 = vunpack.i.h.bf16 %v5870_v60  ;;  %v5871_v39 = vunpack.i.l.bf16 %v5870_v60  ;;  %v2800_v29 = vld [vmem:[#allocation3 + $0xe9] sm:$0xff] }
 0x340   : > { %6159 = vrot.lane.b32.xlu0 %v8123_v10, %s6292_s12  ;;  %v3886_v58 = vsel %vm2054_vm7, %v3854_v9, %v5856_v49  ;;  %v3887_v52 = vsel %vm2054_vm7, %v3855_v53, %v5857_v7  ;;  %v8199_v62 = vld [vmem:[#allocation3 + $0x1e9] sm:$0xff]  ;;  %v8201_v49 = vld [vmem:[#allocation3 + $0x1f1] sm:$0xff] }
 0x341   : > { %v5865_v13 = vpop.permute.xlu1 %5864  ;;  %v3760_v38 = vsel %vm1922_vm3, %v3728_v1, %v5872_v12  ;;  %v3767_v60 = vsel %vm1922_vm3, %v3735_v34, %v5871_v39  ;;  %v2786_v7 = vld [vmem:[#allocation3 + $0x208] sm:$0xff] }
 0x342   : > { %v5880_v19 = vpop.permute.xlu0 %5879  ;;  %v5866_v14 = vunpack.i.l.bf16 %v5865_v13  ;;  %v5867_v16 = vunpack.i.h.bf16 %v5865_v13  ;;  %v2808_v1 = vld [vmem:[#allocation3 + $0x169] sm:$0xff] }
 0x343   : > { %6154 = vrot.lane.b32.xlu1 %v6133_v51, %s6290_s1  ;;  %v5882_v18 = vunpack.i.h.bf16 %v5880_v19  ;;  %v5881_v3 = vunpack.i.l.bf16 %v5880_v19  ;;  %v6198_v19 = vpack.i.bf16 %v8201_v49, %v8199_v62 }
 0x344   : > { %6169 = vrot.lane.b32.xlu0 %v6168_v57, %s6293_s17  ;;  %v3918_v40 = vsel %vm2087_vm8, %v3886_v58, %v5866_v14  ;;  %v3919_v63 = vsel %vm2087_vm8, %v3887_v52, %v5867_v16  ;;  %v2787_v14 = vld [vmem:[#allocation3 + $0x210] sm:$0xff] }
 0x345   : > { %v5875_v30 = vpop.permute.xlu1 %5874  ;;  %4149 = vmatmul.mubr.f32.gmra.mrb[16].mxu0 %v3918_v40  ;;  %v6208_v45 = vpack.i.bf16 %v2787_v14, %v2786_v7 }
 0x346   : > { %v5890_v15 = vpop.permute.xlu0 %5889  ;;  %v5877_v0 = vunpack.i.h.bf16 %v5875_v30  ;;  %v5876_v51 = vunpack.i.l.bf16 %v5875_v30  ;;  %4911 = vmatprep.mubr.msk.f32.mxu0 %vm672_vm2, %v7935_v54 }
 0x347   : > { %6164 = vrot.lane.b32.xlu1 %v6163_v36, %s6289_s10  ;;  %v5892_v21 = vunpack.i.h.bf16 %v5890_v15  ;;  %v5891_v41 = vunpack.i.l.bf16 %v5890_v15 }
 0x348   : > { %6179 = vrot.lane.b32.xlu0 %v8123_v10, %s6286_s28  ;;  %v3792_v54 = vsel %vm1955_vm4, %v3760_v38, %v5877_v0  ;;  %v3799_v20 = vsel %vm1955_vm4, %v3767_v60, %v5876_v51 }
 0x349   : > { %v8203_v4 = vpop.permute.xlu1 %5884  ;;  %4154 = vmatmul.mubr.f32.gmra.mrb[18].mxu0 %v3919_v63  ;;  %v3824_v10 = vsel %vm1988_vm5, %v3792_v54, %v5882_v18  ;;  %v3831_v37 = vsel %vm1988_vm5, %v3799_v20, %v5881_v3  ;;  %v2754_v18 = vld [vmem:[#allocation3 + $0x207] sm:$0xff]  ;;  %v2755_v3 = vld [vmem:[#allocation3 + $0x20f] sm:$0xff] }
 0x34a   : > { %v5900_v11 = vpop.permute.xlu0 %5899  ;;  %4912 = vmatprep.mubr.msk.f32.mxu0 %vm672_vm2, %v2800_v29  ;;  %v3856_v13 = vsel %vm2021_vm6, %v3824_v10, %v5892_v21  ;;  %v3863_v6 = vsel %vm2021_vm6, %v3831_v37, %v5891_v41  ;;  %v5887_v38 = vunpack.i.h.bf16 %v8203_v4  ;;  %v5886_v60 = vunpack.i.l.bf16 %v8203_v4  ;;  %v2545_v63 = vld [vmem:[#allocation3 + $0xaf] sm:$0xff]  ;;  %v2756_v10 = vld [vmem:[#allocation3 + $0x227] sm:$0xff] }
 0x34b   : > { %v5902_v8 = vunpack.i.h.bf16 %v5900_v11  ;;  %v5901_v43 = vunpack.i.l.bf16 %v5900_v11  ;;  %6174 = vrot.lane.b32.xlu1 %v8189_v42, %s6291_s3  ;;  %v2546_v37 = vld [vmem:[#allocation3 + $0xc7] sm:$0xff] }
 0x34c   : > { %6189 = vrot.lane.b32.xlu0 %v6168_v57, %s6290_s1  ;;  %v3729_v4 = vsel %vm672_vm2, %v2545_v63, %v5887_v38  ;;  %v3736_v7 = vsel %vm672_vm2, %v7993_v44, %v5886_v60  ;;  %v2802_v63 = vld [vmem:[#allocation3 + $0x109] sm:$0xff] }
 0x34d   : > { %v5895_v12 = vpop.permute.xlu1 %5894  ;;  %v3888_v57 = vsel %vm2054_vm7, %v3856_v13, %v5902_v8  ;;  %v3895_v58 = vsel %vm2054_vm7, %v3863_v6, %v5901_v43  ;;  %v2553_v8 = vld [vmem:[#allocation3 + $0x12f] sm:$0xff] }
 0x34e   : > { %v5910_v9 = vpop.permute.xlu0 %5909  ;;  %v5897_v29 = vunpack.i.h.bf16 %v5895_v12  ;;  %v5896_v21 = vunpack.i.l.bf16 %v5895_v12 }
 0x34f   : > { %v5912_v39 = vunpack.i.h.bf16 %v5910_v9  ;;  %v5911_v16 = vunpack.i.l.bf16 %v5910_v9  ;;  %6184 = vrot.lane.b32.xlu1 %v6163_v36, %s6288_s14  ;;  %v6203_v36 = vpack.i.bf16 %v2755_v3, %v2754_v18 }
 0x350   : > { %6199 = vrot.lane.b32.xlu0 %v6198_v19, %s6289_s10  ;;  %v3768_v12 = vsel %vm1922_vm3, %v3736_v7, %v5896_v21 }
 0x351   : > { %v3920_v34 = vsel %vm2087_vm8, %v3888_v57, %v5912_v39  ;;  %v3927_v40 = vsel %vm2087_vm8, %v3895_v58, %v5911_v16  ;;  %v5905_v30 = vpop.permute.xlu1 %5904 }
 0x352   : > { %v5920_v15 = vpop.permute.xlu0 %5919  ;;  %4159 = vmatmul.mubr.f32.gmra.mrb[20].mxu0 %v3920_v34  ;;  %4194 = vmatmul.mubr.f32.vlgmr.msra.gmra.mrb[0].mxu1 %v3927_v40  ;;  %v5907_v20 = vunpack.i.h.bf16 %v5905_v30  ;;  %v5906_v11 = vunpack.i.l.bf16 %v5905_v30 }
 0x353   : > { %4913 = vmatprep.mubr.msk.f32.mxu0 %vm672_vm2, %v2801_v50  ;;  %4920 = vmatprep.mubr.msk.f32.mxu1 %vm672_vm2, %v2808_v1  ;;  %v5922_v41 = vunpack.i.h.bf16 %v5920_v15  ;;  %v5921_v54 = vunpack.i.l.bf16 %v5920_v15  ;;  %v8248_v50 = vld [vmem:[#allocation3 + $0x211] sm:$0xff]  ;;  %v8250_v1 = vld [vmem:[#allocation3 + $0x209] sm:$0xff] }
 0x354   : > { %6209 = vrot.lane.b32.xlu0 %v6208_v45, %s6291_s3  ;;  %6194 = vrot.lane.b32.xlu1 %v8189_v42, %s6292_s12  ;;  %v3800_v44 = vsel %vm1955_vm4, %v3768_v12, %v5906_v11  ;;  %v2788_v11 = vld [vmem:[#allocation3 + $0x228] sm:$0xff] }
 0x355   : > { %v5915_v0 = vpop.permute.xlu1 %5914  ;;  %v3730_v57 = vsel %vm672_vm2, %v2546_v37, %v5922_v41  ;;  %v3737_v58 = vsel %vm672_vm2, %v2553_v8, %v5921_v54  ;;  %v2757_v12 = vld [vmem:[#allocation3 + $0x22f] sm:$0xff] }
 0x356   : > { %v8226_v53 = vpop.permute.xlu0 %5929  ;;  %v5917_v43 = vunpack.i.h.bf16 %v5915_v0 }
 0x357   : > { %v5932_v34 = vunpack.i.h.bf16 %v8226_v53  ;;  %v5931_v40 = vunpack.i.l.bf16 %v8226_v53 }
 0x358   : > { %6219 = vrot.lane.b32.xlu0 %v6198_v19, %s6288_s14  ;;  %6204 = vrot.lane.b32.xlu1 %v6203_v36, %s6293_s17  ;;  %v5916_v19 = vunpack.i.l.bf16 %v5915_v0 }
 0x359   : > { %v5925_v52 = vpop.permute.xlu1 %5924  ;;  %v3762_v37 = vsel %vm1922_vm3, %v3730_v57, %v5932_v34  ;;  %v3769_v8 = vsel %vm1922_vm3, %v3737_v58, %v5931_v40 }
 0x35a   : > { %v8230_v51 = vpop.permute.xlu0 %5939  ;;  %v5927_v14 = vunpack.i.h.bf16 %v5925_v52  ;;  %v5926_v9 = vunpack.i.l.bf16 %v5925_v52  ;;  %v3832_v3 = vsel %vm1988_vm5, %v3800_v44, %v5916_v19 }
 0x35b   : > { %v5942_v21 = vunpack.i.h.bf16 %v8230_v51  ;;  %v5941_v41 = vunpack.i.l.bf16 %v8230_v51 }
 0x35c   : > { %6229 = vrot.lane.b32.xlu0 %v6208_v45, %s6292_s12  ;;  %6214 = vrot.lane.b32.xlu1 %v8189_v42, %s6286_s28  ;;  %v3761_v42 = vsel %vm1922_vm3, %v3729_v4, %v5897_v29  ;;  %v3864_v38 = vsel %vm2021_vm6, %v3832_v3, %v5926_v9  ;;  %v2809_v29 = vld [vmem:[#allocation3 + $0x171] sm:$0xff] }
 0x35d   : > { %v5935_v6 = vpop.permute.xlu1 %5934  ;;  %v3793_v45 = vsel %vm1955_vm4, %v3761_v42, %v5907_v20  ;;  %v3794_v42 = vsel %vm1955_vm4, %v3762_v37, %v5942_v21 }
 0x35e   : > { %v5950_v13 = vpop.permute.xlu0 %5949  ;;  %v5937_v39 = vunpack.i.h.bf16 %v5935_v6  ;;  %v5936_v16 = vunpack.i.l.bf16 %v5935_v6  ;;  %v3825_v18 = vsel %vm1988_vm5, %v3793_v45, %v5917_v43 }
 0x35f   : > { %v3857_v52 = vsel %vm2021_vm6, %v3825_v18, %v5927_v14  ;;  %v5952_v43 = vunpack.i.h.bf16 %v5950_v13  ;;  %v5951_v19 = vunpack.i.l.bf16 %v5950_v13  ;;  %v3801_v13 = vsel %vm1955_vm4, %v3769_v8, %v5941_v41  ;;  %v2547_v41 = vld [vmem:[#allocation3 + $0xcf] sm:$0xff] }
 0x360   : > { %3554 = vrot.lane.b32.xlu0 %v2756_v10, %s6293_s17  ;;  %6224 = vrot.lane.b32.xlu1 %v6203_v36, %s6290_s1  ;;  %v3889_v53 = vsel %vm2054_vm7, %v3857_v52, %v5937_v39  ;;  %v3896_v60 = vsel %vm2054_vm7, %v3864_v38, %v5936_v16  ;;  %v2789_v10 = vld [vmem:[#allocation3 + $0x230] sm:$0xff] }
 0x361   : > { %v5945_v30 = vpop.permute.xlu1 %5944  ;;  %v3826_v39 = vsel %vm1988_vm5, %v3794_v42, %v5952_v43  ;;  %v3833_v16 = vsel %vm1988_vm5, %v3801_v13, %v5951_v19  ;;  %v2548_v19 = vld [vmem:[#allocation3 + $0xe7] sm:$0xff] }
 0x362   : > { %v5960_v15 = vpop.permute.xlu0 %5959  ;;  %v5947_v36 = vunpack.i.h.bf16 %v5945_v30  ;;  %v5946_v0 = vunpack.i.l.bf16 %v5945_v30 }
 0x363   : > { %v5962_v7 = vunpack.i.h.bf16 %v5960_v15  ;;  %v5961_v14 = vunpack.i.l.bf16 %v5960_v15  ;;  %v2803_v15 = vld [vmem:[#allocation3 + $0x111] sm:$0xff] }
 0x364   : > { %3428 = vrot.lane.b32.xlu0 %v8248_v50, %s6289_s10  ;;  %3426 = vrot.lane.b32.xlu1 %v8250_v1, %s6289_s10  ;;  %v3921_v54 = vsel %vm2087_vm8, %v3889_v53, %v5947_v36  ;;  %v3928_v20 = vsel %vm2087_vm8, %v3896_v60, %v5946_v0 }
 0x365   : > { %v5955_v4 = vpop.permute.xlu1 %5954  ;;  %4164 = vmatmul.mubr.f32.gmra.mrb[22].mxu0 %v3921_v54  ;;  %4199 = vmatmul.mubr.f32.gmra.mrb[2].mxu1 %v3928_v20  ;;  %v3858_v34 = vsel %vm2021_vm6, %v3826_v39, %v5962_v7  ;;  %v3865_v40 = vsel %vm2021_vm6, %v3833_v16, %v5961_v14  ;;  %v2554_v54 = vld [vmem:[#allocation3 + $0x147] sm:$0xff] }
 0x366   : > { %v5970_v6 = vpop.permute.xlu0 %5969  ;;  %4914 = vmatprep.mubr.msk.f32.mxu0 %vm672_vm2, %v2802_v63  ;;  %4921 = vmatprep.mubr.msk.f32.mxu1 %vm672_vm2, %v2809_v29  ;;  %v5957_v29 = vunpack.i.h.bf16 %v5955_v4  ;;  %v5956_v21 = vunpack.i.l.bf16 %v5955_v4 }
 0x367   : > { %v5972_v51 = vunpack.i.h.bf16 %v5970_v6  ;;  %v5971_v9 = vunpack.i.l.bf16 %v5970_v6  ;;  %v2555_v6 = vld [vmem:[#allocation3 + $0x14f] sm:$0xff] }
 0x368   : > { %3682 = vrot.lane.b32.xlu1 %v2788_v11, %s6291_s3  ;;  %3684 = vrot.lane.b32.xlu0 %v2789_v10, %s6291_s3  ;;  %v3738_v42 = vsel %vm672_vm2, %v2554_v54, %v5956_v21 }
 0x369   : > { %v5965_v58 = vpop.permute.xlu1 %5964  ;;  %v3890_v18 = vsel %vm2054_vm7, %v3858_v34, %v5972_v51  ;;  %v3897_v3 = vsel %vm2054_vm7, %v3865_v40, %v5971_v9  ;;  %v3731_v9 = vsel %vm672_vm2, %v2547_v41, %v5957_v29  ;;  %v2804_v41 = vld [vmem:[#allocation3 + $0x129] sm:$0xff] }
 0x36a   : > { %v5980_v57 = vpop.permute.xlu0 %5979  ;;  %v5967_v20 = vunpack.i.h.bf16 %v5965_v58  ;;  %v5966_v11 = vunpack.i.l.bf16 %v5965_v58 }
 0x36b   : > { %v5982_v45 = vunpack.i.h.bf16 %v5980_v57  ;;  %v5981_v44 = vunpack.i.l.bf16 %v5980_v57 }
 0x36c   : > { %3556 = vrot.lane.b32.xlu1 %v2757_v12, %s6293_s17  ;;  %v3763_v12 = vsel %vm1922_vm3, %v3731_v9, %v5967_v20  ;;  %v3770_v39 = vsel %vm1922_vm3, %v3738_v42, %v5966_v11 }
 0x36d   : > { %v3922_v30 = vsel %vm2087_vm8, %v3890_v18, %v5982_v45  ;;  %v3929_v36 = vsel %vm2087_vm8, %v3897_v3, %v5981_v44  ;;  %v5975_v52 = vpop.permute.xlu1 %5974 }
 0x36e   : > { %v5990_v0 = vpop.permute.xlu0 %5989  ;;  %4169 = vmatmul.mubr.f32.gmra.mrb[24].mxu0 %v3922_v30  ;;  %4204 = vmatmul.mubr.f32.gmra.mrb[4].mxu1 %v3929_v36  ;;  %v5977_v8 = vunpack.i.h.bf16 %v5975_v52  ;;  %v5976_v43 = vunpack.i.l.bf16 %v5975_v52 }
 0x36f   : > { %4915 = vmatprep.mubr.msk.f32.mxu0 %vm672_vm2, %v2803_v15  ;;  %4922 = vmatprep.mubr.msk.f32.mxu1 %vm672_vm2, %v8042_v56  ;;  %v5992_v10 = vunpack.i.h.bf16 %v5990_v0  ;;  %v5991_v37 = vunpack.i.l.bf16 %v5990_v0 }
 0x370   : > { %v3795_v44 = vsel %vm1955_vm4, %v3763_v12, %v5977_v8  ;;  %v3802_v34 = vsel %vm1955_vm4, %v3770_v39, %v5976_v43 }
 0x371   : > { %v5985_v53 = vpop.permute.xlu1 %5984  ;;  %v3732_v58 = vsel %vm672_vm2, %v2548_v19, %v5992_v10  ;;  %v3739_v45 = vsel %vm672_vm2, %v2555_v6, %v5991_v37 }
 0x372   : > { %v6000_v38 = vpop.permute.xlu0 %5999  ;;  %v5987_v7 = vunpack.i.h.bf16 %v5985_v53  ;;  %v5986_v14 = vunpack.i.l.bf16 %v5985_v53 }
 0x373   : > { %v6002_v40 = vunpack.i.h.bf16 %v6000_v38  ;;  %v6001_v18 = vunpack.i.l.bf16 %v6000_v38 }
 0x374   : > { %v3827_v3 = vsel %vm1988_vm5, %v3795_v44, %v5987_v7  ;;  %v3834_v15 = vsel %vm1988_vm5, %v3802_v34, %v5986_v14  ;;  %v2805_v44 = vld [vmem:[#allocation3 + $0x131] sm:$0xff] }
 0x375   : > { %v5995_v63 = vpop.permute.xlu1 %5994  ;;  %v3764_v10 = vsel %vm1922_vm3, %v3732_v58, %v6002_v40  ;;  %v3771_v37 = vsel %vm1922_vm3, %v3739_v45, %v6001_v18 }
 0x376   : > { %v8288_v60 = vpop.permute.xlu0 %6009  ;;  %v5997_v13 = vunpack.i.h.bf16 %v5995_v63  ;;  %v5996_v4 = vunpack.i.l.bf16 %v5995_v63 }
 0x377   : > { %v6012_v54 = vunpack.i.h.bf16 %v8288_v60  ;;  %v6011_v38 = vunpack.i.l.bf16 %v8288_v60 }
 0x378   : > { %v3859_v53 = vsel %vm2021_vm6, %v3827_v3, %v5997_v13  ;;  %v3866_v63 = vsel %vm2021_vm6, %v3834_v15, %v5996_v4 }
 0x379   : > { %v6005_v51 = vpop.permute.xlu1 %6004  ;;  %v3796_v9 = vsel %vm1955_vm4, %v3764_v10, %v6012_v54  ;;  %v3803_v42 = vsel %vm1955_vm4, %v3771_v37, %v6011_v38  ;;  %v2550_v10 = vld [vmem:[#allocation3 + $0x107] sm:$0xff]  ;;  %v2557_v37 = vld [vmem:[#allocation3 + $0x16f] sm:$0xff] }
 0x37a   : > { %v6020_v56 = vpop.permute.xlu0 %6019  ;;  %v6007_v16 = vunpack.i.h.bf16 %v6005_v51  ;;  %v6006_v57 = vunpack.i.l.bf16 %v6005_v51 }
 0x37b   : > { %v6022_v8 = vunpack.i.h.bf16 %v6020_v56  ;;  %v6021_v43 = vunpack.i.l.bf16 %v6020_v56 }
 0x37c   : > { %v3891_v29 = vsel %vm2054_vm7, %v3859_v53, %v6007_v16  ;;  %v3898_v21 = vsel %vm2054_vm7, %v3866_v63, %v6006_v57  ;;  %v2549_v63 = vld [vmem:[#allocation3 + $0xef] sm:$0xff] }
 0x37d   : > { %v6015_v36 = vpop.permute.xlu1 %6014  ;;  %v3828_v13 = vsel %vm1988_vm5, %v3796_v9, %v6022_v8  ;;  %v3835_v56 = vsel %vm1988_vm5, %v3803_v42, %v6021_v43 }
 0x37e   : > { %v6030_v30 = vpop.permute.xlu0 %6029  ;;  %v6017_v0 = vunpack.i.h.bf16 %v6015_v36  ;;  %v6016_v52 = vunpack.i.l.bf16 %v6015_v36 }
 0x37f   : > { %v6032_v7 = vunpack.i.h.bf16 %v6030_v30  ;;  %v6031_v14 = vunpack.i.l.bf16 %v6030_v30 }
 0x380   : > { %v3923_v20 = vsel %vm2087_vm8, %v3891_v29, %v6017_v0  ;;  %v3930_v11 = vsel %vm2087_vm8, %v3898_v21, %v6016_v52  ;;  %v2556_v29 = vld [vmem:[#allocation3 + $0x167] sm:$0xff] }
 0x381   : > { %v6025_v6 = vpop.permute.xlu1 %6024  ;;  %4174 = vmatmul.mubr.f32.gmra.mrb[26].mxu0 %v3923_v20  ;;  %4209 = vmatmul.mubr.f32.gmra.mrb[6].mxu1 %v3930_v11  ;;  %v3860_v57 = vsel %vm2021_vm6, %v3828_v13, %v6032_v7  ;;  %v3867_v58 = vsel %vm2021_vm6, %v3835_v56, %v6031_v14 }
 0x382   : > { %v6040_v19 = vpop.permute.xlu0 %6039  ;;  %4916 = vmatprep.mubr.msk.f32.mxu0 %vm672_vm2, %v2804_v41  ;;  %4923 = vmatprep.mubr.msk.f32.mxu1 %vm672_vm2, %v8071_v22  ;;  %v6027_v52 = vunpack.i.h.bf16 %v6025_v6  ;;  %v6026_v53 = vunpack.i.l.bf16 %v6025_v6 }
 0x383   : > { %v6042_v60 = vunpack.i.h.bf16 %v6040_v19  ;;  %v6041_v51 = vunpack.i.l.bf16 %v6040_v19 }
 0x384   : > { %v3733_v7 = vsel %vm672_vm2, %v2549_v63, %v6027_v52  ;;  %v3740_v14 = vsel %vm672_vm2, %v2556_v29, %v6026_v53  ;;  %v2806_v52 = vld [vmem:[#allocation3 + $0x149] sm:$0xff] }
 0x385   : > { %v6035_v12 = vpop.permute.xlu1 %6034  ;;  %v3892_v22 = vsel %vm2054_vm7, %v3860_v57, %v6042_v60  ;;  %v3899_v45 = vsel %vm2054_vm7, %v3867_v58, %v6041_v51 }
 0x386   : > { %v6050_v4 = vpop.permute.xlu0 %6049  ;;  %v6037_v21 = vunpack.i.h.bf16 %v6035_v12  ;;  %v6036_v41 = vunpack.i.l.bf16 %v6035_v12 }
 0x387   : > { %v6052_v39 = vunpack.i.h.bf16 %v6050_v4  ;;  %v6051_v16 = vunpack.i.l.bf16 %v6050_v4 }
 0x388   : > { %v3765_v51 = vsel %vm1922_vm3, %v3733_v7, %v6037_v21  ;;  %v3772_v9 = vsel %vm1922_vm3, %v3740_v14, %v6036_v41 }
 0x389   : > { %v3924_v34 = vsel %vm2087_vm8, %v3892_v22, %v6052_v39  ;;  %v3931_v40 = vsel %vm2087_vm8, %v3899_v45, %v6051_v16  ;;  %v6045_v3 = vpop.permute.xlu1 %6044 }
 0x38a   : > { %v6060_v18 = vpop.permute.xlu0 %6059  ;;  %4179 = vmatmul.mubr.f32.gmra.mrb[28].mxu0 %v3924_v34  ;;  %4214 = vmatmul.mubr.f32.gmra.mrb[8].mxu1 %v3931_v40  ;;  %v6047_v20 = vunpack.i.h.bf16 %v6045_v3  ;;  %v6046_v11 = vunpack.i.l.bf16 %v6045_v3 }
 0x38b   : > { %4917 = vmatprep.mubr.msk.f32.mxu0 %vm672_vm2, %v2805_v44  ;;  %4924 = vmatprep.mubr.msk.f32.mxu1 %vm672_vm2, %v8105_v23  ;;  %v6062_v54 = vunpack.i.h.bf16 %v6060_v18  ;;  %v6061_v38 = vunpack.i.l.bf16 %v6060_v18 }
 0x38c   : > { %v3797_v12 = vsel %vm1955_vm4, %v3765_v51, %v6047_v20  ;;  %v3804_v39 = vsel %vm1955_vm4, %v3772_v9, %v6046_v11 }
 0x38d   : > { %v6055_v30 = vpop.permute.xlu1 %6054  ;;  %v3734_v56 = vsel %vm672_vm2, %v2550_v10, %v6062_v54  ;;  %v3741_v4 = vsel %vm672_vm2, %v2557_v37, %v6061_v38 }
 0x38e   : > { %v6070_v15 = vpop.permute.xlu0 %6069  ;;  %v6057_v8 = vunpack.i.h.bf16 %v6055_v30  ;;  %v6056_v43 = vunpack.i.l.bf16 %v6055_v30 }
 0x38f   : > { %v6072_v16 = vunpack.i.h.bf16 %v6070_v15  ;;  %v6071_v57 = vunpack.i.l.bf16 %v6070_v15 }
 0x390   : > { %v3829_v58 = vsel %vm1988_vm5, %v3797_v12, %v6057_v8  ;;  %v3836_v22 = vsel %vm1988_vm5, %v3804_v39, %v6056_v43 }
 0x391   : > { %v6065_v0 = vpop.permute.xlu1 %6064  ;;  %v3766_v21 = vsel %vm1922_vm3, %v3734_v56, %v6072_v16  ;;  %v3773_v41 = vsel %vm1922_vm3, %v3741_v4, %v6071_v57  ;;  %v2558_v57 = vld [vmem:[#allocation3 + $0x187] sm:$0xff] }
 0x392   : > { %v8326_v36 = vpop.permute.xlu0 %6079  ;;  %v6067_v60 = vunpack.i.h.bf16 %v6065_v0  ;;  %v6066_v6 = vunpack.i.l.bf16 %v6065_v0 }
 0x393   : > { %v6082_v53 = vunpack.i.h.bf16 %v8326_v36  ;;  %v6081_v15 = vunpack.i.l.bf16 %v8326_v36 }
 0x394   : > { %v3861_v18 = vsel %vm2021_vm6, %v3829_v58, %v6067_v60  ;;  %v3868_v3 = vsel %vm2021_vm6, %v3836_v22, %v6066_v6 }
 0x395   : > { %v6075_v19 = vpop.permute.xlu1 %6074  ;;  %v3798_v43 = vsel %vm1955_vm4, %v3766_v21, %v6082_v53 }
 0x396   : > { %v6090_v23 = vpop.permute.xlu0 %6089  ;;  %v6077_v42 = vunpack.i.h.bf16 %v6075_v19  ;;  %v6076_v13 = vunpack.i.l.bf16 %v6075_v19  ;;  %v3805_v19 = vsel %vm1955_vm4, %v3773_v41, %v6081_v15 }
 0x397   : > { %v6092_v54 = vunpack.i.h.bf16 %v6090_v23  ;;  %v6091_v38 = vunpack.i.l.bf16 %v6090_v23 }
 0x398   : > { %v3893_v30 = vsel %vm2054_vm7, %v3861_v18, %v6077_v42  ;;  %v3900_v0 = vsel %vm2054_vm7, %v3868_v3, %v6076_v13 }
 0x399   : > { %v6085_v44 = vpop.permute.xlu1 %6084  ;;  %v3830_v7 = vsel %vm1988_vm5, %v3798_v43, %v6092_v54  ;;  %v3837_v23 = vsel %vm1988_vm5, %v3805_v19, %v6091_v38 }
 0x39a   : > { %v6100_v45 = vpop.permute.xlu0 %6099  ;;  %v6087_v34 = vunpack.i.h.bf16 %v6085_v44  ;;  %v6086_v40 = vunpack.i.l.bf16 %v6085_v44  ;;  %v2559_v44 = vld [vmem:[#allocation3 + $0x18f] sm:$0xff] }
 0x39b   : > { %v6102_v10 = vunpack.i.h.bf16 %v6100_v45  ;;  %v6101_v37 = vunpack.i.l.bf16 %v6100_v45 }
 0x39c   : > { %v3925_v63 = vsel %vm2087_vm8, %v3893_v30, %v6087_v34  ;;  %v3932_v29 = vsel %vm2087_vm8, %v3900_v0, %v6086_v40 }
 0x39d   : > { %v6095_v11 = vpop.permute.xlu1 %6094  ;;  %4184 = vmatmul.mubr.f32.gmra.mrb[30].mxu0 %v3925_v63  ;;  %4219 = vmatmul.mubr.f32.gmra.mrb[10].mxu1 %v3932_v29  ;;  %v3862_v9 = vsel %vm2021_vm6, %v3830_v7, %v6102_v10  ;;  %v3869_v42 = vsel %vm2021_vm6, %v3837_v23, %v6101_v37  ;;  %v2560_v23 = vld [vmem:[#allocation3 + $0x1a7] sm:$0xff] }
 0x39e   : > { %v6110_v20 = vpop.permute.xlu0 %6109  ;;  %4918 = vmatprep.mubr.msk.f32.mxu0 %vm672_vm2, %v2806_v52  ;;  %4925 = vmatprep.mubr.msk.f32.mxu1 %vm672_vm2, %v8107_v55  ;;  %v6096_v12 = vunpack.i.l.bf16 %v6095_v11  ;;  %v6097_v22 = vunpack.i.h.bf16 %v6095_v11 }
 0x39f   : > { %v6112_v36 = vunpack.i.h.bf16 %v6110_v20  ;;  %v6111_v8 = vunpack.i.l.bf16 %v6110_v20 }
 0x3a0   : > { %v3742_v40 = vsel %vm672_vm2, %v2558_v57, %v6096_v12  ;;  %v3743_v15 = vsel %vm672_vm2, %v2559_v44, %v6097_v22 }
 0x3a1   : > { %v6105_v60 = vpop.permute.xlu1 %6104  ;;  %v3894_v55 = vsel %vm2054_vm7, %v3862_v9, %v6112_v36  ;;  %v3901_v13 = vsel %vm2054_vm7, %v3869_v42, %v6111_v8 }
 0x3a2   : > { %v6120_v14 = vpop.permute.xlu0 %6119  ;;  %v6106_v58 = vunpack.i.l.bf16 %v6105_v60  ;;  %v6107_v34 = vunpack.i.h.bf16 %v6105_v60 }
 0x3a3   : > { %v6122_v6 = vunpack.i.h.bf16 %v6120_v14  ;;  %v6121_v51 = vunpack.i.l.bf16 %v6120_v14 }
 0x3a4   : > { %v3774_v0 = vsel %vm1922_vm3, %v3742_v40, %v6106_v58 }
 0x3a5   : > { %v3926_v56 = vsel %vm2087_vm8, %v3894_v55, %v6122_v6  ;;  %v3933_v4 = vsel %vm2087_vm8, %v3901_v13, %v6121_v51  ;;  %v6115_v16 = vpop.permute.xlu1 %6114 }
 0x3a6   : > { %v6130_v39 = vpop.permute.xlu0 %6129  ;;  %4189 = vmatmul.mubr.f32.gmra.mrb[32].mxu0 %v3926_v56  ;;  %4224 = vmatmul.mubr.f32.gmra.mrb[12].mxu1 %v3933_v4  ;;  %v6116_v45 = vunpack.i.l.bf16 %v6115_v16  ;;  %v6117_v18 = vunpack.i.h.bf16 %v6115_v16  ;;  %v2561_v56 = vld [vmem:[#allocation3 + $0x1af] sm:$0xff] }
 0x3a7   : > { %4926 = vmatprep.mubr.msk.f32.mxu1 %vm672_vm2, %v8162_v61  ;;  %v6131_v63 = vunpack.i.l.bf16 %v6130_v39  ;;  %v3775_v61 = vsel %vm1922_vm3, %v3743_v15, %v6107_v34  ;;  %v6132_v41 = vunpack.i.h.bf16 %v6130_v39 }
 0x3a8   : > { %v3806_v29 = vsel %vm1955_vm4, %v3774_v0, %v6116_v45  ;;  %v3807_v54 = vsel %vm1955_vm4, %v3775_v61, %v6117_v18 }
 0x3a9   : > { %v6125_v30 = vpop.permute.xlu1 %6124 }
 0x3aa   : > { %v6140_v3 = vpop.permute.xlu0 %6139  ;;  %v6127_v52 = vunpack.i.h.bf16 %v6125_v30  ;;  %v6126_v53 = vunpack.i.l.bf16 %v6125_v30 }
 0x3ab   : > { %v6141_v38 = vunpack.i.l.bf16 %v6140_v3  ;;  %v6142_v19 = vunpack.i.h.bf16 %v6140_v3 }
 0x3ac   : > { %v3838_v21 = vsel %vm1988_vm5, %v3806_v29, %v6126_v53  ;;  %v3839_v10 = vsel %vm1988_vm5, %v3807_v54, %v6127_v52 }
 0x3ad   : > { %v6135_v11 = vpop.permute.xlu1 %6134  ;;  %v3870_v8 = vsel %vm2021_vm6, %v3838_v21, %v6131_v63  ;;  %v3871_v6 = vsel %vm2021_vm6, %v3839_v10, %v6132_v41 }
 0x3ae   : > { %v6150_v20 = vpop.permute.xlu0 %6149  ;;  %v6137_v37 = vunpack.i.h.bf16 %v6135_v11  ;;  %v6136_v36 = vunpack.i.l.bf16 %v6135_v11 }
 0x3af   : > { %v6151_v42 = vunpack.i.l.bf16 %v6150_v20  ;;  %v6152_v57 = vunpack.i.h.bf16 %v6150_v20 }
 0x3b0   : > { %v3902_v43 = vsel %vm2054_vm7, %v3870_v8, %v6136_v36  ;;  %v3903_v9 = vsel %vm2054_vm7, %v3871_v6, %v6137_v37 }
 0x3b1   : > { %v6145_v14 = vpop.permute.xlu1 %6144  ;;  %v3934_v60 = vsel %vm2087_vm8, %v3902_v43, %v6141_v38  ;;  %v3935_v39 = vsel %vm2087_vm8, %v3903_v9, %v6142_v19 }
 0x3b2   : > { %v6160_v7 = vpop.permute.xlu0 %6159  ;;  %v6146_v51 = vunpack.i.l.bf16 %v6145_v14  ;;  %4229 = vmatmul.mubr.f32.gmra.mrb[14].mxu1 %v3934_v60  ;;  %v6147_v55 = vunpack.i.h.bf16 %v6145_v14 }
 0x3b3   : > { %4927 = vmatprep.mubr.msk.f32.mxu1 %vm672_vm2, %v8164_v33  ;;  %v6161_v58 = vunpack.i.l.bf16 %v6160_v7  ;;  %v6162_v3 = vunpack.i.h.bf16 %v6160_v7 }
 0x3b4   : > { %v3744_v13 = vsel %vm672_vm2, %v2560_v23, %v6146_v51  ;;  %v3745_v45 = vsel %vm672_vm2, %v2561_v56, %v6147_v55 }
 0x3b5   : > { %v6155_v12 = vpop.permute.xlu1 %6154  ;;  %v3776_v22 = vsel %vm1922_vm3, %v3744_v13, %v6151_v42  ;;  %v3777_v0 = vsel %vm1922_vm3, %v3745_v45, %v6152_v57 }
 0x3b6   : > { %v6170_v4 = vpop.permute.xlu0 %6169  ;;  %v6156_v16 = vunpack.i.l.bf16 %v6155_v12  ;;  %4234 = vmatmul.mubr.f32.gmra.mrb[16].mxu1 %v3935_v39  ;;  %v6157_v33 = vunpack.i.h.bf16 %v6155_v12 }
 0x3b7   : > { %4928 = vmatprep.mubr.msk.f32.mxu1 %vm672_vm2, %v8199_v62  ;;  %v6171_v30 = vunpack.i.l.bf16 %v6170_v4  ;;  %v6172_v21 = vunpack.i.h.bf16 %v6170_v4 }
 0x3b8   : > { %v3808_v44 = vsel %vm1955_vm4, %v3776_v22, %v6156_v16  ;;  %v3809_v53 = vsel %vm1955_vm4, %v3777_v0, %v6157_v33 }
 0x3b9   : > { %v6165_v40 = vpop.permute.xlu1 %6164  ;;  %v3840_v52 = vsel %vm1988_vm5, %v3808_v44, %v6161_v58  ;;  %v3841_v38 = vsel %vm1988_vm5, %v3809_v53, %v6162_v3 }
 0x3ba   : > { %v6180_v34 = vpop.permute.xlu0 %6179  ;;  %v6166_v18 = vunpack.i.l.bf16 %v6165_v40  ;;  %v6167_v15 = vunpack.i.h.bf16 %v6165_v40 }
 0x3bb   : > { %v6181_v41 = vunpack.i.l.bf16 %v6180_v34  ;;  %v6182_v37 = vunpack.i.h.bf16 %v6180_v34 }
 0x3bc   : > { %v3872_v63 = vsel %vm2021_vm6, %v3840_v52, %v6166_v18  ;;  %v3873_v10 = vsel %vm2021_vm6, %v3841_v38, %v6167_v15 }
 0x3bd   : > { %v6175_v29 = vpop.permute.xlu1 %6174  ;;  %v3904_v54 = vsel %vm2054_vm7, %v3872_v63, %v6171_v30  ;;  %v3746_v7 = vsel %vm672_vm2, %v8132_v5, %v6181_v41  ;;  %v3905_v14 = vsel %vm2054_vm7, %v3873_v10, %v6172_v21  ;;  %v3747_v51 = vsel %vm672_vm2, %v8134_v46, %v6182_v37 }
 0x3be   : > { %v6190_v62 = vpop.permute.xlu0 %6189  ;;  %v6176_v61 = vunpack.i.l.bf16 %v6175_v29  ;;  %v6177_v20 = vunpack.i.h.bf16 %v6175_v29 }
 0x3bf   : > { %v6191_v23 = vunpack.i.l.bf16 %v6190_v62  ;;  %v6192_v9 = vunpack.i.h.bf16 %v6190_v62  ;;  %v2820_v62 = vld [vmem:[#allocation3 + $0x229] sm:$0xff] }
 0x3c0   : > { %v3936_v11 = vsel %vm2087_vm8, %v3904_v54, %v6176_v61  ;;  %v3937_v6 = vsel %vm2087_vm8, %v3905_v14, %v6177_v20  ;;  %v2821_v14 = vld [vmem:[#allocation3 + $0x231] sm:$0xff] }
 0x3c1   : > { %v6185_v8 = vpop.permute.xlu1 %6184  ;;  %4239 = vmatmul.mubr.f32.gmra.mrb[18].mxu1 %v3936_v11 }
 0x3c2   : > { %v6200_v36 = vpop.permute.xlu0 %6199  ;;  %v6187_v43 = vunpack.i.h.bf16 %v6185_v8  ;;  %v6186_v19 = vunpack.i.l.bf16 %v6185_v8  ;;  %4929 = vmatprep.mubr.msk.f32.mxu1 %vm672_vm2, %v8201_v49 }
 0x3c3   : > { %v6201_v5 = vunpack.i.l.bf16 %v6200_v36  ;;  %v6202_v39 = vunpack.i.h.bf16 %v6200_v36 }
 0x3c4   : > { %v3778_v60 = vsel %vm1922_vm3, %v3746_v7, %v6186_v19  ;;  %v3779_v13 = vsel %vm1922_vm3, %v3747_v51, %v6187_v43 }
 0x3c5   : > { %4244 = vmatmul.mubr.f32.gmra.mrb[20].mxu1 %v3937_v6  ;;  %v3810_v4 = vsel %vm1955_vm4, %v3778_v60, %v6191_v23  ;;  %v3811_v46 = vsel %vm1955_vm4, %v3779_v13, %v6192_v9 }
 0x3c6   : > { %v6210_v42 = vpop.permute.xlu0 %6209  ;;  %v6195_v55 = vpop.permute.xlu1 %6194  ;;  %4930 = vmatprep.mubr.msk.f32.mxu1 %vm672_vm2, %v8250_v1 }
 0x3c7   : > { %v6197_v49 = vunpack.i.h.bf16 %v6195_v55  ;;  %v6196_v56 = vunpack.i.l.bf16 %v6195_v55  ;;  %v6211_v16 = vunpack.i.l.bf16 %v6210_v42  ;;  %v6212_v1 = vunpack.i.h.bf16 %v6210_v42 }
 0x3c9   : > { %v3842_v12 = vsel %vm1988_vm5, %v3810_v4, %v6196_v56  ;;  %v3843_v22 = vsel %vm1988_vm5, %v3811_v46, %v6197_v49 }
 0x3ca   : > { %v6220_v57 = vpop.permute.xlu0 %6219  ;;  %v6205_v58 = vpop.permute.xlu1 %6204  ;;  %v3874_v44 = vsel %vm2021_vm6, %v3842_v12, %v6201_v5  ;;  %v3875_v30 = vsel %vm2021_vm6, %v3843_v22, %v6202_v39 }
 0x3cb   : > { %v6207_v45 = vunpack.i.h.bf16 %v6205_v58  ;;  %v6206_v33 = vunpack.i.l.bf16 %v6205_v58  ;;  %v6221_v53 = vunpack.i.l.bf16 %v6220_v57  ;;  %v6222_v41 = vunpack.i.h.bf16 %v6220_v57 }
 0x3cd   : > { %v3906_v34 = vsel %vm2054_vm7, %v3874_v44, %v6206_v33  ;;  %v3907_v52 = vsel %vm2054_vm7, %v3875_v30, %v6207_v45 }
 0x3ce   : > { %v6230_v40 = vpop.permute.xlu0 %6229  ;;  %v6215_v18 = vpop.permute.xlu1 %6214  ;;  %v3938_v3 = vsel %vm2087_vm8, %v3906_v34, %v6211_v16  ;;  %v3939_v21 = vsel %vm2087_vm8, %v3907_v52, %v6212_v1 }
 0x3cf   : > { %v6216_v0 = vunpack.i.l.bf16 %v6215_v18  ;;  %4249 = vmatmul.mubr.f32.gmra.mrb[22].mxu1 %v3938_v3  ;;  %v6217_v15 = vunpack.i.h.bf16 %v6215_v18  ;;  %v6231_v29 = vunpack.i.l.bf16 %v6230_v40  ;;  %v6232_v36 = vunpack.i.h.bf16 %v6230_v40  ;;  %v4339_v40 = vld [vmem:[%s6414_s25] sm:$0xff]  ;;  %v4340_v18 = vld [vmem:[%s6414_s25 + $0x8] sm:$0xff] }
 0x3d0   : > { %4931 = vmatprep.mubr.msk.f32.mxu1 %vm672_vm2, %v8248_v50  ;;  %v5016_v3 = vpack.c.bf16 %v4340_v18, %v4339_v40 }
 0x3d1   : > { %v3748_v63 = vsel %vm672_vm2, %v8153_v28, %v6216_v0  ;;  %v3749_v20 = vsel %vm672_vm2, %v8155_v25, %v6217_v15 }
 0x3d2   : > { %v6225_v61 = vpop.permute.xlu1 %6224  ;;  %v3555_v54 = vpop.permute.xlu0 %3554  ;;  %v3780_v10 = vsel %vm1922_vm3, %v3748_v63, %v6221_v53  ;;  %v3781_v8 = vsel %vm1922_vm3, %v3749_v20, %v6222_v41  ;;  %5017 = vmatpush3.bf16.msra.mxu1 %v5016_v3 }
 0x3d3   : > { %v6226_v38 = vunpack.i.l.bf16 %v6225_v61  ;;  %4254 = vmatmul.mubr.f32.gmra.mrb[24].mxu1 %v3939_v21  ;;  %v6227_v11 = vunpack.i.h.bf16 %v6225_v61 }
 0x3d4   : > { %4932 = vmatprep.mubr.msk.f32.mxu1 %vm672_vm2, %v2820_v62 }
 0x3d5   : > { %v3812_v50 = vsel %vm1955_vm4, %v3780_v10, %v6226_v38  ;;  %v3813_v19 = vsel %vm1955_vm4, %v3781_v8, %v6227_v11 }
 0x3d6   : > { %v3427_v28 = vpop.permute.xlu1 %3426  ;;  %v3844_v37 = vsel %vm1988_vm5, %v3812_v50, %v6231_v29  ;;  %v3429_v7 = vpop.permute.xlu0 %3428  ;;  %v3845_v60 = vsel %vm1988_vm5, %v3813_v19, %v6232_v36  ;;  %v6295_v50 = vmov 0.0  }
 0x3d7   : > { %v3876_v43 = vsel %vm2021_vm6, %v3844_v37, %v3427_v28  ;;  %v3877_v9 = vsel %vm2021_vm6, %v3845_v60, %v3429_v7  ;;  %4956 = vmatprep.subr.mxu1 %v6295_v50 }
 0x3d8   : > { %v3908_v25 = vsel %vm2054_vm7, %v3876_v43, %v3555_v54 }
 0x3da   : > { %v3683_v23 = vpop.permute.xlu1 %3682  ;;  %v3685_v51 = vpop.permute.xlu0 %3684 }
 0x3db   : > { %v3940_v6 = vsel %vm2087_vm8, %v3908_v25, %v3683_v23  ;;  %v8455_v25 = vld [vmem:[%s9049_s24] ss:$0 sm:$0xff] }
 0x3dc   : > { %4259 = vmatmul.mubr.f32.gmra.mrb[26].mxu1 %v3940_v6 }
 0x3dd   : > { %4933 = vmatprep.mubr.msk.f32.mxu1 %vm672_vm2, %v2821_v14  ;;  %v4110_v42 = vpop.f32.mrb[0].mxu0 }
 0x3de   : > { %v3557_v55 = vpop.permute.xlu1 %3556  ;;  %v4112_v49 = vpop.f32.mrb[1].mxu0  ;;  %v8461_v60 = vadd.f32 %v8455_v25, %v4110_v42 }
 0x3df   : > { %v3909_v13 = vsel %vm2054_vm7, %v3877_v9, %v3557_v55 }
 0x3e0   : > { %v3941_v56 = vsel %vm2087_vm8, %v3909_v13, %v3685_v51  ;;  %v4269_v55 = vsel %vm672_vm2, %v8461_v60, 0.0 }
 0x3e1   : > { %4264 = vmatmul.mubr.f32.gmra.mrb[28].mxu1 %v3941_v56  ;;  %v4115_v5 = vpop.f32.mrb[2].mxu0 }
 0x3e2   : > { %v4117_v4 = vpop.f32.mrb[3].mxu0  ;;  %4953 = vmatprep.mubr.msk.f32.mxu1 %vm6294_vm9, %v6295_v50  ;;  %v8458_v14 = vadd.f32 %v8455_v25, %v4115_v5 }
 0x3e4   : > { %v4270_v51 = vsel %vm672_vm2, %v8458_v14, 0.0 }
 0x3e5   : > { %v4271_v42 = vadd.f32 %v4270_v51, %v4269_v55 }
 0x3ec   : > { %v4120_v12 = vpop.f32.mrb[4].mxu0 }
 0x3ed   : > { %v4122_v39 = vpop.f32.mrb[5].mxu0  ;;  %v8464_v6 = vadd.f32 %v8455_v25, %v4120_v12 }
 0x3ef   : > { %v4272_v13 = vsel %vm672_vm2, %v8464_v6, 0.0 }
 0x3f0   : > { %v4125_v16 = vpop.f32.mrb[6].mxu0  ;;  %v4273_v4 = vadd.f32 %v4272_v13, %v4271_v42 }
 0x3f1   : > { %v4127_v46 = vpop.f32.mrb[7].mxu0  ;;  %v8469_v9 = vadd.f32 %v8455_v25, %v4125_v16 }
 0x3f3   : > { %v4274_v56 = vsel %vm672_vm2, %v8469_v9, 0.0 }
 0x3f4   : > { %v4275_v16 = vadd.f32 %v4274_v56, %v4273_v4 }
 0x3f9   : > { %v4130_v57 = vpop.f32.mrb[8].mxu0 }
 0x3fa   : > { %v4132_v58 = vpop.f32.mrb[9].mxu0  ;;  %v8476_v49 = vadd.f32 %v8455_v25, %v4130_v57 }
 0x3fc   : > { %v4276_v12 = vsel %vm672_vm2, %v8476_v49, 0.0 }
 0x3fd   : > { %v4135_v22 = vpop.f32.mrb[10].mxu0  ;;  %v4277_v58 = vadd.f32 %v4276_v12, %v4275_v16 }
 0x3fe   : > { %v4137_v45 = vpop.f32.mrb[11].mxu0  ;;  %v8481_v5 = vadd.f32 %v8455_v25, %v4135_v22 }
 0x400   : > { %v4278_v46 = vsel %vm672_vm2, %v8481_v5, 0.0 }
 0x401   : > { %v4279_v40 = vadd.f32 %v4278_v46, %v4277_v58 }
 0x408   : > { %v4140_v33 = vpop.f32.mrb[12].mxu0 }
 0x409   : > { %v4142_v44 = vpop.f32.mrb[13].mxu0  ;;  %v8486_v39 = vadd.f32 %v8455_v25, %v4140_v33 }
 0x40b   : > { %v4280_v45 = vsel %vm672_vm2, %v8486_v39, 0.0 }
 0x40c   : > { %v4145_v34 = vpop.f32.mrb[14].mxu0 }
 0x40d   : > { %v4147_v1 = vpop.f32.mrb[15].mxu0  ;;  %v8491_v57 = vadd.f32 %v8455_v25, %v4145_v34  ;;  %v4281_v34 = vadd.f32 %v4280_v45, %v4279_v40 }
 0x40f   : > { %v4282_v3 = vsel %vm672_vm2, %v8491_v57, 0.0 }
 0x418   : > { %v4150_v30 = vpop.f32.mrb[16].mxu0 }
 0x419   : > { %v4152_v0 = vpop.f32.mrb[17].mxu0  ;;  %v8496_v22 = vadd.f32 %v8455_v25, %v4150_v30  ;;  %v4283_v30 = vadd.f32 %v4282_v3, %v4281_v34 }
 0x41c   : > { %v4155_v52 = vpop.f32.mrb[18].mxu0 }
 0x41d   : > { %v4157_v53 = vpop.f32.mrb[19].mxu0  ;;  %v8501_v0 = vadd.f32 %v8455_v25, %v4155_v52 }
 0x41e   : > { %v4284_v53 = vsel %vm672_vm2, %v8496_v22, 0.0 }
 0x425   : > { %v4160_v15 = vpop.f32.mrb[20].mxu0  ;;  %v8437_v63 = vpop.f32.mrb[0].mxu1 }
 0x426   : > { %v4162_v62 = vpop.f32.mrb[21].mxu0  ;;  %v4197_v29 = vpop.f32.mrb[1].mxu1 }
 0x427   : > { %v8506_v62 = vadd.f32 %v8455_v25, %v4160_v15  ;;  %v4286_v29 = vsel %vm672_vm2, %v8501_v0, 0.0 }
 0x438   : > { %v4165_v61 = vpop.f32.mrb[22].mxu0  ;;  %v8439_v21 = vpop.f32.mrb[2].mxu1 }
 0x439   : > { %v4167_v41 = vpop.f32.mrb[23].mxu0  ;;  %v4202_v54 = vpop.f32.mrb[3].mxu1 }
 0x43a   : > { %v8511_v41 = vadd.f32 %v8455_v25, %v4165_v61  ;;  %v4285_v54 = vadd.f32 %v4284_v53, %v4283_v30  ;;  %v8550_v53 = vadd.f32 %v8455_v25, %v8439_v21 }
 0x441   : > { %v4170_v38 = vpop.f32.mrb[24].mxu0  ;;  %v8441_v20 = vpop.f32.mrb[4].mxu1 }
 0x442   : > { %v4172_v11 = vpop.f32.mrb[25].mxu0  ;;  %v4207_v10 = vpop.f32.mrb[5].mxu1  ;;  %v8516_v52 = vadd.f32 %v8455_v25, %v4170_v38 }
 0x443   : > { %v4288_v11 = vsel %vm672_vm2, %v8506_v62, 0.0 }
 0x444   : > { %v4292_v55 = vsel %vm672_vm2, %v8516_v52, 0.0 }
 0x454   : > { %v4175_v28 = vpop.f32.mrb[26].mxu0  ;;  %v8446_v37 = vpop.f32.mrb[6].mxu1 }
 0x455   : > { %v4177_v36 = vpop.f32.mrb[27].mxu0  ;;  %v4212_v8 = vpop.f32.mrb[7].mxu1  ;;  %v8521_v51 = vadd.f32 %v8455_v25, %v4175_v28 }
 0x456   : > { %v4287_v8 = vadd.f32 %v4286_v29, %v4285_v54  ;;  %v4304_v54 = vsel %vm672_vm2, %v8550_v53, 0.0 }
 0x457   : > { %v4294_v42 = vsel %vm672_vm2, %v8521_v51, 0.0 }
 0x458   : > { %v4289_v61 = vadd.f32 %v4288_v11, %v4287_v8  ;;  %v8556_v11 = vadd.f32 %v8455_v25, %v8441_v20  ;;  %v8562_v8 = vadd.f32 %v8455_v25, %v8446_v37 }
 0x45d   : > { %v4180_v43 = vpop.f32.mrb[28].mxu0  ;;  %v8448_v19 = vpop.f32.mrb[8].mxu1 }
 0x45e   : > { %v4182_v7 = vpop.f32.mrb[29].mxu0  ;;  %v4217_v23 = vpop.f32.mrb[9].mxu1  ;;  %v8526_v13 = vadd.f32 %v8455_v25, %v4180_v43 }
 0x45f   : > { %v4290_v23 = vsel %vm672_vm2, %v8511_v41, 0.0 }
 0x460   : > { %v4291_v38 = vadd.f32 %v4290_v23, %v4289_v61  ;;  %v4296_v12 = vsel %vm672_vm2, %v8526_v13, 0.0  ;;  %v4308_v23 = vsel %vm672_vm2, %v8562_v8, 0.0  ;;  %v8568_v61 = vadd.f32 %v8455_v25, %v8448_v19 }
 0x462   : > { %v4293_v4 = vadd.f32 %v4292_v55, %v4291_v38 }
 0x464   : > { %v4295_v16 = vadd.f32 %v4294_v42, %v4293_v4  ;;  %v4310_v42 = vsel %vm672_vm2, %v8568_v61, 0.0 }
 0x466   : > { %v4297_v43 = vadd.f32 %v4296_v12, %v4295_v16 }
 0x470   : > { %v4185_v44 = vpop.f32.mrb[30].mxu0  ;;  %v4220_v1 = vpop.f32.mrb[10].mxu1 }
 0x471   : > { %v4187_v18 = vpop.f32.mrb[31].mxu0  ;;  %v4222_v33 = vpop.f32.mrb[11].mxu1  ;;  %v8531_v56 = vadd.f32 %v8455_v25, %v4185_v44  ;;  %v8544_v44 = vadd.f32 %v8455_v25, %v8437_v63  ;;  %v8573_v4 = vadd.f32 %v8455_v25, %v4220_v1 }
 0x473   : > { %v4298_v46 = vsel %vm672_vm2, %v8531_v56, 0.0  ;;  %v4302_v34 = vsel %vm672_vm2, %v8544_v44, 0.0  ;;  %v4312_v12 = vsel %vm672_vm2, %v8573_v4, 0.0 }
 0x474   : > { %v4299_v45 = vadd.f32 %v4298_v46, %v4297_v43 }
 0x479   : > { %v4190_v10 = vpop.f32.mrb[32].mxu0  ;;  %v4225_v36 = vpop.f32.mrb[12].mxu1 }
 0x47a   : > { %v4192_v7 = vpop.f32.mrb[33].mxu0  ;;  %v4227_v15 = vpop.f32.mrb[13].mxu1  ;;  %v8536_v28 = vadd.f32 %v8455_v25, %v4190_v10  ;;  %v4306_v10 = vsel %vm672_vm2, %v8556_v11, 0.0  ;;  %v8578_v16 = vadd.f32 %v8455_v25, %v4225_v36 }
 0x47c   : > { %v4300_v58 = vsel %vm672_vm2, %v8536_v28, 0.0  ;;  %v4314_v19 = vsel %vm672_vm2, %v8578_v16, 0.0 }
 0x47d   : > { %v4301_v33 = vadd.f32 %v4300_v58, %v4299_v45 }
 0x47f   : > { %v4303_v29 = vadd.f32 %v4302_v34, %v4301_v33 }
 0x481   : > { %v4305_v63 = vadd.f32 %v4304_v54, %v4303_v29 }
 0x483   : > { %v4307_v7 = vadd.f32 %v4306_v10, %v4305_v63 }
 0x485   : > { %v4230_v40 = vpop.f32.mrb[14].mxu1  ;;  %v4309_v20 = vadd.f32 %v4308_v23, %v4307_v7 }
 0x486   : > { %v4232_v18 = vpop.f32.mrb[15].mxu1  ;;  %v8583_v58 = vadd.f32 %v8455_v25, %v4230_v40 }
 0x487   : > { %v4311_v37 = vadd.f32 %v4310_v42, %v4309_v20 }
 0x488   : > { %v4316_v34 = vsel %vm672_vm2, %v8583_v58, 0.0 }
 0x489   : > { %v4235_v3 = vpop.f32.mrb[16].mxu1  ;;  %v4313_v46 = vadd.f32 %v4312_v12, %v4311_v37 }
 0x48a   : > { %v4237_v30 = vpop.f32.mrb[17].mxu1  ;;  %v8586_v1 = vadd.f32 %v8455_v25, %v4235_v3 }
 0x48b   : > { %v4315_v18 = vadd.f32 %v4314_v19, %v4313_v46 }
 0x48c   : > { %v4318_v54 = vsel %vm672_vm2, %v8586_v1, 0.0 }
 0x48d   : > { %v4317_v29 = vadd.f32 %v4316_v34, %v4315_v18 }
 0x48f   : > { %v4319_v10 = vadd.f32 %v4318_v54, %v4317_v29 }
 0x494   : > { %v4240_v21 = vpop.f32.mrb[18].mxu1 }
 0x495   : > { %v4242_v15 = vpop.f32.mrb[19].mxu1  ;;  %v8591_v36 = vadd.f32 %v8455_v25, %v4240_v21 }
 0x497   : > { %v4320_v63 = vsel %vm672_vm2, %v8591_v36, 0.0 }
 0x498   : > { %v4245_v55 = vpop.f32.mrb[20].mxu1  ;;  %v4321_v15 = vadd.f32 %v4320_v63, %v4319_v10 }
 0x499   : > { %v4247_v38 = vpop.f32.mrb[21].mxu1  ;;  %v8596_v40 = vadd.f32 %v8455_v25, %v4245_v55 }
 0x49b   : > { %v4322_v7 = vsel %vm672_vm2, %v8596_v40, 0.0 }
 0x49c   : > { %v4323_v55 = vadd.f32 %v4322_v7, %v4321_v15 }
 0x4a2   : > { %v4250_v43 = vpop.f32.mrb[22].mxu1 }
 0x4a3   : > { %v4252_v45 = vpop.f32.mrb[23].mxu1  ;;  %v8601_v3 = vadd.f32 %v8455_v25, %v4250_v43 }
 0x4a5   : > { %v4324_v23 = vsel %vm672_vm2, %v8601_v3, 0.0 }
 0x4a6   : > { %v4255_v33 = vpop.f32.mrb[24].mxu1  ;;  %v4325_v12 = vadd.f32 %v4324_v23, %v4323_v55 }
 0x4a7   : > { %v4257_v30 = vpop.f32.mrb[25].mxu1  ;;  %v8606_v21 = vadd.f32 %v8455_v25, %v4255_v33 }
 0x4a9   : > { %v4326_v37 = vsel %vm672_vm2, %v8606_v21, 0.0 }
 0x4aa   : > { %v4327_v43 = vadd.f32 %v4326_v37, %v4325_v12 }
 0x4af   : > { %v4260_v20 = vpop.f32.mrb[26].mxu1 }
 0x4b0   : > { %v8611_v38 = vadd.f32 %v8455_v25, %v4260_v20  ;;  %v4262_v42 = vpop.f32.mrb[27].mxu1  ;;  %v4341_v20 = vld [vmem:[%s465_s22] sm:$0x1] }
 0x4b2   : > { %v4328_v46 = vsel %vm672_vm2, %v8611_v38, 0.0 }
 0x4b3   : > { %v4329_v33 = vadd.f32 %v4328_v46, %v4327_v43  ;;  %v4417_v46 = vld [vmem:[%s472_s21] sm:$0x1] }
 0x4b4   : > { %v4265_v19 = vpop.f32.mrb[28].mxu1 }
 0x4b5   : > { %v8618_v45 = vadd.f32 %v8455_v25, %v4265_v19  ;;  %v4267_v18 = vpop.f32.mrb[29].mxu1  ;;  %v4416_v25 = vld [vmem:[%s6420_s29] sm:$0xf] }
 0x4b7   : > { %v4330_v34 = vsel %vm672_vm2, %v8618_v45, 0.0 }
 0x4b8   : > { %v4331_v30 = vadd.f32 %v4330_v34, %v4329_v33 }
 0x4ba   : > { %v4332_v29 = vrot.slane %v4331_v30, 4 }
 0x4bc   : > { %v4333_v54 = vadd.f32 %v4332_v29, %v4331_v30  ;;  %v4502_v30 = vlaneseq }
 0x4be   : > { %v4334_v63 = vrot.slane %v4333_v54, 2  ;;  %v4503_v29 = vshrl.u32 %v4502_v30, 7  ;;  %v9056_v30 = vld [vmem:[#allocation13_spill] sm:$0xff] }
 0x4c0   : > { %v4335_v10 = vadd.f32 %v4334_v63, %v4333_v54  ;;  %v4504_v54 = vsub.s32 0, %v4503_v29  ;;  %v9057_v29 = vld [vmem:[#allocation14_spill] sm:$0xff] }
 0x4c2   : > { %v4336_v7 = vrot.slane %v4335_v10, 1 }
 0x4c4   : > { %v4337_v15 = vadd.f32 %v4336_v7, %v4335_v10 }
 0x4c6   : > { %v4338_v23 = vmul.f32 0.00390625, %v4337_v15 }
 0x4c8   : > { %4954 = vmatmul.mubr.msk.f32.vlgmr.msra.gmra.mrb[30].mxu1 %vm672_vm2, %v4338_v23 }
 0x4c9   : > { %4958 = vmatprep.mubr.msk.f32.mxu1 %vm6294_vm9, %v6295_v50  ;;  %4957 = vmatpush3.msk.msra.mxu1 %vm4422_vm10, %v4416_v25 }
 0x59b   : > { %v4411_v55 = vpop.f32.mrb[30].mxu1 }
 0x59c   : > { %v4412_v42 = vadd.f32 %v4411_v55, %v4341_v20  ;;  %v4955_v37 = vpop.f32.mrb[31].mxu1 }
 0x59e   : > { %v4415_v12 = vmax.f32 %v4412_v42, 0.0 }
 0x5a0   : > { %4959 = vmatmul.mubr.msk.f32.vlgmr.msra.gmra.mrb[32].mxu1 %vm4418_vm11, %v4415_v12 }
 0x673   : > { %v4492_v50 = vpop.f32.mrb[32].mxu1 }
 0x674   : > { %v4493_v43 = vadd.f32 %v4492_v50, %v4417_v46  ;;  %v4960_v19 = vpop.f32.mrb[33].mxu1  ;;  %v9050_v50 = vld [vmem:[#allocation9_spill] sm:$0xff] }
 0x675   : > { %v9052_v19 = vld [vmem:[#allocation7_spill] sm:$0xff] }
 0x676   : > { %v4937_v18 = vmul.f32 -1.442695, %v4493_v43  ;;  %v9051_v43 = vld [vmem:[#allocation10_spill] sm:$0xff] }
 0x678   : > { %6233 = vpow2.f32 %v4937_v18  ;;  %v9053_v18 = vld [vmem:[#allocation8_spill] sm:$0xff] }
 0x682   : > { %v6234_v33 = vpop.eup %6233 }
 0x683   : > { %v4499_v34 = vadd.f32 1.0, %v6234_v33  ;;  %v9054_v33 = vld [vmem:[#allocation11_spill] sm:$0xff] }
 0x685   : > { %6235 = vrcp.f32 %v4499_v34  ;;  %v9055_v34 = vld [vmem:[#allocation12_spill] sm:$0xff] }
 0x68f   : > { %v6236_v63 = vpop.eup %6235 }
 0x690   : > { %v4505_v10 = vrot.slane %v6236_v63, %v4504_v54  ;;  %v9058_v54 = vld [vmem:[#allocation15_spill] sm:$0xff]  ;;  %v9059_v63 = vld [vmem:[#allocation16_spill] sm:$0xff] }
 0x692   : > { %v4506_v7 = vmul.f32 %v4505_v10, %v8461_v60  ;;  %v4507_v15 = vmul.f32 %v4505_v10, %v8458_v14  ;;  %v4508_v23 = vmul.f32 %v4505_v10, %v8464_v6  ;;  %v4509_v25 = vmul.f32 %v4505_v10, %v8469_v9 }
 0x693   : > { %v4510_v20 = vmul.f32 %v4505_v10, %v8476_v49  ;;  %v4511_v55 = vmul.f32 %v4505_v10, %v8481_v5  ;;  %v4512_v42 = vmul.f32 %v4505_v10, %v8486_v39  ;;  %v4513_v37 = vmul.f32 %v4505_v10, %v8491_v57 }
 0x694   : > { %v4514_v12 = vmul.f32 %v4505_v10, %v8496_v22  ;;  %v4515_v46 = vmul.f32 %v4505_v10, %v8501_v0  ;;  %v4516_v60 = vmul.f32 %v4505_v10, %v8506_v62  ;;  %v4517_v14 = vmul.f32 %v4505_v10, %v8511_v41 }
 0x695   : > { %v4518_v6 = vmul.f32 %v4505_v10, %v8516_v52  ;;  %v4519_v9 = vmul.f32 %v4505_v10, %v8521_v51  ;;  %v4520_v49 = vmul.f32 %v4505_v10, %v8526_v13  ;;  %v4521_v5 = vmul.f32 %v4505_v10, %v8531_v56 }
 0x696   : > { %v4522_v39 = vmul.f32 %v4505_v10, %v8536_v28  ;;  %v4523_v57 = vmul.f32 %v4505_v10, %v8544_v44  ;;  %v4524_v22 = vmul.f32 %v4505_v10, %v8550_v53  ;;  %v4525_v0 = vmul.f32 %v4505_v10, %v8556_v11 }
 0x697   : > { %v4526_v62 = vmul.f32 %v4505_v10, %v8562_v8  ;;  %v4527_v41 = vmul.f32 %v4505_v10, %v8568_v61  ;;  %v4528_v52 = vmul.f32 %v4505_v10, %v8573_v4  ;;  %v4529_v51 = vmul.f32 %v4505_v10, %v8578_v16 }
 0x698   : > { %v4530_v13 = vmul.f32 %v4505_v10, %v8583_v58  ;;  %v4531_v56 = vmul.f32 %v4505_v10, %v8586_v1  ;;  %v4532_v28 = vmul.f32 %v4505_v10, %v8591_v36  ;;  %v4533_v44 = vmul.f32 %v4505_v10, %v8596_v40 }
 0x699   : > { %v4534_v53 = vmul.f32 %v4505_v10, %v8601_v3  ;;  %v4535_v11 = vmul.f32 %v4505_v10, %v8606_v21  ;;  %v4536_v8 = vmul.f32 %v4505_v10, %v8611_v38  ;;  %v4537_v61 = vmul.f32 %v4505_v10, %v8618_v45  ;;  %v9060_v10 = vld [vmem:[#allocation17_spill] sm:$0xff] }
 0x69a   : > { %v4538_v4 = vadd.f32 %v4506_v7, %v9050_v50  ;;  %v4539_v16 = vadd.f32 %v4507_v15, %v9051_v43  ;;  %v4540_v58 = vadd.f32 %v4508_v23, %v9052_v19  ;;  %v4541_v1 = vadd.f32 %v4509_v25, %v9053_v18  ;;  %v9061_v50 = vld [vmem:[#allocation18_spill] sm:$0xff]  ;;  %v9062_v23 = vld [vmem:[#allocation19_spill] sm:$0xff] }
 0x69b   : > { %v4542_v36 = vadd.f32 %v4510_v20, %v9054_v33  ;;  %v4543_v40 = vadd.f32 %v4511_v55, %v9055_v34  ;;  %v4544_v3 = vadd.f32 %v4512_v42, %v9056_v30  ;;  %v4545_v21 = vadd.f32 %v4513_v37, %v9057_v29  ;;  %v9063_v20 = vld [vmem:[#allocation20_spill] sm:$0xff]  ;;  %v9064_v42 = vld [vmem:[#allocation21_spill] sm:$0xff]  ;;  %v9069_v19 = vld [vmem:[#allocation26_spill] sm:$0xff] }
 0x69c   : > { %v4546_v38 = vadd.f32 %v4514_v12, %v9058_v54  ;;  %v4547_v45 = vadd.f32 %v4515_v46, %v9059_v63  ;;  %v4548_v7 = vadd.f32 %v4516_v60, %v9060_v10  ;;  %v4549_v15 = vadd.f32 %v4517_v14, %v9061_v50  ;;  %4570 = vst.msk [vmem:[#allocation2] sm:$0xff] %vm672_vm2, %v4538_v4  ;;  %v9065_v12 = vld [vmem:[#allocation22_spill] sm:$0xff]  ;;  %v9066_v60 = vld [vmem:[#allocation23_spill] sm:$0xff]  ;;  %v9067_v4 = vld [vmem:[#allocation24_spill] sm:$0xff] }
 0x69d   : > { %4571 = vst.msk [vmem:[#allocation2 + $0x8] sm:$0xff] %vm672_vm2, %v4539_v16  ;;  %4572 = vst.msk [vmem:[#allocation2 + $0x10] sm:$0xff] %vm672_vm2, %v4540_v58  ;;  %v4550_v25 = vadd.f32 %v4518_v6, %v9062_v23  ;;  %v4551_v55 = vadd.f32 %v4519_v9, %v9063_v20  ;;  %v4552_v37 = vadd.f32 %v4520_v49, %v9064_v42  ;;  %v9068_v16 = vld [vmem:[#allocation25_spill] sm:$0xff]  ;;  %v9070_v49 = vld [vmem:[#allocation27_spill] sm:$0xff] }
 0x69e   : > { %4573 = vst.msk [vmem:[#allocation2 + $0x18] sm:$0xff] %vm672_vm2, %v4541_v1  ;;  %v4553_v46 = vadd.f32 %v4521_v5, %v9065_v12  ;;  %4574 = vst.msk [vmem:[#allocation2 + $0x20] sm:$0xff] %vm672_vm2, %v4542_v36  ;;  %v4554_v14 = vadd.f32 %v4522_v39, %v9066_v60  ;;  %v4555_v43 = vadd.f32 %v4523_v57, %v9067_v4  ;;  %v9071_v58 = vld [vmem:[#allocation28_spill] sm:$0xff]  ;;  %v9072_v1 = vld [vmem:[#allocation29_spill] sm:$0xff] }
 0x69f   : > { %4575 = vst.msk [vmem:[#allocation2 + $0x28] sm:$0xff] %vm672_vm2, %v4543_v40  ;;  %4576 = vst.msk [vmem:[#allocation2 + $0x30] sm:$0xff] %vm672_vm2, %v4544_v3  ;;  %v4556_v6 = vadd.f32 %v4524_v22, %v9068_v16  ;;  %v4557_v9 = vadd.f32 %v4525_v0, %v9069_v19  ;;  %v4558_v5 = vadd.f32 %v4526_v62, %v9070_v49  ;;  %v9073_v33 = vld [vmem:[#allocation30_spill] sm:$0xff]  ;;  %v9074_v22 = vld [vmem:[#allocation31_spill] sm:$0xff] }
 0x6a0   : > { %4577 = vst.msk [vmem:[#allocation2 + $0x38] sm:$0xff] %vm672_vm2, %v4545_v21  ;;  %4578 = vst.msk [vmem:[#allocation2 + $0x40] sm:$0xff] %vm672_vm2, %v4546_v38  ;;  %v4559_v18 = vadd.f32 %v4527_v41, %v9071_v58  ;;  %v4560_v39 = vadd.f32 %v4528_v52, %v9072_v1  ;;  %v4561_v57 = vadd.f32 %v4529_v51, %v9073_v33  ;;  %v9075_v36 = vld [vmem:[#allocation32_spill] sm:$0xff]  ;;  %v9076_v40 = vld [vmem:[#allocation33_spill] sm:$0xff] }
 0x6a1   : > { %4579 = vst.msk [vmem:[#allocation2 + $0x48] sm:$0xff] %vm672_vm2, %v4547_v45  ;;  %4580 = vst.msk [vmem:[#allocation2 + $0x50] sm:$0xff] %vm672_vm2, %v4548_v7  ;;  %v4562_v0 = vadd.f32 %v4530_v13, %v9074_v22  ;;  %v4563_v34 = vadd.f32 %v4531_v56, %v9075_v36  ;;  %v4564_v62 = vadd.f32 %v4532_v28, %v9076_v40  ;;  %v9077_v30 = vld [vmem:[#allocation34_spill] sm:$0xff]  ;;  %v9078_v52 = vld [vmem:[#allocation35_spill] sm:$0xff] }
 0x6a2   : > { %4581 = vst.msk [vmem:[#allocation2 + $0x58] sm:$0xff] %vm672_vm2, %v4549_v15  ;;  %4582 = vst.msk [vmem:[#allocation2 + $0x60] sm:$0xff] %vm672_vm2, %v4550_v25  ;;  %v4565_v41 = vadd.f32 %v4533_v44, %v9077_v30  ;;  %v4566_v51 = vadd.f32 %v4534_v53, %v9078_v52  ;;  %v9079_v3 = vld [vmem:[#allocation36_spill] sm:$0xff]  ;;  %v9080_v21 = vld [vmem:[#allocation37_spill] sm:$0xff] }
 0x6a3   : > { %4583 = vst.msk [vmem:[#allocation2 + $0x68] sm:$0xff] %vm672_vm2, %v4551_v55  ;;  %4584 = vst.msk [vmem:[#allocation2 + $0x70] sm:$0xff] %vm672_vm2, %v4552_v37  ;;  %v4567_v29 = vadd.f32 %v4535_v11, %v9079_v3  ;;  %v4568_v13 = vadd.f32 %v4536_v8, %v9080_v21  ;;  %v9081_v54 = vld [vmem:[#allocation38_spill] sm:$0xff] }
 0x6a4   : > { %4585 = vst.msk [vmem:[#allocation2 + $0x78] sm:$0xff] %vm672_vm2, %v4553_v46  ;;  %4586 = vst.msk [vmem:[#allocation2 + $0x80] sm:$0xff] %vm672_vm2, %v4554_v14  ;;  %v4569_v56 = vadd.f32 %v4537_v61, %v9081_v54 }
 0x6a5   : > { %4587 = vst.msk [vmem:[#allocation2 + $0x88] sm:$0xff] %vm672_vm2, %v4555_v43  ;;  %4588 = vst.msk [vmem:[#allocation2 + $0x90] sm:$0xff] %vm672_vm2, %v4556_v6 }
 0x6a6   : > { %4589 = vst.msk [vmem:[#allocation2 + $0x98] sm:$0xff] %vm672_vm2, %v4557_v9  ;;  %4590 = vst.msk [vmem:[#allocation2 + $0xa0] sm:$0xff] %vm672_vm2, %v4558_v5 }
 0x6a7   : > { %4591 = vst.msk [vmem:[#allocation2 + $0xa8] sm:$0xff] %vm672_vm2, %v4559_v18  ;;  %4592 = vst.msk [vmem:[#allocation2 + $0xb0] sm:$0xff] %vm672_vm2, %v4560_v39 }
 0x6a8   : > { %4593 = vst.msk [vmem:[#allocation2 + $0xb8] sm:$0xff] %vm672_vm2, %v4561_v57  ;;  %4594 = vst.msk [vmem:[#allocation2 + $0xc0] sm:$0xff] %vm672_vm2, %v4562_v0 }
 0x6a9   : > { %4595 = vst.msk [vmem:[#allocation2 + $0xc8] sm:$0xff] %vm672_vm2, %v4563_v34  ;;  %4596 = vst.msk [vmem:[#allocation2 + $0xd0] sm:$0xff] %vm672_vm2, %v4564_v62 }
 0x6aa   : > { %4597 = vst.msk [vmem:[#allocation2 + $0xd8] sm:$0xff] %vm672_vm2, %v4565_v41  ;;  %4598 = vst.msk [vmem:[#allocation2 + $0xe0] sm:$0xff] %vm672_vm2, %v4566_v51 }
 0x6ab   : > { %4599 = vst.msk [vmem:[#allocation2 + $0xe8] sm:$0xff] %vm672_vm2, %v4567_v29  ;;  %4600 = vst.msk [vmem:[#allocation2 + $0xf0] sm:$0xff] %vm672_vm2, %v4568_v13 }
 0x6ac   : > { %4601 = vst.msk [vmem:[#allocation2 + $0xf8] sm:$0xff] %vm672_vm2, %v4569_v56 }
 0x6ad PF: > { %p4938_p9 = scmp.ne.s32.totalorder %s6259_s30, 2 }
 0x6ae   : > { %v4606_v28 = vld [vmem:[%s6385_s20] sm:$0xff] (!%p4938_p9)  ;;  %v4607_v44 = vld [vmem:[%s6385_s20 + $0x8] sm:$0xff] (!%p4938_p9)  ;;  %v4608_v53 = vld [vmem:[%s6385_s20 + $0x10] sm:$0xff] (!%p4938_p9) }
 0x6af   : > { %4605 = sbr.rel (%p4938_p9) target bundleno = 1734 (0x6c6), region = 68  ;;  %v4638_v11 = vadd.f32 (!%p4938_p9), %v4606_v28, %v7619_v48  ;;  %v4639_v8 = vadd.f32 (!%p4938_p9), %v4607_v44, %v7625_v35  ;;  %v4640_v61 = vadd.f32 (!%p4938_p9), %v4608_v53, %v7631_v47  ;;  %v4609_v38 = vld [vmem:[%s6385_s20 + $0x18] sm:$0xff] (!%p4938_p9)  ;;  %v4610_v63 = vld [vmem:[%s6385_s20 + $0x20] sm:$0xff] (!%p4938_p9)  ;;  %v4611_v45 = vld [vmem:[%s6385_s20 + $0x28] sm:$0xff] (!%p4938_p9) }
 0x6b0   : > { %v4641_v10 = vadd.f32 (!%p4938_p9), %v4609_v38, %v7637_v27  ;;  %v4642_v7 = vadd.f32 (!%p4938_p9), %v4610_v63, %v7643_v2  ;;  %v4643_v50 = vadd.f32 (!%p4938_p9), %v4611_v45, %v7649_v26  ;;  %v4612_v48 = vld [vmem:[%s6385_s20 + $0x30] sm:$0xff] (!%p4938_p9)  ;;  %v4613_v15 = vld [vmem:[%s6385_s20 + $0x38] sm:$0xff] (!%p4938_p9)  ;;  %v4614_v35 = vld [vmem:[%s6385_s20 + $0x40] sm:$0xff] (!%p4938_p9) }
 0x6b1   : > { %4670 = vst.msk [vmem:[%s6429_s0] sm:$0xff] (!%p4938_p9), %vm672_vm2, %v4638_v11  ;;  %4671 = vst.msk [vmem:[%s6429_s0 + $0x8] sm:$0xff] (!%p4938_p9), %vm672_vm2, %v4639_v8  ;;  %v4644_v47 = vadd.f32 (!%p4938_p9), %v4612_v48, %v7655_v32  ;;  %v4645_v27 = vadd.f32 (!%p4938_p9), %v4613_v15, %v7661_v31  ;;  %v4646_v2 = vadd.f32 (!%p4938_p9), %v4614_v35, %v7667_v17  ;;  %v4615_v26 = vld [vmem:[%s6385_s20 + $0x48] sm:$0xff] (!%p4938_p9)  ;;  %v4616_v23 = vld [vmem:[%s6385_s20 + $0x50] sm:$0xff] (!%p4938_p9) }
 0x6b2   : > { %4672 = vst.msk [vmem:[%s6429_s0 + $0x10] sm:$0xff] (!%p4938_p9), %vm672_vm2, %v4640_v61  ;;  %v4617_v25 = vld [vmem:[%s6385_s20 + $0x58] sm:$0xff] (!%p4938_p9)  ;;  %4673 = vst.msk [vmem:[%s6429_s0 + $0x18] sm:$0xff] (!%p4938_p9), %vm672_vm2, %v4641_v10  ;;  %v4647_v32 = vadd.f32 (!%p4938_p9), %v4615_v26, %v7673_v59  ;;  %v4648_v31 = vadd.f32 (!%p4938_p9), %v4616_v23, %v7679_v24  ;;  %v9082_v20 = vld [vmem:[#allocation44_spill] sm:$0xff] (!%p4938_p9) }
 0x6b3   : > { %4674 = vst.msk [vmem:[%s6429_s0 + $0x20] sm:$0xff] (!%p4938_p9), %vm672_vm2, %v4642_v7  ;;  %4675 = vst.msk [vmem:[%s6429_s0 + $0x28] sm:$0xff] (!%p4938_p9), %vm672_vm2, %v4643_v50  ;;  %v4649_v17 = vadd.f32 (!%p4938_p9), %v4617_v25, %v9082_v20  ;;  %v4618_v55 = vld [vmem:[%s6385_s20 + $0x60] sm:$0xff] (!%p4938_p9)  ;;  %v4619_v42 = vld [vmem:[%s6385_s20 + $0x68] sm:$0xff] (!%p4938_p9) }
 0x6b4   : > { %v4620_v37 = vld [vmem:[%s6385_s20 + $0x70] sm:$0xff] (!%p4938_p9)  ;;  %4676 = vst.msk [vmem:[%s6429_s0 + $0x30] sm:$0xff] (!%p4938_p9), %vm672_vm2, %v4644_v47  ;;  %4677 = vst.msk [vmem:[%s6429_s0 + $0x38] sm:$0xff] (!%p4938_p9), %vm672_vm2, %v4645_v27  ;;  %v9083_v12 = vld [vmem:[#allocation52_spill] sm:$0xff] (!%p4938_p9) }
 0x6b5   : > { %4678 = vst.msk [vmem:[%s6429_s0 + $0x40] sm:$0xff] (!%p4938_p9), %vm672_vm2, %v4646_v2  ;;  %v4650_v59 = vadd.f32 (!%p4938_p9), %v4618_v55, %v9083_v12  ;;  %v9084_v46 = vld [vmem:[#allocation54_spill] sm:$0xff] (!%p4938_p9)  ;;  %v9085_v60 = vld [vmem:[#allocation56_spill] sm:$0xff] (!%p4938_p9)  ;;  %v4622_v43 = vld [vmem:[%s6385_s20 + $0x80] sm:$0xff] (!%p4938_p9) }
 0x6b6   : > { %v4651_v24 = vadd.f32 %v4619_v42, %v9084_v46  ;;  %v4652_v14 = vadd.f32 %v4620_v37, %v9085_v60  ;;  %v4621_v4 = vld [vmem:[%s6385_s20 + $0x78] sm:$0xff]  ;;  %v4623_v16 = vld [vmem:[%s6385_s20 + $0x88] sm:$0xff]  ;;  %4679 = vst.msk [vmem:[%s6429_s0 + $0x48] sm:$0xff] %vm672_vm2, %v4647_v32  ;;  %4680 = vst.msk [vmem:[%s6429_s0 + $0x50] sm:$0xff] %vm672_vm2, %v4648_v31 }
 0x6b7   : > { %4681 = vst.msk [vmem:[%s6429_s0 + $0x58] sm:$0xff] %vm672_vm2, %v4649_v17  ;;  %v9086_v6 = vld [vmem:[#allocation58_spill] sm:$0xff]  ;;  %v9087_v9 = vld [vmem:[#allocation48_spill] sm:$0xff]  ;;  %v9088_v5 = vld [vmem:[#allocation39_spill] sm:$0xff] }
 0x6b8   : > { %v4653_v19 = vadd.f32 %v4621_v4, %v9086_v6  ;;  %v4654_v49 = vadd.f32 %v4622_v43, %v9087_v9  ;;  %v4655_v58 = vadd.f32 %v4623_v16, %v9088_v5  ;;  %v4624_v18 = vld [vmem:[%s6385_s20 + $0x90] sm:$0xff]  ;;  %v4625_v1 = vld [vmem:[%s6385_s20 + $0x98] sm:$0xff]  ;;  %v4626_v39 = vld [vmem:[%s6385_s20 + $0xa0] sm:$0xff]  ;;  %4682 = vst.msk [vmem:[%s6429_s0 + $0x60] sm:$0xff] %vm672_vm2, %v4650_v59 }
 0x6b9   : > { %4683 = vst.msk [vmem:[%s6429_s0 + $0x68] sm:$0xff] %vm672_vm2, %v4651_v24  ;;  %4684 = vst.msk [vmem:[%s6429_s0 + $0x70] sm:$0xff] %vm672_vm2, %v4652_v14  ;;  %v9089_v33 = vld [vmem:[#allocation42_spill] sm:$0xff]  ;;  %v9090_v22 = vld [vmem:[#allocation45_spill] sm:$0xff] }
 0x6ba   : > { %v4656_v57 = vadd.f32 %v4624_v18, %v9089_v33  ;;  %v4657_v0 = vadd.f32 %v4625_v1, %v9090_v22  ;;  %v9091_v36 = vld [vmem:[#allocation49_spill] sm:$0xff]  ;;  %v4627_v40 = vld [vmem:[%s6385_s20 + $0xa8] sm:$0xff]  ;;  %v4629_v30 = vld [vmem:[%s6385_s20 + $0xb8] sm:$0xff]  ;;  %4685 = vst.msk [vmem:[%s6429_s0 + $0x78] sm:$0xff] %vm672_vm2, %v4653_v19 }
 0x6bb   : > { %v4658_v34 = vadd.f32 %v4626_v39, %v9091_v36  ;;  %v4628_v62 = vld [vmem:[%s6385_s20 + $0xb0] sm:$0xff]  ;;  %4686 = vst.msk [vmem:[%s6429_s0 + $0x80] sm:$0xff] %vm672_vm2, %v4654_v49  ;;  %4687 = vst.msk [vmem:[%s6429_s0 + $0x88] sm:$0xff] %vm672_vm2, %v4655_v58  ;;  %v9092_v41 = vld [vmem:[#allocation50_spill] sm:$0xff] }
 0x6bc   : > { %v4659_v52 = vadd.f32 %v4627_v40, %v9092_v41  ;;  %v9093_v51 = vld [vmem:[#allocation51_spill] sm:$0xff]  ;;  %v9094_v29 = vld [vmem:[#allocation40_spill] sm:$0xff]  ;;  %v4632_v56 = vld [vmem:[%s6385_s20 + $0xd0] sm:$0xff]  ;;  %4688 = vst.msk [vmem:[%s6429_s0 + $0x90] sm:$0xff] %vm672_vm2, %v4656_v57 }
 0x6bd   : > { %v4660_v3 = vadd.f32 %v4628_v62, %v9093_v51  ;;  %v4661_v21 = vadd.f32 %v4629_v30, %v9094_v29  ;;  %v4630_v13 = vld [vmem:[%s6385_s20 + $0xc0] sm:$0xff]  ;;  %v4631_v54 = vld [vmem:[%s6385_s20 + $0xc8] sm:$0xff]  ;;  %4689 = vst.msk [vmem:[%s6429_s0 + $0x98] sm:$0xff] %vm672_vm2, %v4657_v0  ;;  %4690 = vst.msk [vmem:[%s6429_s0 + $0xa0] sm:$0xff] %vm672_vm2, %v4658_v34 }
 0x6be   : > { %v9095_v28 = vld [vmem:[#allocation43_spill] sm:$0xff]  ;;  %v9096_v53 = vld [vmem:[#allocation46_spill] sm:$0xff]  ;;  %v9097_v8 = vld [vmem:[#allocation41_spill] sm:$0xff]  ;;  %4691 = vst.msk [vmem:[%s6429_s0 + $0xa8] sm:$0xff] %vm672_vm2, %v4659_v52 }
 0x6bf   : > { %v4662_v44 = vadd.f32 %v4630_v13, %v9095_v28  ;;  %v4663_v11 = vadd.f32 %v4631_v54, %v9096_v53  ;;  %v4664_v61 = vadd.f32 %v4632_v56, %v9097_v8  ;;  %v4633_v38 = vld [vmem:[%s6385_s20 + $0xd8] sm:$0xff]  ;;  %v4634_v63 = vld [vmem:[%s6385_s20 + $0xe0] sm:$0xff]  ;;  %v4635_v45 = vld [vmem:[%s6385_s20 + $0xe8] sm:$0xff]  ;;  %4692 = vst.msk [vmem:[%s6429_s0 + $0xb0] sm:$0xff] %vm672_vm2, %v4660_v3 }
 0x6c0   : > { %4693 = vst.msk [vmem:[%s6429_s0 + $0xb8] sm:$0xff] %vm672_vm2, %v4661_v21  ;;  %v9098_v10 = vld [vmem:[#allocation47_spill] sm:$0xff]  ;;  %v9099_v50 = vld [vmem:[#allocation53_spill] sm:$0xff]  ;;  %v4637_v27 = vld [vmem:[%s6385_s20 + $0xf8] sm:$0xff] }
 0x6c1   : > { %v4665_v7 = vadd.f32 %v4633_v38, %v9098_v10  ;;  %v4666_v48 = vadd.f32 %v4634_v63, %v9099_v50  ;;  %v9100_v15 = vld [vmem:[#allocation55_spill] sm:$0xff]  ;;  %v4636_v47 = vld [vmem:[%s6385_s20 + $0xf0] sm:$0xff]  ;;  %4694 = vst.msk [vmem:[%s6429_s0 + $0xc0] sm:$0xff] %vm672_vm2, %v4662_v44  ;;  %4695 = vst.msk [vmem:[%s6429_s0 + $0xc8] sm:$0xff] %vm672_vm2, %v4663_v11 }
 0x6c2   : > { %v4667_v35 = vadd.f32 %v4635_v45, %v9100_v15  ;;  %4696 = vst.msk [vmem:[%s6429_s0 + $0xd0] sm:$0xff] %vm672_vm2, %v4664_v61  ;;  %v9101_v2 = vld [vmem:[#allocation57_spill] sm:$0xff]  ;;  %v9102_v23 = vld [vmem:[#allocation59_spill] sm:$0xff] }
 0x6c3   : > { %v4668_v26 = vadd.f32 %v4636_v47, %v9101_v2  ;;  %v4669_v25 = vadd.f32 %v4637_v27, %v9102_v23  ;;  %4697 = vst.msk [vmem:[%s6429_s0 + $0xd8] sm:$0xff] %vm672_vm2, %v4665_v7  ;;  %4698 = vst.msk [vmem:[%s6429_s0 + $0xe0] sm:$0xff] %vm672_vm2, %v4666_v48 }
 0x6c4   : > { %4699 = vst.msk [vmem:[%s6429_s0 + $0xe8] sm:$0xff] %vm672_vm2, %v4667_v35 }
 0x6c5   : > { %4700 = vst.msk [vmem:[%s6429_s0 + $0xf0] sm:$0xff] %vm672_vm2, %v4668_v26  ;;  %4701 = vst.msk [vmem:[%s6429_s0 + $0xf8] sm:$0xff] %vm672_vm2, %v4669_v25 }
 0x6c6 PF: > { %s19_s13 = sadd.s32 1, %s6275_s13   ;;  %s9103_s10 = sld [smem:[#allocation4_spill]] }
 0x6c7   : > { %p16_p10 = scmp.ge.s32.totalorder %s19_s13, 8   ;;  %s9104_s16 = sld [smem:[#allocation5_spill]] }
 0x6c8   : > { %s9105_s12 = sld [smem:[#allocation6_spill]]  ;;  %s9106_s30 = smov %s6267_s11 }
 0x6c9   :  { %18 = sbr.rel (!%p16_p10) target bundleno = 4 (0x4), region = 124 }
 0x6cd   : > { %s9107_s11 = smov %s9104_s16 }

</bundles_post_ra>
